<compile_context>
chip_gen: v7x
topology: tpu7x:2x2x1
jax: 0.10.0
libtpu: 0.0.40
codegen_flags: <defaults>
</compile_context>

<pallas_src>
import jax
import jax.numpy as jnp
from jax import lax
from jax.experimental import pallas as pl
from jax.experimental.pallas import tpu as pltpu

EPS = 1.1920929e-07          # torch.finfo(torch.float32).eps (F.rms_norm default)
ATTN_SCALE = 0.12
NEG_BIG = -1e30              # finite mask value (diagonal always unmasked)

# ------------------------- small config (consistent with the module) ----------
B, T = 2, 8
N_EMBD, N_HEAD, N_HIDDEN, BLOCK_SIZE = 32, 2, 64, 16
HEAD_DIM = N_EMBD // N_HEAD          # 16
HALF = HEAD_DIM // 2                 # 8


# --------------------------- in-kernel math helpers ----------------------------
def _rms(x):
    return x * lax.rsqrt(jnp.mean(x * x, axis=-1, keepdims=True) + EPS)


def _quant_linear(x, wt, relu_sq=False):
    # Linear.forward (eval): act_quant(rms_norm(x)) @ weight_quant(W).T
    # (wt is the pre-quantized, pre-transposed weight, [in, out])
    xn = _rms(x)
    amax = jnp.maximum(jnp.max(jnp.abs(xn), axis=-1, keepdims=True), 1e-5)
    scale = 127.0 / amax
    xq = jnp.clip(jnp.round(xn * scale), -128.0, 127.0) / scale
    y = jnp.dot(xq, wt, preferred_element_type=jnp.float32)
    if relu_sq:                                     # fused relu()^2
        y = jnp.square(jnp.maximum(y, 0.0))
    return y


def _attention_branch(xn, w_cattn_t, w_cproj_t, cos_h, sin_h):
    # xn: [B*T, C]; cos_h/sin_h: [H, Dh//2] (rotary indexed by HEAD — quirk kept)
    BT, C = xn.shape
    H, Dh, half = N_HEAD, HEAD_DIM, HALF
    T_ = BT // B
    qkv = _quant_linear(xn, w_cattn_t)                       # [B*T, 3C]
    q_all = qkv[:, 0 * C:1 * C]
    k_all = qkv[:, 1 * C:2 * C]
    v_all = qkv[:, 2 * C:3 * C]

    row = lax.broadcasted_iota(jnp.int32, (T_, T_), 0)
    col = lax.broadcasted_iota(jnp.int32, (T_, T_), 1)
    causal = row >= col

    batch_rows = []
    for b in range(B):                                       # static, unrolled
        r0, r1 = b * T_, (b + 1) * T_
        head_out = []
        for h in range(H):                                   # static, unrolled
            c0, c1 = h * Dh, (h + 1) * Dh
            q = _rms(q_all[r0:r1, c0:c1])                    # [T, Dh]
            k = _rms(k_all[r0:r1, c0:c1])
            v = _rms(v_all[r0:r1, c0:c1])
            cos = cos_h[h:h + 1, :]                          # [1, half]
            sin = sin_h[h:h + 1, :]

            def rot(x):
                x1, x2 = x[:, :half], x[:, half:]
                return jnp.concatenate(
                    [x1 * cos + x2 * sin, -x1 * sin + x2 * cos], axis=-1)

            q, k = rot(q), rot(k)
            # scores: contract last dims (no explicit transpose)
            s = lax.dot_general(q, k, (((1,), (1,)), ((), ())),
                                preferred_element_type=jnp.float32) * ATTN_SCALE
            s = jnp.where(causal, s, NEG_BIG)
            m = jnp.max(s, axis=-1, keepdims=True)
            e = jnp.exp(s - m)
            p = e * pl.reciprocal(jnp.sum(e, axis=-1, keepdims=True), approx=True)
            head_out.append(jnp.dot(p, v, preferred_element_type=jnp.float32))
        batch_rows.append(jnp.concatenate(head_out, axis=-1))   # [T, C]
    y = jnp.concatenate(batch_rows, axis=0)                      # [B*T, C]
    return _quant_linear(y, w_cproj_t)


# ------------------------------ fused block kernel ------------------------------
def _block_kernel(x_ref, cos_ref, sin_ref,
                  a1_attn_ref, a1_proj_ref, a2_attn_ref, a2_proj_ref,
                  fc1_ref, fc2_ref, fproj_ref, o_ref):
    x = x_ref[...]                                   # [B*T, C]
    xn = _rms(x)                                     # Block.forward's norm(x)

    # FFN branch
    h = _quant_linear(xn, fc1_ref[...], relu_sq=True)
    h = _quant_linear(h, fc2_ref[...], relu_sq=True)
    ffn = _quant_linear(h, fproj_ref[...])

    # Attention branches (c_proj weights are zero at init, but still applied)
    cos_h, sin_h = cos_ref[...], sin_ref[...]
    a1 = _attention_branch(xn, a1_attn_ref[...], a1_proj_ref[...], cos_h, sin_h)
    a2 = _attention_branch(xn, a2_attn_ref[...], a2_proj_ref[...], cos_h, sin_h)

    o_ref[...] = x + ffn + a1 + a2


def block_forward(x, params, cos_tab, sin_tab):
    Bb, T_, C = x.shape
    x2 = x.reshape(Bb * T_, C).astype(jnp.float32)
    cos_h = cos_tab[:N_HEAD].astype(jnp.float32)     # [H, Dh//2] (head-indexed)
    sin_h = sin_tab[:N_HEAD].astype(jnp.float32)
    vmem = pl.BlockSpec(memory_space=pltpu.MemorySpace.VMEM)
    out = pl.pallas_call(
        _block_kernel,
        out_shape=jax.ShapeDtypeStruct((Bb * T_, C), jnp.float32),
        in_specs=[vmem] * 10,
        out_specs=vmem,
    )(x2, cos_h, sin_h,
      params["attn_1"]["c_attn"], params["attn_1"]["c_proj"],
      params["attn_2"]["c_attn"], params["attn_2"]["c_proj"],
      params["fnn"]["c_fc_1"], params["fnn"]["c_fc_2"], params["fnn"]["c_proj"])
    return out.reshape(Bb, T_, C)


# ------------------------- parameter prep (plain JAX glue) ---------------------
def weight_quant(w):
    scale = 1.0 / jnp.maximum(jnp.mean(jnp.abs(w)), 1e-5)
    return jnp.clip(jnp.round(w * scale), -1.0, 1.0) / scale


def init_linear(key, out_f, in_f):
    std = 0.5 * in_f ** -0.5
    bound = (3.0 ** 0.5) * std
    return jax.random.uniform(key, (out_f, in_f), jnp.float32, -bound, bound)


def prep(w):
    # kernel-ready: quantized then transposed to [in_features, out_features]
    return weight_quant(w).T


def make_params(key, zero_attn_proj=True):
    ks = jax.random.split(key, 7)
    if zero_attn_proj:
        proj1 = jnp.zeros((N_EMBD, N_EMBD), jnp.float32)   # c_proj.weight.zero_()
        proj2 = jnp.zeros((N_EMBD, N_EMBD), jnp.float32)
    else:
        proj1 = init_linear(ks[5], N_EMBD, N_EMBD)
        proj2 = init_linear(ks[6], N_EMBD, N_EMBD)
    attn1 = {"c_attn": prep(init_linear(ks[0], 3 * N_EMBD, N_EMBD)),
             "c_proj": prep(proj1)}
    attn2 = {"c_attn": prep(init_linear(ks[1], 3 * N_EMBD, N_EMBD)),
             "c_proj": prep(proj2)}
    fnn = {"c_fc_1": prep(init_linear(ks[2], N_HIDDEN, N_EMBD)),
           "c_fc_2": prep(init_linear(ks[3], N_HIDDEN, N_HIDDEN)),
           "c_proj": prep(init_linear(ks[4], N_EMBD, N_HIDDEN))}
    return {"attn_1": attn1, "attn_2": attn2, "fnn": fnn}


def rotary_tables(head_dim, max_seq_len):
    quarter = head_dim // 4
    freq = (1.0 / 1024.0) ** jnp.linspace(0.0, 1.0, quarter, dtype=jnp.float32)
    freq = jnp.concatenate([freq, jnp.zeros((quarter,), jnp.float32)])
    t = jnp.arange(max_seq_len, dtype=jnp.float32)
    theta = t[:, None] * freq[None, :]
    return jnp.cos(theta), jnp.sin(theta)


# ------------------------- pure-JAX reference (for checking) -------------------
def ref_norm(x):
    return x * lax.rsqrt(jnp.mean(x * x, axis=-1, keepdims=True) + EPS)


def ref_qlin(x, w_q_t, relu_sq=False):
    xn = ref_norm(x)
    amax = jnp.maximum(jnp.max(jnp.abs(xn), axis=-1, keepdims=True), 1e-5)
    scale = 127.0 / amax
    xq = jnp.clip(jnp.round(xn * scale), -128.0, 127.0) / scale
    y = xq @ w_q_t
    if relu_sq:
        y = jnp.square(jnp.maximum(y, 0.0))
    return y


def ref_attention(xn, p, cos_tab, sin_tab):
    Bb, T_, C = xn.shape
    H, Dh = N_HEAD, C // N_HEAD
    q, k, v = jnp.split(ref_qlin(xn, p["c_attn"]), 3, axis=-1)
    heads = lambda a: a.reshape(Bb, T_, H, Dh).transpose(0, 2, 1, 3)
    q, k, v = ref_norm(heads(q)), ref_norm(heads(k)), ref_norm(heads(v))
    cos = cos_tab[:H][None, :, None, :]
    sin = sin_tab[:H][None, :, None, :]

    def rot(x):
        x1, x2 = jnp.split(x, 2, axis=-1)
        return jnp.concatenate([x1 * cos + x2 * sin, -x1 * sin + x2 * cos], axis=-1)

    q, k = rot(q), rot(k)
    s = jnp.einsum("bhqd,bhkd->bhqk", q, k) * ATTN_SCALE
    mask = jnp.tril(jnp.ones((T_, T_), bool))
    s = jnp.where(mask[None, None], s, -jnp.inf)
    pr = jax.nn.softmax(s, axis=-1)
    y = jnp.einsum("bhqk,bhkd->bhqd", pr, v)
    y = y.transpose(0, 2, 1, 3).reshape(Bb, T_, C)
    return ref_qlin(y, p["c_proj"])


def ref_ffn(xn, p):
    h = ref_qlin(xn, p["c_fc_1"], relu_sq=True)
    h = ref_qlin(h, p["c_fc_2"], relu_sq=True)
    return ref_qlin(h, p["c_proj"])


def ref_block(x, params, cos_tab, sin_tab):
    xn = ref_norm(x)
    return (x
            + ref_ffn(xn, params["fnn"])
            + ref_attention(xn, params["attn_1"], cos_tab, sin_tab)
            + ref_attention(xn, params["attn_2"], cos_tab, sin_tab))


# -------------------------------------- main -----------------------------------
if __name__ == "__main__":
    key = jax.random.PRNGKey(0)
    kx, kp, kp2 = jax.random.split(key, 3)
    x = jax.random.normal(kx, (B, T, N_EMBD), dtype=jnp.float32)
    cos_tab, sin_tab = rotary_tables(HEAD_DIM, BLOCK_SIZE)

    # Faithful parameters (attention c_proj zeroed, exactly as in __init__).
    params = make_params(kp, zero_attn_proj=True)
    out = jax.block_until_ready(block_forward(x, params, cos_tab, sin_tab))
    ref = jax.block_until_ready(ref_block(x, params, cos_tab, sin_tab))
    assert out.shape == x.shape, (out.shape, x.shape)
    assert bool(jnp.all(jnp.isfinite(out)))
    max_err = float(jnp.max(jnp.abs(out - ref)))
    assert max_err < 1e-2, f"mismatch vs pure-JAX reference: {max_err}"

    # Extra validation: non-zero attention c_proj so the attention path is
    # actually exercised (with zeroed c_proj it contributes exactly 0).
    # Looser tolerance: differences are only MXU/XLA f32-dot precision and
    # quantization-boundary flips; a real attention bug would be O(0.1+).
    params_nz = make_params(kp2, zero_attn_proj=False)
    out_nz = jax.block_until_ready(block_forward(x, params_nz, cos_tab, sin_tab))
    ref_nz = jax.block_until_ready(ref_block(x, params_nz, cos_tab, sin_tab))
    max_err_nz = float(jnp.max(jnp.abs(out_nz - ref_nz)))
    assert max_err_nz < 5e-2, f"attention-path mismatch: {max_err_nz}"

    print("KERNEL_OK")
</pallas_src>

<mosaic_0001>
module attributes {stable_mosaic.version = 11 : i64} {
  func.func @_block_kernel(%arg0: memref<16x32xf32, #tpu.memory_space<vmem>>, %arg1: memref<2x8xf32, #tpu.memory_space<vmem>>, %arg2: memref<2x8xf32, #tpu.memory_space<vmem>>, %arg3: memref<32x96xf32, #tpu.memory_space<vmem>>, %arg4: memref<32x32xf32, #tpu.memory_space<vmem>>, %arg5: memref<32x96xf32, #tpu.memory_space<vmem>>, %arg6: memref<32x32xf32, #tpu.memory_space<vmem>>, %arg7: memref<32x64xf32, #tpu.memory_space<vmem>>, %arg8: memref<64x64xf32, #tpu.memory_space<vmem>>, %arg9: memref<64x32xf32, #tpu.memory_space<vmem>>, %arg10: memref<16x32xf32, #tpu.memory_space<vmem>>) attributes {dimension_semantics = [], scalar_prefetch = 0 : i64, scratch_operands = 0 : i64, tpu.core_type = #tpu.core_type<tc>} {
    %c0 = arith.constant 0 : index
    %c0_0 = arith.constant 0 : index
    %0 = vector.load %arg0[%c0, %c0_0] : memref<16x32xf32, #tpu.memory_space<vmem>>, vector<16x32xf32>
    %1 = arith.mulf %0, %0 : vector<16x32xf32>
    %cst = arith.constant dense<0.000000e+00> : vector<16xf32>
    %2 = vector.multi_reduction <add>, %1, %cst [1] : vector<16x32xf32> to vector<16xf32>
    %3 = vector.shape_cast %2 : vector<16xf32> to vector<16x1xf32>
    %cst_1 = arith.constant 3.200000e+01 : f32
    %4 = vector.broadcast %cst_1 : f32 to vector<16x1xf32>
    %5 = arith.divf %3, %4 : vector<16x1xf32>
    %cst_2 = arith.constant 1.1920929E-7 : f32
    %6 = vector.broadcast %cst_2 : f32 to vector<16x1xf32>
    %7 = arith.addf %5, %6 : vector<16x1xf32>
    %8 = math.rsqrt %7 : vector<16x1xf32>
    %9 = vector.broadcast %8 : vector<16x1xf32> to vector<16x32xf32>
    %10 = arith.mulf %0, %9 : vector<16x32xf32>
    %c0_3 = arith.constant 0 : index
    %c0_4 = arith.constant 0 : index
    %11 = vector.load %arg7[%c0_3, %c0_4] : memref<32x64xf32, #tpu.memory_space<vmem>>, vector<32x64xf32>
    %12 = arith.mulf %10, %10 : vector<16x32xf32>
    %cst_5 = arith.constant dense<0.000000e+00> : vector<16xf32>
    %13 = vector.multi_reduction <add>, %12, %cst_5 [1] : vector<16x32xf32> to vector<16xf32>
    %14 = vector.shape_cast %13 : vector<16xf32> to vector<16x1xf32>
    %cst_6 = arith.constant 3.200000e+01 : f32
    %15 = vector.broadcast %cst_6 : f32 to vector<16x1xf32>
    %16 = arith.divf %14, %15 : vector<16x1xf32>
    %cst_7 = arith.constant 1.1920929E-7 : f32
    %17 = vector.broadcast %cst_7 : f32 to vector<16x1xf32>
    %18 = arith.addf %16, %17 : vector<16x1xf32>
    %19 = math.rsqrt %18 : vector<16x1xf32>
    %20 = vector.broadcast %19 : vector<16x1xf32> to vector<16x32xf32>
    %21 = arith.mulf %10, %20 : vector<16x32xf32>
    %22 = math.absf %21 : vector<16x32xf32>
    %cst_8 = arith.constant dense<0xFF800000> : vector<16xf32>
    %23 = vector.multi_reduction <maximumf>, %22, %cst_8 [1] : vector<16x32xf32> to vector<16xf32>
    %24 = vector.shape_cast %23 : vector<16xf32> to vector<16x1xf32>
    %cst_9 = arith.constant 9.99999974E-6 : f32
    %25 = vector.broadcast %cst_9 : f32 to vector<16x1xf32>
    %26 = arith.maximumf %24, %25 : vector<16x1xf32>
    %cst_10 = arith.constant 1.270000e+02 : f32
    %27 = vector.broadcast %cst_10 : f32 to vector<16x1xf32>
    %28 = arith.divf %27, %26 : vector<16x1xf32>
    %29 = vector.broadcast %28 : vector<16x1xf32> to vector<16x32xf32>
    %30 = arith.mulf %21, %29 : vector<16x32xf32>
    %31 = math.roundeven %30 : vector<16x32xf32>
    %cst_11 = arith.constant -1.280000e+02 : f32
    %cst_12 = arith.constant 1.270000e+02 : f32
    %32 = vector.broadcast %cst_11 : f32 to vector<16x32xf32>
    %33 = arith.maximumf %32, %31 : vector<16x32xf32>
    %34 = vector.broadcast %cst_12 : f32 to vector<16x32xf32>
    %35 = arith.minimumf %34, %33 : vector<16x32xf32>
    %36 = vector.broadcast %28 : vector<16x1xf32> to vector<16x32xf32>
    %37 = arith.divf %35, %36 : vector<16x32xf32>
    %cst_13 = arith.constant dense<0.000000e+00> : vector<16x64xf32>
    %38 = tpu.matmul %37, %11, %cst_13 {dimension_numbers = #tpu.dot_dimension_numbers<[1], [0], [0], [1], [0, 0, 1, 1], [], []>} : vector<16x32xf32>, vector<32x64xf32>, vector<16x64xf32> -> vector<16x64xf32>
    %cst_14 = arith.constant 0.000000e+00 : f32
    %39 = vector.broadcast %cst_14 : f32 to vector<16x64xf32>
    %40 = arith.maximumf %38, %39 : vector<16x64xf32>
    %41 = arith.mulf %40, %40 : vector<16x64xf32>
    %c0_15 = arith.constant 0 : index
    %c0_16 = arith.constant 0 : index
    %42 = vector.load %arg8[%c0_15, %c0_16] : memref<64x64xf32, #tpu.memory_space<vmem>>, vector<64x64xf32>
    %43 = arith.mulf %41, %41 : vector<16x64xf32>
    %cst_17 = arith.constant dense<0.000000e+00> : vector<16xf32>
    %44 = vector.multi_reduction <add>, %43, %cst_17 [1] : vector<16x64xf32> to vector<16xf32>
    %45 = vector.shape_cast %44 : vector<16xf32> to vector<16x1xf32>
    %cst_18 = arith.constant 6.400000e+01 : f32
    %46 = vector.broadcast %cst_18 : f32 to vector<16x1xf32>
    %47 = arith.divf %45, %46 : vector<16x1xf32>
    %cst_19 = arith.constant 1.1920929E-7 : f32
    %48 = vector.broadcast %cst_19 : f32 to vector<16x1xf32>
    %49 = arith.addf %47, %48 : vector<16x1xf32>
    %50 = math.rsqrt %49 : vector<16x1xf32>
    %51 = vector.broadcast %50 : vector<16x1xf32> to vector<16x64xf32>
    %52 = arith.mulf %41, %51 : vector<16x64xf32>
    %53 = math.absf %52 : vector<16x64xf32>
    %cst_20 = arith.constant dense<0xFF800000> : vector<16xf32>
    %54 = vector.multi_reduction <maximumf>, %53, %cst_20 [1] : vector<16x64xf32> to vector<16xf32>
    %55 = vector.shape_cast %54 : vector<16xf32> to vector<16x1xf32>
    %cst_21 = arith.constant 9.99999974E-6 : f32
    %56 = vector.broadcast %cst_21 : f32 to vector<16x1xf32>
    %57 = arith.maximumf %55, %56 : vector<16x1xf32>
    %cst_22 = arith.constant 1.270000e+02 : f32
    %58 = vector.broadcast %cst_22 : f32 to vector<16x1xf32>
    %59 = arith.divf %58, %57 : vector<16x1xf32>
    %60 = vector.broadcast %59 : vector<16x1xf32> to vector<16x64xf32>
    %61 = arith.mulf %52, %60 : vector<16x64xf32>
    %62 = math.roundeven %61 : vector<16x64xf32>
    %cst_23 = arith.constant -1.280000e+02 : f32
    %cst_24 = arith.constant 1.270000e+02 : f32
    %63 = vector.broadcast %cst_23 : f32 to vector<16x64xf32>
    %64 = arith.maximumf %63, %62 : vector<16x64xf32>
    %65 = vector.broadcast %cst_24 : f32 to vector<16x64xf32>
    %66 = arith.minimumf %65, %64 : vector<16x64xf32>
    %67 = vector.broadcast %59 : vector<16x1xf32> to vector<16x64xf32>
    %68 = arith.divf %66, %67 : vector<16x64xf32>
    %cst_25 = arith.constant dense<0.000000e+00> : vector<16x64xf32>
    %69 = tpu.matmul %68, %42, %cst_25 {dimension_numbers = #tpu.dot_dimension_numbers<[1], [0], [0], [1], [0, 0, 1, 1], [], []>} : vector<16x64xf32>, vector<64x64xf32>, vector<16x64xf32> -> vector<16x64xf32>
    %cst_26 = arith.constant 0.000000e+00 : f32
    %70 = vector.broadcast %cst_26 : f32 to vector<16x64xf32>
    %71 = arith.maximumf %69, %70 : vector<16x64xf32>
    %72 = arith.mulf %71, %71 : vector<16x64xf32>
    %c0_27 = arith.constant 0 : index
    %c0_28 = arith.constant 0 : index
    %73 = vector.load %arg9[%c0_27, %c0_28] : memref<64x32xf32, #tpu.memory_space<vmem>>, vector<64x32xf32>
    %74 = arith.mulf %72, %72 : vector<16x64xf32>
    %cst_29 = arith.constant dense<0.000000e+00> : vector<16xf32>
    %75 = vector.multi_reduction <add>, %74, %cst_29 [1] : vector<16x64xf32> to vector<16xf32>
    %76 = vector.shape_cast %75 : vector<16xf32> to vector<16x1xf32>
    %cst_30 = arith.constant 6.400000e+01 : f32
    %77 = vector.broadcast %cst_30 : f32 to vector<16x1xf32>
    %78 = arith.divf %76, %77 : vector<16x1xf32>
    %cst_31 = arith.constant 1.1920929E-7 : f32
    %79 = vector.broadcast %cst_31 : f32 to vector<16x1xf32>
    %80 = arith.addf %78, %79 : vector<16x1xf32>
    %81 = math.rsqrt %80 : vector<16x1xf32>
    %82 = vector.broadcast %81 : vector<16x1xf32> to vector<16x64xf32>
    %83 = arith.mulf %72, %82 : vector<16x64xf32>
    %84 = math.absf %83 : vector<16x64xf32>
    %cst_32 = arith.constant dense<0xFF800000> : vector<16xf32>
    %85 = vector.multi_reduction <maximumf>, %84, %cst_32 [1] : vector<16x64xf32> to vector<16xf32>
    %86 = vector.shape_cast %85 : vector<16xf32> to vector<16x1xf32>
    %cst_33 = arith.constant 9.99999974E-6 : f32
    %87 = vector.broadcast %cst_33 : f32 to vector<16x1xf32>
    %88 = arith.maximumf %86, %87 : vector<16x1xf32>
    %cst_34 = arith.constant 1.270000e+02 : f32
    %89 = vector.broadcast %cst_34 : f32 to vector<16x1xf32>
    %90 = arith.divf %89, %88 : vector<16x1xf32>
    %91 = vector.broadcast %90 : vector<16x1xf32> to vector<16x64xf32>
    %92 = arith.mulf %83, %91 : vector<16x64xf32>
    %93 = math.roundeven %92 : vector<16x64xf32>
    %cst_35 = arith.constant -1.280000e+02 : f32
    %cst_36 = arith.constant 1.270000e+02 : f32
    %94 = vector.broadcast %cst_35 : f32 to vector<16x64xf32>
    %95 = arith.maximumf %94, %93 : vector<16x64xf32>
    %96 = vector.broadcast %cst_36 : f32 to vector<16x64xf32>
    %97 = arith.minimumf %96, %95 : vector<16x64xf32>
    %98 = vector.broadcast %90 : vector<16x1xf32> to vector<16x64xf32>
    %99 = arith.divf %97, %98 : vector<16x64xf32>
    %cst_37 = arith.constant dense<0.000000e+00> : vector<16x32xf32>
    %100 = tpu.matmul %99, %73, %cst_37 {dimension_numbers = #tpu.dot_dimension_numbers<[1], [0], [0], [1], [0, 0, 1, 1], [], []>} : vector<16x64xf32>, vector<64x32xf32>, vector<16x32xf32> -> vector<16x32xf32>
    %c0_38 = arith.constant 0 : index
    %c0_39 = arith.constant 0 : index
    %101 = vector.load %arg1[%c0_38, %c0_39] : memref<2x8xf32, #tpu.memory_space<vmem>>, vector<2x8xf32>
    %c0_40 = arith.constant 0 : index
    %c0_41 = arith.constant 0 : index
    %102 = vector.load %arg2[%c0_40, %c0_41] : memref<2x8xf32, #tpu.memory_space<vmem>>, vector<2x8xf32>
    %c0_42 = arith.constant 0 : index
    %c0_43 = arith.constant 0 : index
    %103 = vector.load %arg3[%c0_42, %c0_43] : memref<32x96xf32, #tpu.memory_space<vmem>>, vector<32x96xf32>
    %c0_44 = arith.constant 0 : index
    %c0_45 = arith.constant 0 : index
    %104 = vector.load %arg4[%c0_44, %c0_45] : memref<32x32xf32, #tpu.memory_space<vmem>>, vector<32x32xf32>
    %105 = arith.mulf %10, %10 : vector<16x32xf32>
    %cst_46 = arith.constant dense<0.000000e+00> : vector<16xf32>
    %106 = vector.multi_reduction <add>, %105, %cst_46 [1] : vector<16x32xf32> to vector<16xf32>
    %107 = vector.shape_cast %106 : vector<16xf32> to vector<16x1xf32>
    %cst_47 = arith.constant 3.200000e+01 : f32
    %108 = vector.broadcast %cst_47 : f32 to vector<16x1xf32>
    %109 = arith.divf %107, %108 : vector<16x1xf32>
    %cst_48 = arith.constant 1.1920929E-7 : f32
    %110 = vector.broadcast %cst_48 : f32 to vector<16x1xf32>
    %111 = arith.addf %109, %110 : vector<16x1xf32>
    %112 = math.rsqrt %111 : vector<16x1xf32>
    %113 = vector.broadcast %112 : vector<16x1xf32> to vector<16x32xf32>
    %114 = arith.mulf %10, %113 : vector<16x32xf32>
    %115 = math.absf %114 : vector<16x32xf32>
    %cst_49 = arith.constant dense<0xFF800000> : vector<16xf32>
    %116 = vector.multi_reduction <maximumf>, %115, %cst_49 [1] : vector<16x32xf32> to vector<16xf32>
    %117 = vector.shape_cast %116 : vector<16xf32> to vector<16x1xf32>
    %cst_50 = arith.constant 9.99999974E-6 : f32
    %118 = vector.broadcast %cst_50 : f32 to vector<16x1xf32>
    %119 = arith.maximumf %117, %118 : vector<16x1xf32>
    %cst_51 = arith.constant 1.270000e+02 : f32
    %120 = vector.broadcast %cst_51 : f32 to vector<16x1xf32>
    %121 = arith.divf %120, %119 : vector<16x1xf32>
    %122 = vector.broadcast %121 : vector<16x1xf32> to vector<16x32xf32>
    %123 = arith.mulf %114, %122 : vector<16x32xf32>
    %124 = math.roundeven %123 : vector<16x32xf32>
    %cst_52 = arith.constant -1.280000e+02 : f32
    %cst_53 = arith.constant 1.270000e+02 : f32
    %125 = vector.broadcast %cst_52 : f32 to vector<16x32xf32>
    %126 = arith.maximumf %125, %124 : vector<16x32xf32>
    %127 = vector.broadcast %cst_53 : f32 to vector<16x32xf32>
    %128 = arith.minimumf %127, %126 : vector<16x32xf32>
    %129 = vector.broadcast %121 : vector<16x1xf32> to vector<16x32xf32>
    %130 = arith.divf %128, %129 : vector<16x32xf32>
    %cst_54 = arith.constant dense<0.000000e+00> : vector<16x96xf32>
    %131 = tpu.matmul %130, %103, %cst_54 {dimension_numbers = #tpu.dot_dimension_numbers<[1], [0], [0], [1], [0, 0, 1, 1], [], []>} : vector<16x32xf32>, vector<32x96xf32>, vector<16x96xf32> -> vector<16x96xf32>
    %132 = vector.extract_strided_slice %131 {offsets = [0, 0], sizes = [16, 32], strides = [1, 1]} : vector<16x96xf32> to vector<16x32xf32>
    %133 = vector.extract_strided_slice %131 {offsets = [0, 32], sizes = [16, 32], strides = [1, 1]} : vector<16x96xf32> to vector<16x32xf32>
    %134 = vector.extract_strided_slice %131 {offsets = [0, 64], sizes = [16, 32], strides = [1, 1]} : vector<16x96xf32> to vector<16x32xf32>
    %135 = tpu.iota {dimensions = array<i32: 0>} : vector<8x8xi32>
    %136 = tpu.iota {dimensions = array<i32: 1>} : vector<8x8xi32>
    %137 = arith.cmpi sge, %135, %136 : vector<8x8xi32>
    %138 = vector.extract_strided_slice %132 {offsets = [0, 0], sizes = [8, 16], strides = [1, 1]} : vector<16x32xf32> to vector<8x16xf32>
    %139 = arith.mulf %138, %138 : vector<8x16xf32>
    %cst_55 = arith.constant dense<0.000000e+00> : vector<8xf32>
    %140 = vector.multi_reduction <add>, %139, %cst_55 [1] : vector<8x16xf32> to vector<8xf32>
    %141 = vector.shape_cast %140 : vector<8xf32> to vector<8x1xf32>
    %cst_56 = arith.constant 1.600000e+01 : f32
    %142 = vector.broadcast %cst_56 : f32 to vector<8x1xf32>
    %143 = arith.divf %141, %142 : vector<8x1xf32>
    %cst_57 = arith.constant 1.1920929E-7 : f32
    %144 = vector.broadcast %cst_57 : f32 to vector<8x1xf32>
    %145 = arith.addf %143, %144 : vector<8x1xf32>
    %146 = math.rsqrt %145 : vector<8x1xf32>
    %147 = vector.broadcast %146 : vector<8x1xf32> to vector<8x16xf32>
    %148 = arith.mulf %138, %147 : vector<8x16xf32>
    %149 = vector.extract_strided_slice %133 {offsets = [0, 0], sizes = [8, 16], strides = [1, 1]} : vector<16x32xf32> to vector<8x16xf32>
    %150 = arith.mulf %149, %149 : vector<8x16xf32>
    %cst_58 = arith.constant dense<0.000000e+00> : vector<8xf32>
    %151 = vector.multi_reduction <add>, %150, %cst_58 [1] : vector<8x16xf32> to vector<8xf32>
    %152 = vector.shape_cast %151 : vector<8xf32> to vector<8x1xf32>
    %cst_59 = arith.constant 1.600000e+01 : f32
    %153 = vector.broadcast %cst_59 : f32 to vector<8x1xf32>
    %154 = arith.divf %152, %153 : vector<8x1xf32>
    %cst_60 = arith.constant 1.1920929E-7 : f32
    %155 = vector.broadcast %cst_60 : f32 to vector<8x1xf32>
    %156 = arith.addf %154, %155 : vector<8x1xf32>
    %157 = math.rsqrt %156 : vector<8x1xf32>
    %158 = vector.broadcast %157 : vector<8x1xf32> to vector<8x16xf32>
    %159 = arith.mulf %149, %158 : vector<8x16xf32>
    %160 = vector.extract_strided_slice %134 {offsets = [0, 0], sizes = [8, 16], strides = [1, 1]} : vector<16x32xf32> to vector<8x16xf32>
    %161 = arith.mulf %160, %160 : vector<8x16xf32>
    %cst_61 = arith.constant dense<0.000000e+00> : vector<8xf32>
    %162 = vector.multi_reduction <add>, %161, %cst_61 [1] : vector<8x16xf32> to vector<8xf32>
    %163 = vector.shape_cast %162 : vector<8xf32> to vector<8x1xf32>
    %cst_62 = arith.constant 1.600000e+01 : f32
    %164 = vector.broadcast %cst_62 : f32 to vector<8x1xf32>
    %165 = arith.divf %163, %164 : vector<8x1xf32>
    %cst_63 = arith.constant 1.1920929E-7 : f32
    %166 = vector.broadcast %cst_63 : f32 to vector<8x1xf32>
    %167 = arith.addf %165, %166 : vector<8x1xf32>
    %168 = math.rsqrt %167 : vector<8x1xf32>
    %169 = vector.broadcast %168 : vector<8x1xf32> to vector<8x16xf32>
    %170 = arith.mulf %160, %169 : vector<8x16xf32>
    %171 = vector.extract_strided_slice %101 {offsets = [0, 0], sizes = [1, 8], strides = [1, 1]} : vector<2x8xf32> to vector<1x8xf32>
    %172 = vector.extract_strided_slice %102 {offsets = [0, 0], sizes = [1, 8], strides = [1, 1]} : vector<2x8xf32> to vector<1x8xf32>
    %173 = vector.extract_strided_slice %148 {offsets = [0, 0], sizes = [8, 8], strides = [1, 1]} : vector<8x16xf32> to vector<8x8xf32>
    %174 = vector.extract_strided_slice %148 {offsets = [0, 8], sizes = [8, 8], strides = [1, 1]} : vector<8x16xf32> to vector<8x8xf32>
    %175 = vector.broadcast %171 : vector<1x8xf32> to vector<8x8xf32>
    %176 = arith.mulf %173, %175 : vector<8x8xf32>
    %177 = vector.broadcast %172 : vector<1x8xf32> to vector<8x8xf32>
    %178 = arith.mulf %174, %177 : vector<8x8xf32>
    %179 = arith.addf %176, %178 : vector<8x8xf32>
    %cst_64 = arith.constant 0.000000e+00 : f32
    %180 = vector.broadcast %cst_64 : f32 to vector<8x8xf32>
    %181 = arith.subf %180, %173 : vector<8x8xf32>
    %182 = vector.broadcast %172 : vector<1x8xf32> to vector<8x8xf32>
    %183 = arith.mulf %181, %182 : vector<8x8xf32>
    %184 = vector.broadcast %171 : vector<1x8xf32> to vector<8x8xf32>
    %185 = arith.mulf %174, %184 : vector<8x8xf32>
    %186 = arith.addf %183, %185 : vector<8x8xf32>
    %187 = tpu.concatenate %179, %186 in 1 : vector<8x8xf32>, vector<8x8xf32> -> vector<8x16xf32>
    %188 = vector.extract_strided_slice %159 {offsets = [0, 0], sizes = [8, 8], strides = [1, 1]} : vector<8x16xf32> to vector<8x8xf32>
    %189 = vector.extract_strided_slice %159 {offsets = [0, 8], sizes = [8, 8], strides = [1, 1]} : vector<8x16xf32> to vector<8x8xf32>
    %190 = vector.broadcast %171 : vector<1x8xf32> to vector<8x8xf32>
    %191 = arith.mulf %188, %190 : vector<8x8xf32>
    %192 = vector.broadcast %172 : vector<1x8xf32> to vector<8x8xf32>
    %193 = arith.mulf %189, %192 : vector<8x8xf32>
    %194 = arith.addf %191, %193 : vector<8x8xf32>
    %cst_65 = arith.constant 0.000000e+00 : f32
    %195 = vector.broadcast %cst_65 : f32 to vector<8x8xf32>
    %196 = arith.subf %195, %188 : vector<8x8xf32>
    %197 = vector.broadcast %172 : vector<1x8xf32> to vector<8x8xf32>
    %198 = arith.mulf %196, %197 : vector<8x8xf32>
    %199 = vector.broadcast %171 : vector<1x8xf32> to vector<8x8xf32>
    %200 = arith.mulf %189, %199 : vector<8x8xf32>
    %201 = arith.addf %198, %200 : vector<8x8xf32>
    %202 = tpu.concatenate %194, %201 in 1 : vector<8x8xf32>, vector<8x8xf32> -> vector<8x16xf32>
    %cst_66 = arith.constant dense<0.000000e+00> : vector<8x8xf32>
    %203 = tpu.matmul %187, %202, %cst_66 {dimension_numbers = #tpu.dot_dimension_numbers<[1], [1], [0], [0], [0, 0, 1, 0], [], []>} : vector<8x16xf32>, vector<8x16xf32>, vector<8x8xf32> -> vector<8x8xf32>
    %cst_67 = arith.constant 1.200000e-01 : f32
    %204 = vector.broadcast %cst_67 : f32 to vector<8x8xf32>
    %205 = arith.mulf %203, %204 : vector<8x8xf32>
    %cst_68 = arith.constant -1.000000e+30 : f32
    %206 = vector.broadcast %cst_68 : f32 to vector<8x8xf32>
    %207 = arith.select %137, %205, %206 : vector<8x8xi1>, vector<8x8xf32>
    %cst_69 = arith.constant dense<0xFF800000> : vector<8xf32>
    %208 = vector.multi_reduction <maximumf>, %207, %cst_69 [1] : vector<8x8xf32> to vector<8xf32>
    %209 = vector.shape_cast %208 : vector<8xf32> to vector<8x1xf32>
    %210 = vector.broadcast %209 : vector<8x1xf32> to vector<8x8xf32>
    %211 = arith.subf %207, %210 : vector<8x8xf32>
    %212 = math.exp %211 : vector<8x8xf32>
    %cst_70 = arith.constant dense<0.000000e+00> : vector<8xf32>
    %213 = vector.multi_reduction <add>, %212, %cst_70 [1] : vector<8x8xf32> to vector<8xf32>
    %214 = vector.shape_cast %213 : vector<8xf32> to vector<8x1xf32>
    %215 = tpu.reciprocal %214 {approx = true} : vector<8x1xf32> -> vector<8x1xf32>
    %216 = vector.broadcast %215 : vector<8x1xf32> to vector<8x8xf32>
    %217 = arith.mulf %212, %216 : vector<8x8xf32>
    %cst_71 = arith.constant dense<0.000000e+00> : vector<8x16xf32>
    %218 = tpu.matmul %217, %170, %cst_71 {dimension_numbers = #tpu.dot_dimension_numbers<[1], [0], [0], [1], [0, 0, 1, 1], [], []>} : vector<8x8xf32>, vector<8x16xf32>, vector<8x16xf32> -> vector<8x16xf32>
    %219 = vector.extract_strided_slice %132 {offsets = [0, 16], sizes = [8, 16], strides = [1, 1]} : vector<16x32xf32> to vector<8x16xf32>
    %220 = arith.mulf %219, %219 : vector<8x16xf32>
    %cst_72 = arith.constant dense<0.000000e+00> : vector<8xf32>
    %221 = vector.multi_reduction <add>, %220, %cst_72 [1] : vector<8x16xf32> to vector<8xf32>
    %222 = vector.shape_cast %221 : vector<8xf32> to vector<8x1xf32>
    %cst_73 = arith.constant 1.600000e+01 : f32
    %223 = vector.broadcast %cst_73 : f32 to vector<8x1xf32>
    %224 = arith.divf %222, %223 : vector<8x1xf32>
    %cst_74 = arith.constant 1.1920929E-7 : f32
    %225 = vector.broadcast %cst_74 : f32 to vector<8x1xf32>
    %226 = arith.addf %224, %225 : vector<8x1xf32>
    %227 = math.rsqrt %226 : vector<8x1xf32>
    %228 = vector.broadcast %227 : vector<8x1xf32> to vector<8x16xf32>
    %229 = arith.mulf %219, %228 : vector<8x16xf32>
    %230 = vector.extract_strided_slice %133 {offsets = [0, 16], sizes = [8, 16], strides = [1, 1]} : vector<16x32xf32> to vector<8x16xf32>
    %231 = arith.mulf %230, %230 : vector<8x16xf32>
    %cst_75 = arith.constant dense<0.000000e+00> : vector<8xf32>
    %232 = vector.multi_reduction <add>, %231, %cst_75 [1] : vector<8x16xf32> to vector<8xf32>
    %233 = vector.shape_cast %232 : vector<8xf32> to vector<8x1xf32>
    %cst_76 = arith.constant 1.600000e+01 : f32
    %234 = vector.broadcast %cst_76 : f32 to vector<8x1xf32>
    %235 = arith.divf %233, %234 : vector<8x1xf32>
    %cst_77 = arith.constant 1.1920929E-7 : f32
    %236 = vector.broadcast %cst_77 : f32 to vector<8x1xf32>
    %237 = arith.addf %235, %236 : vector<8x1xf32>
    %238 = math.rsqrt %237 : vector<8x1xf32>
    %239 = vector.broadcast %238 : vector<8x1xf32> to vector<8x16xf32>
    %240 = arith.mulf %230, %239 : vector<8x16xf32>
    %241 = vector.extract_strided_slice %134 {offsets = [0, 16], sizes = [8, 16], strides = [1, 1]} : vector<16x32xf32> to vector<8x16xf32>
    %242 = arith.mulf %241, %241 : vector<8x16xf32>
    %cst_78 = arith.constant dense<0.000000e+00> : vector<8xf32>
    %243 = vector.multi_reduction <add>, %242, %cst_78 [1] : vector<8x16xf32> to vector<8xf32>
    %244 = vector.shape_cast %243 : vector<8xf32> to vector<8x1xf32>
    %cst_79 = arith.constant 1.600000e+01 : f32
    %245 = vector.broadcast %cst_79 : f32 to vector<8x1xf32>
    %246 = arith.divf %244, %245 : vector<8x1xf32>
    %cst_80 = arith.constant 1.1920929E-7 : f32
    %247 = vector.broadcast %cst_80 : f32 to vector<8x1xf32>
    %248 = arith.addf %246, %247 : vector<8x1xf32>
    %249 = math.rsqrt %248 : vector<8x1xf32>
    %250 = vector.broadcast %249 : vector<8x1xf32> to vector<8x16xf32>
    %251 = arith.mulf %241, %250 : vector<8x16xf32>
    %252 = vector.extract_strided_slice %101 {offsets = [1, 0], sizes = [1, 8], strides = [1, 1]} : vector<2x8xf32> to vector<1x8xf32>
    %253 = vector.extract_strided_slice %102 {offsets = [1, 0], sizes = [1, 8], strides = [1, 1]} : vector<2x8xf32> to vector<1x8xf32>
    %254 = vector.extract_strided_slice %229 {offsets = [0, 0], sizes = [8, 8], strides = [1, 1]} : vector<8x16xf32> to vector<8x8xf32>
    %255 = vector.extract_strided_slice %229 {offsets = [0, 8], sizes = [8, 8], strides = [1, 1]} : vector<8x16xf32> to vector<8x8xf32>
    %256 = vector.broadcast %252 : vector<1x8xf32> to vector<8x8xf32>
    %257 = arith.mulf %254, %256 : vector<8x8xf32>
    %258 = vector.broadcast %253 : vector<1x8xf32> to vector<8x8xf32>
    %259 = arith.mulf %255, %258 : vector<8x8xf32>
    %260 = arith.addf %257, %259 : vector<8x8xf32>
    %cst_81 = arith.constant 0.000000e+00 : f32
    %261 = vector.broadcast %cst_81 : f32 to vector<8x8xf32>
    %262 = arith.subf %261, %254 : vector<8x8xf32>
    %263 = vector.broadcast %253 : vector<1x8xf32> to vector<8x8xf32>
    %264 = arith.mulf %262, %263 : vector<8x8xf32>
    %265 = vector.broadcast %252 : vector<1x8xf32> to vector<8x8xf32>
    %266 = arith.mulf %255, %265 : vector<8x8xf32>
    %267 = arith.addf %264, %266 : vector<8x8xf32>
    %268 = tpu.concatenate %260, %267 in 1 : vector<8x8xf32>, vector<8x8xf32> -> vector<8x16xf32>
    %269 = vector.extract_strided_slice %240 {offsets = [0, 0], sizes = [8, 8], strides = [1, 1]} : vector<8x16xf32> to vector<8x8xf32>
    %270 = vector.extract_strided_slice %240 {offsets = [0, 8], sizes = [8, 8], strides = [1, 1]} : vector<8x16xf32> to vector<8x8xf32>
    %271 = vector.broadcast %252 : vector<1x8xf32> to vector<8x8xf32>
    %272 = arith.mulf %269, %271 : vector<8x8xf32>
    %273 = vector.broadcast %253 : vector<1x8xf32> to vector<8x8xf32>
    %274 = arith.mulf %270, %273 : vector<8x8xf32>
    %275 = arith.addf %272, %274 : vector<8x8xf32>
    %cst_82 = arith.constant 0.000000e+00 : f32
    %276 = vector.broadcast %cst_82 : f32 to vector<8x8xf32>
    %277 = arith.subf %276, %269 : vector<8x8xf32>
    %278 = vector.broadcast %253 : vector<1x8xf32> to vector<8x8xf32>
    %279 = arith.mulf %277, %278 : vector<8x8xf32>
    %280 = vector.broadcast %252 : vector<1x8xf32> to vector<8x8xf32>
    %281 = arith.mulf %270, %280 : vector<8x8xf32>
    %282 = arith.addf %279, %281 : vector<8x8xf32>
    %283 = tpu.concatenate %275, %282 in 1 : vector<8x8xf32>, vector<8x8xf32> -> vector<8x16xf32>
    %cst_83 = arith.constant dense<0.000000e+00> : vector<8x8xf32>
    %284 = tpu.matmul %268, %283, %cst_83 {dimension_numbers = #tpu.dot_dimension_numbers<[1], [1], [0], [0], [0, 0, 1, 0], [], []>} : vector<8x16xf32>, vector<8x16xf32>, vector<8x8xf32> -> vector<8x8xf32>
    %cst_84 = arith.constant 1.200000e-01 : f32
    %285 = vector.broadcast %cst_84 : f32 to vector<8x8xf32>
    %286 = arith.mulf %284, %285 : vector<8x8xf32>
    %cst_85 = arith.constant -1.000000e+30 : f32
    %287 = vector.broadcast %cst_85 : f32 to vector<8x8xf32>
    %288 = arith.select %137, %286, %287 : vector<8x8xi1>, vector<8x8xf32>
    %cst_86 = arith.constant dense<0xFF800000> : vector<8xf32>
    %289 = vector.multi_reduction <maximumf>, %288, %cst_86 [1] : vector<8x8xf32> to vector<8xf32>
    %290 = vector.shape_cast %289 : vector<8xf32> to vector<8x1xf32>
    %291 = vector.broadcast %290 : vector<8x1xf32> to vector<8x8xf32>
    %292 = arith.subf %288, %291 : vector<8x8xf32>
    %293 = math.exp %292 : vector<8x8xf32>
    %cst_87 = arith.constant dense<0.000000e+00> : vector<8xf32>
    %294 = vector.multi_reduction <add>, %293, %cst_87 [1] : vector<8x8xf32> to vector<8xf32>
    %295 = vector.shape_cast %294 : vector<8xf32> to vector<8x1xf32>
    %296 = tpu.reciprocal %295 {approx = true} : vector<8x1xf32> -> vector<8x1xf32>
    %297 = vector.broadcast %296 : vector<8x1xf32> to vector<8x8xf32>
    %298 = arith.mulf %293, %297 : vector<8x8xf32>
    %cst_88 = arith.constant dense<0.000000e+00> : vector<8x16xf32>
    %299 = tpu.matmul %298, %251, %cst_88 {dimension_numbers = #tpu.dot_dimension_numbers<[1], [0], [0], [1], [0, 0, 1, 1], [], []>} : vector<8x8xf32>, vector<8x16xf32>, vector<8x16xf32> -> vector<8x16xf32>
    %300 = tpu.concatenate %218, %299 in 1 : vector<8x16xf32>, vector<8x16xf32> -> vector<8x32xf32>
    %301 = vector.extract_strided_slice %132 {offsets = [8, 0], sizes = [8, 16], strides = [1, 1]} : vector<16x32xf32> to vector<8x16xf32>
    %302 = arith.mulf %301, %301 : vector<8x16xf32>
    %cst_89 = arith.constant dense<0.000000e+00> : vector<8xf32>
    %303 = vector.multi_reduction <add>, %302, %cst_89 [1] : vector<8x16xf32> to vector<8xf32>
    %304 = vector.shape_cast %303 : vector<8xf32> to vector<8x1xf32>
    %cst_90 = arith.constant 1.600000e+01 : f32
    %305 = vector.broadcast %cst_90 : f32 to vector<8x1xf32>
    %306 = arith.divf %304, %305 : vector<8x1xf32>
    %cst_91 = arith.constant 1.1920929E-7 : f32
    %307 = vector.broadcast %cst_91 : f32 to vector<8x1xf32>
    %308 = arith.addf %306, %307 : vector<8x1xf32>
    %309 = math.rsqrt %308 : vector<8x1xf32>
    %310 = vector.broadcast %309 : vector<8x1xf32> to vector<8x16xf32>
    %311 = arith.mulf %301, %310 : vector<8x16xf32>
    %312 = vector.extract_strided_slice %133 {offsets = [8, 0], sizes = [8, 16], strides = [1, 1]} : vector<16x32xf32> to vector<8x16xf32>
    %313 = arith.mulf %312, %312 : vector<8x16xf32>
    %cst_92 = arith.constant dense<0.000000e+00> : vector<8xf32>
    %314 = vector.multi_reduction <add>, %313, %cst_92 [1] : vector<8x16xf32> to vector<8xf32>
    %315 = vector.shape_cast %314 : vector<8xf32> to vector<8x1xf32>
    %cst_93 = arith.constant 1.600000e+01 : f32
    %316 = vector.broadcast %cst_93 : f32 to vector<8x1xf32>
    %317 = arith.divf %315, %316 : vector<8x1xf32>
    %cst_94 = arith.constant 1.1920929E-7 : f32
    %318 = vector.broadcast %cst_94 : f32 to vector<8x1xf32>
    %319 = arith.addf %317, %318 : vector<8x1xf32>
    %320 = math.rsqrt %319 : vector<8x1xf32>
    %321 = vector.broadcast %320 : vector<8x1xf32> to vector<8x16xf32>
    %322 = arith.mulf %312, %321 : vector<8x16xf32>
    %323 = vector.extract_strided_slice %134 {offsets = [8, 0], sizes = [8, 16], strides = [1, 1]} : vector<16x32xf32> to vector<8x16xf32>
    %324 = arith.mulf %323, %323 : vector<8x16xf32>
    %cst_95 = arith.constant dense<0.000000e+00> : vector<8xf32>
    %325 = vector.multi_reduction <add>, %324, %cst_95 [1] : vector<8x16xf32> to vector<8xf32>
    %326 = vector.shape_cast %325 : vector<8xf32> to vector<8x1xf32>
    %cst_96 = arith.constant 1.600000e+01 : f32
    %327 = vector.broadcast %cst_96 : f32 to vector<8x1xf32>
    %328 = arith.divf %326, %327 : vector<8x1xf32>
    %cst_97 = arith.constant 1.1920929E-7 : f32
    %329 = vector.broadcast %cst_97 : f32 to vector<8x1xf32>
    %330 = arith.addf %328, %329 : vector<8x1xf32>
    %331 = math.rsqrt %330 : vector<8x1xf32>
    %332 = vector.broadcast %331 : vector<8x1xf32> to vector<8x16xf32>
    %333 = arith.mulf %323, %332 : vector<8x16xf32>
    %334 = vector.extract_strided_slice %101 {offsets = [0, 0], sizes = [1, 8], strides = [1, 1]} : vector<2x8xf32> to vector<1x8xf32>
    %335 = vector.extract_strided_slice %102 {offsets = [0, 0], sizes = [1, 8], strides = [1, 1]} : vector<2x8xf32> to vector<1x8xf32>
    %336 = vector.extract_strided_slice %311 {offsets = [0, 0], sizes = [8, 8], strides = [1, 1]} : vector<8x16xf32> to vector<8x8xf32>
    %337 = vector.extract_strided_slice %311 {offsets = [0, 8], sizes = [8, 8], strides = [1, 1]} : vector<8x16xf32> to vector<8x8xf32>
    %338 = vector.broadcast %334 : vector<1x8xf32> to vector<8x8xf32>
    %339 = arith.mulf %336, %338 : vector<8x8xf32>
    %340 = vector.broadcast %335 : vector<1x8xf32> to vector<8x8xf32>
    %341 = arith.mulf %337, %340 : vector<8x8xf32>
    %342 = arith.addf %339, %341 : vector<8x8xf32>
    %cst_98 = arith.constant 0.000000e+00 : f32
    %343 = vector.broadcast %cst_98 : f32 to vector<8x8xf32>
    %344 = arith.subf %343, %336 : vector<8x8xf32>
    %345 = vector.broadcast %335 : vector<1x8xf32> to vector<8x8xf32>
    %346 = arith.mulf %344, %345 : vector<8x8xf32>
    %347 = vector.broadcast %334 : vector<1x8xf32> to vector<8x8xf32>
    %348 = arith.mulf %337, %347 : vector<8x8xf32>
    %349 = arith.addf %346, %348 : vector<8x8xf32>
    %350 = tpu.concatenate %342, %349 in 1 : vector<8x8xf32>, vector<8x8xf32> -> vector<8x16xf32>
    %351 = vector.extract_strided_slice %322 {offsets = [0, 0], sizes = [8, 8], strides = [1, 1]} : vector<8x16xf32> to vector<8x8xf32>
    %352 = vector.extract_strided_slice %322 {offsets = [0, 8], sizes = [8, 8], strides = [1, 1]} : vector<8x16xf32> to vector<8x8xf32>
    %353 = vector.broadcast %334 : vector<1x8xf32> to vector<8x8xf32>
    %354 = arith.mulf %351, %353 : vector<8x8xf32>
    %355 = vector.broadcast %335 : vector<1x8xf32> to vector<8x8xf32>
    %356 = arith.mulf %352, %355 : vector<8x8xf32>
    %357 = arith.addf %354, %356 : vector<8x8xf32>
    %cst_99 = arith.constant 0.000000e+00 : f32
    %358 = vector.broadcast %cst_99 : f32 to vector<8x8xf32>
    %359 = arith.subf %358, %351 : vector<8x8xf32>
    %360 = vector.broadcast %335 : vector<1x8xf32> to vector<8x8xf32>
    %361 = arith.mulf %359, %360 : vector<8x8xf32>
    %362 = vector.broadcast %334 : vector<1x8xf32> to vector<8x8xf32>
    %363 = arith.mulf %352, %362 : vector<8x8xf32>
    %364 = arith.addf %361, %363 : vector<8x8xf32>
    %365 = tpu.concatenate %357, %364 in 1 : vector<8x8xf32>, vector<8x8xf32> -> vector<8x16xf32>
    %cst_100 = arith.constant dense<0.000000e+00> : vector<8x8xf32>
    %366 = tpu.matmul %350, %365, %cst_100 {dimension_numbers = #tpu.dot_dimension_numbers<[1], [1], [0], [0], [0, 0, 1, 0], [], []>} : vector<8x16xf32>, vector<8x16xf32>, vector<8x8xf32> -> vector<8x8xf32>
    %cst_101 = arith.constant 1.200000e-01 : f32
    %367 = vector.broadcast %cst_101 : f32 to vector<8x8xf32>
    %368 = arith.mulf %366, %367 : vector<8x8xf32>
    %cst_102 = arith.constant -1.000000e+30 : f32
    %369 = vector.broadcast %cst_102 : f32 to vector<8x8xf32>
    %370 = arith.select %137, %368, %369 : vector<8x8xi1>, vector<8x8xf32>
    %cst_103 = arith.constant dense<0xFF800000> : vector<8xf32>
    %371 = vector.multi_reduction <maximumf>, %370, %cst_103 [1] : vector<8x8xf32> to vector<8xf32>
    %372 = vector.shape_cast %371 : vector<8xf32> to vector<8x1xf32>
    %373 = vector.broadcast %372 : vector<8x1xf32> to vector<8x8xf32>
    %374 = arith.subf %370, %373 : vector<8x8xf32>
    %375 = math.exp %374 : vector<8x8xf32>
    %cst_104 = arith.constant dense<0.000000e+00> : vector<8xf32>
    %376 = vector.multi_reduction <add>, %375, %cst_104 [1] : vector<8x8xf32> to vector<8xf32>
    %377 = vector.shape_cast %376 : vector<8xf32> to vector<8x1xf32>
    %378 = tpu.reciprocal %377 {approx = true} : vector<8x1xf32> -> vector<8x1xf32>
    %379 = vector.broadcast %378 : vector<8x1xf32> to vector<8x8xf32>
    %380 = arith.mulf %375, %379 : vector<8x8xf32>
    %cst_105 = arith.constant dense<0.000000e+00> : vector<8x16xf32>
    %381 = tpu.matmul %380, %333, %cst_105 {dimension_numbers = #tpu.dot_dimension_numbers<[1], [0], [0], [1], [0, 0, 1, 1], [], []>} : vector<8x8xf32>, vector<8x16xf32>, vector<8x16xf32> -> vector<8x16xf32>
    %382 = vector.extract_strided_slice %132 {offsets = [8, 16], sizes = [8, 16], strides = [1, 1]} : vector<16x32xf32> to vector<8x16xf32>
    %383 = arith.mulf %382, %382 : vector<8x16xf32>
    %cst_106 = arith.constant dense<0.000000e+00> : vector<8xf32>
    %384 = vector.multi_reduction <add>, %383, %cst_106 [1] : vector<8x16xf32> to vector<8xf32>
    %385 = vector.shape_cast %384 : vector<8xf32> to vector<8x1xf32>
    %cst_107 = arith.constant 1.600000e+01 : f32
    %386 = vector.broadcast %cst_107 : f32 to vector<8x1xf32>
    %387 = arith.divf %385, %386 : vector<8x1xf32>
    %cst_108 = arith.constant 1.1920929E-7 : f32
    %388 = vector.broadcast %cst_108 : f32 to vector<8x1xf32>
    %389 = arith.addf %387, %388 : vector<8x1xf32>
    %390 = math.rsqrt %389 : vector<8x1xf32>
    %391 = vector.broadcast %390 : vector<8x1xf32> to vector<8x16xf32>
    %392 = arith.mulf %382, %391 : vector<8x16xf32>
    %393 = vector.extract_strided_slice %133 {offsets = [8, 16], sizes = [8, 16], strides = [1, 1]} : vector<16x32xf32> to vector<8x16xf32>
    %394 = arith.mulf %393, %393 : vector<8x16xf32>
    %cst_109 = arith.constant dense<0.000000e+00> : vector<8xf32>
    %395 = vector.multi_reduction <add>, %394, %cst_109 [1] : vector<8x16xf32> to vector<8xf32>
    %396 = vector.shape_cast %395 : vector<8xf32> to vector<8x1xf32>
    %cst_110 = arith.constant 1.600000e+01 : f32
    %397 = vector.broadcast %cst_110 : f32 to vector<8x1xf32>
    %398 = arith.divf %396, %397 : vector<8x1xf32>
    %cst_111 = arith.constant 1.1920929E-7 : f32
    %399 = vector.broadcast %cst_111 : f32 to vector<8x1xf32>
    %400 = arith.addf %398, %399 : vector<8x1xf32>
    %401 = math.rsqrt %400 : vector<8x1xf32>
    %402 = vector.broadcast %401 : vector<8x1xf32> to vector<8x16xf32>
    %403 = arith.mulf %393, %402 : vector<8x16xf32>
    %404 = vector.extract_strided_slice %134 {offsets = [8, 16], sizes = [8, 16], strides = [1, 1]} : vector<16x32xf32> to vector<8x16xf32>
    %405 = arith.mulf %404, %404 : vector<8x16xf32>
    %cst_112 = arith.constant dense<0.000000e+00> : vector<8xf32>
    %406 = vector.multi_reduction <add>, %405, %cst_112 [1] : vector<8x16xf32> to vector<8xf32>
    %407 = vector.shape_cast %406 : vector<8xf32> to vector<8x1xf32>
    %cst_113 = arith.constant 1.600000e+01 : f32
    %408 = vector.broadcast %cst_113 : f32 to vector<8x1xf32>
    %409 = arith.divf %407, %408 : vector<8x1xf32>
    %cst_114 = arith.constant 1.1920929E-7 : f32
    %410 = vector.broadcast %cst_114 : f32 to vector<8x1xf32>
    %411 = arith.addf %409, %410 : vector<8x1xf32>
    %412 = math.rsqrt %411 : vector<8x1xf32>
    %413 = vector.broadcast %412 : vector<8x1xf32> to vector<8x16xf32>
    %414 = arith.mulf %404, %413 : vector<8x16xf32>
    %415 = vector.extract_strided_slice %101 {offsets = [1, 0], sizes = [1, 8], strides = [1, 1]} : vector<2x8xf32> to vector<1x8xf32>
    %416 = vector.extract_strided_slice %102 {offsets = [1, 0], sizes = [1, 8], strides = [1, 1]} : vector<2x8xf32> to vector<1x8xf32>
    %417 = vector.extract_strided_slice %392 {offsets = [0, 0], sizes = [8, 8], strides = [1, 1]} : vector<8x16xf32> to vector<8x8xf32>
    %418 = vector.extract_strided_slice %392 {offsets = [0, 8], sizes = [8, 8], strides = [1, 1]} : vector<8x16xf32> to vector<8x8xf32>
    %419 = vector.broadcast %415 : vector<1x8xf32> to vector<8x8xf32>
    %420 = arith.mulf %417, %419 : vector<8x8xf32>
    %421 = vector.broadcast %416 : vector<1x8xf32> to vector<8x8xf32>
    %422 = arith.mulf %418, %421 : vector<8x8xf32>
    %423 = arith.addf %420, %422 : vector<8x8xf32>
    %cst_115 = arith.constant 0.000000e+00 : f32
    %424 = vector.broadcast %cst_115 : f32 to vector<8x8xf32>
    %425 = arith.subf %424, %417 : vector<8x8xf32>
    %426 = vector.broadcast %416 : vector<1x8xf32> to vector<8x8xf32>
    %427 = arith.mulf %425, %426 : vector<8x8xf32>
    %428 = vector.broadcast %415 : vector<1x8xf32> to vector<8x8xf32>
    %429 = arith.mulf %418, %428 : vector<8x8xf32>
    %430 = arith.addf %427, %429 : vector<8x8xf32>
    %431 = tpu.concatenate %423, %430 in 1 : vector<8x8xf32>, vector<8x8xf32> -> vector<8x16xf32>
    %432 = vector.extract_strided_slice %403 {offsets = [0, 0], sizes = [8, 8], strides = [1, 1]} : vector<8x16xf32> to vector<8x8xf32>
    %433 = vector.extract_strided_slice %403 {offsets = [0, 8], sizes = [8, 8], strides = [1, 1]} : vector<8x16xf32> to vector<8x8xf32>
    %434 = vector.broadcast %415 : vector<1x8xf32> to vector<8x8xf32>
    %435 = arith.mulf %432, %434 : vector<8x8xf32>
    %436 = vector.broadcast %416 : vector<1x8xf32> to vector<8x8xf32>
    %437 = arith.mulf %433, %436 : vector<8x8xf32>
    %438 = arith.addf %435, %437 : vector<8x8xf32>
    %cst_116 = arith.constant 0.000000e+00 : f32
    %439 = vector.broadcast %cst_116 : f32 to vector<8x8xf32>
    %440 = arith.subf %439, %432 : vector<8x8xf32>
    %441 = vector.broadcast %416 : vector<1x8xf32> to vector<8x8xf32>
    %442 = arith.mulf %440, %441 : vector<8x8xf32>
    %443 = vector.broadcast %415 : vector<1x8xf32> to vector<8x8xf32>
    %444 = arith.mulf %433, %443 : vector<8x8xf32>
    %445 = arith.addf %442, %444 : vector<8x8xf32>
    %446 = tpu.concatenate %438, %445 in 1 : vector<8x8xf32>, vector<8x8xf32> -> vector<8x16xf32>
    %cst_117 = arith.constant dense<0.000000e+00> : vector<8x8xf32>
    %447 = tpu.matmul %431, %446, %cst_117 {dimension_numbers = #tpu.dot_dimension_numbers<[1], [1], [0], [0], [0, 0, 1, 0], [], []>} : vector<8x16xf32>, vector<8x16xf32>, vector<8x8xf32> -> vector<8x8xf32>
    %cst_118 = arith.constant 1.200000e-01 : f32
    %448 = vector.broadcast %cst_118 : f32 to vector<8x8xf32>
    %449 = arith.mulf %447, %448 : vector<8x8xf32>
    %cst_119 = arith.constant -1.000000e+30 : f32
    %450 = vector.broadcast %cst_119 : f32 to vector<8x8xf32>
    %451 = arith.select %137, %449, %450 : vector<8x8xi1>, vector<8x8xf32>
    %cst_120 = arith.constant dense<0xFF800000> : vector<8xf32>
    %452 = vector.multi_reduction <maximumf>, %451, %cst_120 [1] : vector<8x8xf32> to vector<8xf32>
    %453 = vector.shape_cast %452 : vector<8xf32> to vector<8x1xf32>
    %454 = vector.broadcast %453 : vector<8x1xf32> to vector<8x8xf32>
    %455 = arith.subf %451, %454 : vector<8x8xf32>
    %456 = math.exp %455 : vector<8x8xf32>
    %cst_121 = arith.constant dense<0.000000e+00> : vector<8xf32>
    %457 = vector.multi_reduction <add>, %456, %cst_121 [1] : vector<8x8xf32> to vector<8xf32>
    %458 = vector.shape_cast %457 : vector<8xf32> to vector<8x1xf32>
    %459 = tpu.reciprocal %458 {approx = true} : vector<8x1xf32> -> vector<8x1xf32>
    %460 = vector.broadcast %459 : vector<8x1xf32> to vector<8x8xf32>
    %461 = arith.mulf %456, %460 : vector<8x8xf32>
    %cst_122 = arith.constant dense<0.000000e+00> : vector<8x16xf32>
    %462 = tpu.matmul %461, %414, %cst_122 {dimension_numbers = #tpu.dot_dimension_numbers<[1], [0], [0], [1], [0, 0, 1, 1], [], []>} : vector<8x8xf32>, vector<8x16xf32>, vector<8x16xf32> -> vector<8x16xf32>
    %463 = tpu.concatenate %381, %462 in 1 : vector<8x16xf32>, vector<8x16xf32> -> vector<8x32xf32>
    %464 = tpu.concatenate %300, %463 in 0 : vector<8x32xf32>, vector<8x32xf32> -> vector<16x32xf32>
    %465 = arith.mulf %464, %464 : vector<16x32xf32>
    %cst_123 = arith.constant dense<0.000000e+00> : vector<16xf32>
    %466 = vector.multi_reduction <add>, %465, %cst_123 [1] : vector<16x32xf32> to vector<16xf32>
    %467 = vector.shape_cast %466 : vector<16xf32> to vector<16x1xf32>
    %cst_124 = arith.constant 3.200000e+01 : f32
    %468 = vector.broadcast %cst_124 : f32 to vector<16x1xf32>
    %469 = arith.divf %467, %468 : vector<16x1xf32>
    %cst_125 = arith.constant 1.1920929E-7 : f32
    %470 = vector.broadcast %cst_125 : f32 to vector<16x1xf32>
    %471 = arith.addf %469, %470 : vector<16x1xf32>
    %472 = math.rsqrt %471 : vector<16x1xf32>
    %473 = vector.broadcast %472 : vector<16x1xf32> to vector<16x32xf32>
    %474 = arith.mulf %464, %473 : vector<16x32xf32>
    %475 = math.absf %474 : vector<16x32xf32>
    %cst_126 = arith.constant dense<0xFF800000> : vector<16xf32>
    %476 = vector.multi_reduction <maximumf>, %475, %cst_126 [1] : vector<16x32xf32> to vector<16xf32>
    %477 = vector.shape_cast %476 : vector<16xf32> to vector<16x1xf32>
    %cst_127 = arith.constant 9.99999974E-6 : f32
    %478 = vector.broadcast %cst_127 : f32 to vector<16x1xf32>
    %479 = arith.maximumf %477, %478 : vector<16x1xf32>
    %cst_128 = arith.constant 1.270000e+02 : f32
    %480 = vector.broadcast %cst_128 : f32 to vector<16x1xf32>
    %481 = arith.divf %480, %479 : vector<16x1xf32>
    %482 = vector.broadcast %481 : vector<16x1xf32> to vector<16x32xf32>
    %483 = arith.mulf %474, %482 : vector<16x32xf32>
    %484 = math.roundeven %483 : vector<16x32xf32>
    %cst_129 = arith.constant -1.280000e+02 : f32
    %cst_130 = arith.constant 1.270000e+02 : f32
    %485 = vector.broadcast %cst_129 : f32 to vector<16x32xf32>
    %486 = arith.maximumf %485, %484 : vector<16x32xf32>
    %487 = vector.broadcast %cst_130 : f32 to vector<16x32xf32>
    %488 = arith.minimumf %487, %486 : vector<16x32xf32>
    %489 = vector.broadcast %481 : vector<16x1xf32> to vector<16x32xf32>
    %490 = arith.divf %488, %489 : vector<16x32xf32>
    %cst_131 = arith.constant dense<0.000000e+00> : vector<16x32xf32>
    %491 = tpu.matmul %490, %104, %cst_131 {dimension_numbers = #tpu.dot_dimension_numbers<[1], [0], [0], [1], [0, 0, 1, 1], [], []>} : vector<16x32xf32>, vector<32x32xf32>, vector<16x32xf32> -> vector<16x32xf32>
    %c0_132 = arith.constant 0 : index
    %c0_133 = arith.constant 0 : index
    %492 = vector.load %arg5[%c0_132, %c0_133] : memref<32x96xf32, #tpu.memory_space<vmem>>, vector<32x96xf32>
    %c0_134 = arith.constant 0 : index
    %c0_135 = arith.constant 0 : index
    %493 = vector.load %arg6[%c0_134, %c0_135] : memref<32x32xf32, #tpu.memory_space<vmem>>, vector<32x32xf32>
    %494 = arith.mulf %10, %10 : vector<16x32xf32>
    %cst_136 = arith.constant dense<0.000000e+00> : vector<16xf32>
    %495 = vector.multi_reduction <add>, %494, %cst_136 [1] : vector<16x32xf32> to vector<16xf32>
    %496 = vector.shape_cast %495 : vector<16xf32> to vector<16x1xf32>
    %cst_137 = arith.constant 3.200000e+01 : f32
    %497 = vector.broadcast %cst_137 : f32 to vector<16x1xf32>
    %498 = arith.divf %496, %497 : vector<16x1xf32>
    %cst_138 = arith.constant 1.1920929E-7 : f32
    %499 = vector.broadcast %cst_138 : f32 to vector<16x1xf32>
    %500 = arith.addf %498, %499 : vector<16x1xf32>
    %501 = math.rsqrt %500 : vector<16x1xf32>
    %502 = vector.broadcast %501 : vector<16x1xf32> to vector<16x32xf32>
    %503 = arith.mulf %10, %502 : vector<16x32xf32>
    %504 = math.absf %503 : vector<16x32xf32>
    %cst_139 = arith.constant dense<0xFF800000> : vector<16xf32>
    %505 = vector.multi_reduction <maximumf>, %504, %cst_139 [1] : vector<16x32xf32> to vector<16xf32>
    %506 = vector.shape_cast %505 : vector<16xf32> to vector<16x1xf32>
    %cst_140 = arith.constant 9.99999974E-6 : f32
    %507 = vector.broadcast %cst_140 : f32 to vector<16x1xf32>
    %508 = arith.maximumf %506, %507 : vector<16x1xf32>
    %cst_141 = arith.constant 1.270000e+02 : f32
    %509 = vector.broadcast %cst_141 : f32 to vector<16x1xf32>
    %510 = arith.divf %509, %508 : vector<16x1xf32>
    %511 = vector.broadcast %510 : vector<16x1xf32> to vector<16x32xf32>
    %512 = arith.mulf %503, %511 : vector<16x32xf32>
    %513 = math.roundeven %512 : vector<16x32xf32>
    %cst_142 = arith.constant -1.280000e+02 : f32
    %cst_143 = arith.constant 1.270000e+02 : f32
    %514 = vector.broadcast %cst_142 : f32 to vector<16x32xf32>
    %515 = arith.maximumf %514, %513 : vector<16x32xf32>
    %516 = vector.broadcast %cst_143 : f32 to vector<16x32xf32>
    %517 = arith.minimumf %516, %515 : vector<16x32xf32>
    %518 = vector.broadcast %510 : vector<16x1xf32> to vector<16x32xf32>
    %519 = arith.divf %517, %518 : vector<16x32xf32>
    %cst_144 = arith.constant dense<0.000000e+00> : vector<16x96xf32>
    %520 = tpu.matmul %519, %492, %cst_144 {dimension_numbers = #tpu.dot_dimension_numbers<[1], [0], [0], [1], [0, 0, 1, 1], [], []>} : vector<16x32xf32>, vector<32x96xf32>, vector<16x96xf32> -> vector<16x96xf32>
    %521 = vector.extract_strided_slice %520 {offsets = [0, 0], sizes = [16, 32], strides = [1, 1]} : vector<16x96xf32> to vector<16x32xf32>
    %522 = vector.extract_strided_slice %520 {offsets = [0, 32], sizes = [16, 32], strides = [1, 1]} : vector<16x96xf32> to vector<16x32xf32>
    %523 = vector.extract_strided_slice %520 {offsets = [0, 64], sizes = [16, 32], strides = [1, 1]} : vector<16x96xf32> to vector<16x32xf32>
    %524 = tpu.iota {dimensions = array<i32: 0>} : vector<8x8xi32>
    %525 = tpu.iota {dimensions = array<i32: 1>} : vector<8x8xi32>
    %526 = arith.cmpi sge, %524, %525 : vector<8x8xi32>
    %527 = vector.extract_strided_slice %521 {offsets = [0, 0], sizes = [8, 16], strides = [1, 1]} : vector<16x32xf32> to vector<8x16xf32>
    %528 = arith.mulf %527, %527 : vector<8x16xf32>
    %cst_145 = arith.constant dense<0.000000e+00> : vector<8xf32>
    %529 = vector.multi_reduction <add>, %528, %cst_145 [1] : vector<8x16xf32> to vector<8xf32>
    %530 = vector.shape_cast %529 : vector<8xf32> to vector<8x1xf32>
    %cst_146 = arith.constant 1.600000e+01 : f32
    %531 = vector.broadcast %cst_146 : f32 to vector<8x1xf32>
    %532 = arith.divf %530, %531 : vector<8x1xf32>
    %cst_147 = arith.constant 1.1920929E-7 : f32
    %533 = vector.broadcast %cst_147 : f32 to vector<8x1xf32>
    %534 = arith.addf %532, %533 : vector<8x1xf32>
    %535 = math.rsqrt %534 : vector<8x1xf32>
    %536 = vector.broadcast %535 : vector<8x1xf32> to vector<8x16xf32>
    %537 = arith.mulf %527, %536 : vector<8x16xf32>
    %538 = vector.extract_strided_slice %522 {offsets = [0, 0], sizes = [8, 16], strides = [1, 1]} : vector<16x32xf32> to vector<8x16xf32>
    %539 = arith.mulf %538, %538 : vector<8x16xf32>
    %cst_148 = arith.constant dense<0.000000e+00> : vector<8xf32>
    %540 = vector.multi_reduction <add>, %539, %cst_148 [1] : vector<8x16xf32> to vector<8xf32>
    %541 = vector.shape_cast %540 : vector<8xf32> to vector<8x1xf32>
    %cst_149 = arith.constant 1.600000e+01 : f32
    %542 = vector.broadcast %cst_149 : f32 to vector<8x1xf32>
    %543 = arith.divf %541, %542 : vector<8x1xf32>
    %cst_150 = arith.constant 1.1920929E-7 : f32
    %544 = vector.broadcast %cst_150 : f32 to vector<8x1xf32>
    %545 = arith.addf %543, %544 : vector<8x1xf32>
    %546 = math.rsqrt %545 : vector<8x1xf32>
    %547 = vector.broadcast %546 : vector<8x1xf32> to vector<8x16xf32>
    %548 = arith.mulf %538, %547 : vector<8x16xf32>
    %549 = vector.extract_strided_slice %523 {offsets = [0, 0], sizes = [8, 16], strides = [1, 1]} : vector<16x32xf32> to vector<8x16xf32>
    %550 = arith.mulf %549, %549 : vector<8x16xf32>
    %cst_151 = arith.constant dense<0.000000e+00> : vector<8xf32>
    %551 = vector.multi_reduction <add>, %550, %cst_151 [1] : vector<8x16xf32> to vector<8xf32>
    %552 = vector.shape_cast %551 : vector<8xf32> to vector<8x1xf32>
    %cst_152 = arith.constant 1.600000e+01 : f32
    %553 = vector.broadcast %cst_152 : f32 to vector<8x1xf32>
    %554 = arith.divf %552, %553 : vector<8x1xf32>
    %cst_153 = arith.constant 1.1920929E-7 : f32
    %555 = vector.broadcast %cst_153 : f32 to vector<8x1xf32>
    %556 = arith.addf %554, %555 : vector<8x1xf32>
    %557 = math.rsqrt %556 : vector<8x1xf32>
    %558 = vector.broadcast %557 : vector<8x1xf32> to vector<8x16xf32>
    %559 = arith.mulf %549, %558 : vector<8x16xf32>
    %560 = vector.extract_strided_slice %101 {offsets = [0, 0], sizes = [1, 8], strides = [1, 1]} : vector<2x8xf32> to vector<1x8xf32>
    %561 = vector.extract_strided_slice %102 {offsets = [0, 0], sizes = [1, 8], strides = [1, 1]} : vector<2x8xf32> to vector<1x8xf32>
    %562 = vector.extract_strided_slice %537 {offsets = [0, 0], sizes = [8, 8], strides = [1, 1]} : vector<8x16xf32> to vector<8x8xf32>
    %563 = vector.extract_strided_slice %537 {offsets = [0, 8], sizes = [8, 8], strides = [1, 1]} : vector<8x16xf32> to vector<8x8xf32>
    %564 = vector.broadcast %560 : vector<1x8xf32> to vector<8x8xf32>
    %565 = arith.mulf %562, %564 : vector<8x8xf32>
    %566 = vector.broadcast %561 : vector<1x8xf32> to vector<8x8xf32>
    %567 = arith.mulf %563, %566 : vector<8x8xf32>
    %568 = arith.addf %565, %567 : vector<8x8xf32>
    %cst_154 = arith.constant 0.000000e+00 : f32
    %569 = vector.broadcast %cst_154 : f32 to vector<8x8xf32>
    %570 = arith.subf %569, %562 : vector<8x8xf32>
    %571 = vector.broadcast %561 : vector<1x8xf32> to vector<8x8xf32>
    %572 = arith.mulf %570, %571 : vector<8x8xf32>
    %573 = vector.broadcast %560 : vector<1x8xf32> to vector<8x8xf32>
    %574 = arith.mulf %563, %573 : vector<8x8xf32>
    %575 = arith.addf %572, %574 : vector<8x8xf32>
    %576 = tpu.concatenate %568, %575 in 1 : vector<8x8xf32>, vector<8x8xf32> -> vector<8x16xf32>
    %577 = vector.extract_strided_slice %548 {offsets = [0, 0], sizes = [8, 8], strides = [1, 1]} : vector<8x16xf32> to vector<8x8xf32>
    %578 = vector.extract_strided_slice %548 {offsets = [0, 8], sizes = [8, 8], strides = [1, 1]} : vector<8x16xf32> to vector<8x8xf32>
    %579 = vector.broadcast %560 : vector<1x8xf32> to vector<8x8xf32>
    %580 = arith.mulf %577, %579 : vector<8x8xf32>
    %581 = vector.broadcast %561 : vector<1x8xf32> to vector<8x8xf32>
    %582 = arith.mulf %578, %581 : vector<8x8xf32>
    %583 = arith.addf %580, %582 : vector<8x8xf32>
    %cst_155 = arith.constant 0.000000e+00 : f32
    %584 = vector.broadcast %cst_155 : f32 to vector<8x8xf32>
    %585 = arith.subf %584, %577 : vector<8x8xf32>
    %586 = vector.broadcast %561 : vector<1x8xf32> to vector<8x8xf32>
    %587 = arith.mulf %585, %586 : vector<8x8xf32>
    %588 = vector.broadcast %560 : vector<1x8xf32> to vector<8x8xf32>
    %589 = arith.mulf %578, %588 : vector<8x8xf32>
    %590 = arith.addf %587, %589 : vector<8x8xf32>
    %591 = tpu.concatenate %583, %590 in 1 : vector<8x8xf32>, vector<8x8xf32> -> vector<8x16xf32>
    %cst_156 = arith.constant dense<0.000000e+00> : vector<8x8xf32>
    %592 = tpu.matmul %576, %591, %cst_156 {dimension_numbers = #tpu.dot_dimension_numbers<[1], [1], [0], [0], [0, 0, 1, 0], [], []>} : vector<8x16xf32>, vector<8x16xf32>, vector<8x8xf32> -> vector<8x8xf32>
    %cst_157 = arith.constant 1.200000e-01 : f32
    %593 = vector.broadcast %cst_157 : f32 to vector<8x8xf32>
    %594 = arith.mulf %592, %593 : vector<8x8xf32>
    %cst_158 = arith.constant -1.000000e+30 : f32
    %595 = vector.broadcast %cst_158 : f32 to vector<8x8xf32>
    %596 = arith.select %526, %594, %595 : vector<8x8xi1>, vector<8x8xf32>
    %cst_159 = arith.constant dense<0xFF800000> : vector<8xf32>
    %597 = vector.multi_reduction <maximumf>, %596, %cst_159 [1] : vector<8x8xf32> to vector<8xf32>
    %598 = vector.shape_cast %597 : vector<8xf32> to vector<8x1xf32>
    %599 = vector.broadcast %598 : vector<8x1xf32> to vector<8x8xf32>
    %600 = arith.subf %596, %599 : vector<8x8xf32>
    %601 = math.exp %600 : vector<8x8xf32>
    %cst_160 = arith.constant dense<0.000000e+00> : vector<8xf32>
    %602 = vector.multi_reduction <add>, %601, %cst_160 [1] : vector<8x8xf32> to vector<8xf32>
    %603 = vector.shape_cast %602 : vector<8xf32> to vector<8x1xf32>
    %604 = tpu.reciprocal %603 {approx = true} : vector<8x1xf32> -> vector<8x1xf32>
    %605 = vector.broadcast %604 : vector<8x1xf32> to vector<8x8xf32>
    %606 = arith.mulf %601, %605 : vector<8x8xf32>
    %cst_161 = arith.constant dense<0.000000e+00> : vector<8x16xf32>
    %607 = tpu.matmul %606, %559, %cst_161 {dimension_numbers = #tpu.dot_dimension_numbers<[1], [0], [0], [1], [0, 0, 1, 1], [], []>} : vector<8x8xf32>, vector<8x16xf32>, vector<8x16xf32> -> vector<8x16xf32>
    %608 = vector.extract_strided_slice %521 {offsets = [0, 16], sizes = [8, 16], strides = [1, 1]} : vector<16x32xf32> to vector<8x16xf32>
    %609 = arith.mulf %608, %608 : vector<8x16xf32>
    %cst_162 = arith.constant dense<0.000000e+00> : vector<8xf32>
    %610 = vector.multi_reduction <add>, %609, %cst_162 [1] : vector<8x16xf32> to vector<8xf32>
    %611 = vector.shape_cast %610 : vector<8xf32> to vector<8x1xf32>
    %cst_163 = arith.constant 1.600000e+01 : f32
    %612 = vector.broadcast %cst_163 : f32 to vector<8x1xf32>
    %613 = arith.divf %611, %612 : vector<8x1xf32>
    %cst_164 = arith.constant 1.1920929E-7 : f32
    %614 = vector.broadcast %cst_164 : f32 to vector<8x1xf32>
    %615 = arith.addf %613, %614 : vector<8x1xf32>
    %616 = math.rsqrt %615 : vector<8x1xf32>
    %617 = vector.broadcast %616 : vector<8x1xf32> to vector<8x16xf32>
    %618 = arith.mulf %608, %617 : vector<8x16xf32>
    %619 = vector.extract_strided_slice %522 {offsets = [0, 16], sizes = [8, 16], strides = [1, 1]} : vector<16x32xf32> to vector<8x16xf32>
    %620 = arith.mulf %619, %619 : vector<8x16xf32>
    %cst_165 = arith.constant dense<0.000000e+00> : vector<8xf32>
    %621 = vector.multi_reduction <add>, %620, %cst_165 [1] : vector<8x16xf32> to vector<8xf32>
    %622 = vector.shape_cast %621 : vector<8xf32> to vector<8x1xf32>
    %cst_166 = arith.constant 1.600000e+01 : f32
    %623 = vector.broadcast %cst_166 : f32 to vector<8x1xf32>
    %624 = arith.divf %622, %623 : vector<8x1xf32>
    %cst_167 = arith.constant 1.1920929E-7 : f32
    %625 = vector.broadcast %cst_167 : f32 to vector<8x1xf32>
    %626 = arith.addf %624, %625 : vector<8x1xf32>
    %627 = math.rsqrt %626 : vector<8x1xf32>
    %628 = vector.broadcast %627 : vector<8x1xf32> to vector<8x16xf32>
    %629 = arith.mulf %619, %628 : vector<8x16xf32>
    %630 = vector.extract_strided_slice %523 {offsets = [0, 16], sizes = [8, 16], strides = [1, 1]} : vector<16x32xf32> to vector<8x16xf32>
    %631 = arith.mulf %630, %630 : vector<8x16xf32>
    %cst_168 = arith.constant dense<0.000000e+00> : vector<8xf32>
    %632 = vector.multi_reduction <add>, %631, %cst_168 [1] : vector<8x16xf32> to vector<8xf32>
    %633 = vector.shape_cast %632 : vector<8xf32> to vector<8x1xf32>
    %cst_169 = arith.constant 1.600000e+01 : f32
    %634 = vector.broadcast %cst_169 : f32 to vector<8x1xf32>
    %635 = arith.divf %633, %634 : vector<8x1xf32>
    %cst_170 = arith.constant 1.1920929E-7 : f32
    %636 = vector.broadcast %cst_170 : f32 to vector<8x1xf32>
    %637 = arith.addf %635, %636 : vector<8x1xf32>
    %638 = math.rsqrt %637 : vector<8x1xf32>
    %639 = vector.broadcast %638 : vector<8x1xf32> to vector<8x16xf32>
    %640 = arith.mulf %630, %639 : vector<8x16xf32>
    %641 = vector.extract_strided_slice %101 {offsets = [1, 0], sizes = [1, 8], strides = [1, 1]} : vector<2x8xf32> to vector<1x8xf32>
    %642 = vector.extract_strided_slice %102 {offsets = [1, 0], sizes = [1, 8], strides = [1, 1]} : vector<2x8xf32> to vector<1x8xf32>
    %643 = vector.extract_strided_slice %618 {offsets = [0, 0], sizes = [8, 8], strides = [1, 1]} : vector<8x16xf32> to vector<8x8xf32>
    %644 = vector.extract_strided_slice %618 {offsets = [0, 8], sizes = [8, 8], strides = [1, 1]} : vector<8x16xf32> to vector<8x8xf32>
    %645 = vector.broadcast %641 : vector<1x8xf32> to vector<8x8xf32>
    %646 = arith.mulf %643, %645 : vector<8x8xf32>
    %647 = vector.broadcast %642 : vector<1x8xf32> to vector<8x8xf32>
    %648 = arith.mulf %644, %647 : vector<8x8xf32>
    %649 = arith.addf %646, %648 : vector<8x8xf32>
    %cst_171 = arith.constant 0.000000e+00 : f32
    %650 = vector.broadcast %cst_171 : f32 to vector<8x8xf32>
    %651 = arith.subf %650, %643 : vector<8x8xf32>
    %652 = vector.broadcast %642 : vector<1x8xf32> to vector<8x8xf32>
    %653 = arith.mulf %651, %652 : vector<8x8xf32>
    %654 = vector.broadcast %641 : vector<1x8xf32> to vector<8x8xf32>
    %655 = arith.mulf %644, %654 : vector<8x8xf32>
    %656 = arith.addf %653, %655 : vector<8x8xf32>
    %657 = tpu.concatenate %649, %656 in 1 : vector<8x8xf32>, vector<8x8xf32> -> vector<8x16xf32>
    %658 = vector.extract_strided_slice %629 {offsets = [0, 0], sizes = [8, 8], strides = [1, 1]} : vector<8x16xf32> to vector<8x8xf32>
    %659 = vector.extract_strided_slice %629 {offsets = [0, 8], sizes = [8, 8], strides = [1, 1]} : vector<8x16xf32> to vector<8x8xf32>
    %660 = vector.broadcast %641 : vector<1x8xf32> to vector<8x8xf32>
    %661 = arith.mulf %658, %660 : vector<8x8xf32>
    %662 = vector.broadcast %642 : vector<1x8xf32> to vector<8x8xf32>
    %663 = arith.mulf %659, %662 : vector<8x8xf32>
    %664 = arith.addf %661, %663 : vector<8x8xf32>
    %cst_172 = arith.constant 0.000000e+00 : f32
    %665 = vector.broadcast %cst_172 : f32 to vector<8x8xf32>
    %666 = arith.subf %665, %658 : vector<8x8xf32>
    %667 = vector.broadcast %642 : vector<1x8xf32> to vector<8x8xf32>
    %668 = arith.mulf %666, %667 : vector<8x8xf32>
    %669 = vector.broadcast %641 : vector<1x8xf32> to vector<8x8xf32>
    %670 = arith.mulf %659, %669 : vector<8x8xf32>
    %671 = arith.addf %668, %670 : vector<8x8xf32>
    %672 = tpu.concatenate %664, %671 in 1 : vector<8x8xf32>, vector<8x8xf32> -> vector<8x16xf32>
    %cst_173 = arith.constant dense<0.000000e+00> : vector<8x8xf32>
    %673 = tpu.matmul %657, %672, %cst_173 {dimension_numbers = #tpu.dot_dimension_numbers<[1], [1], [0], [0], [0, 0, 1, 0], [], []>} : vector<8x16xf32>, vector<8x16xf32>, vector<8x8xf32> -> vector<8x8xf32>
    %cst_174 = arith.constant 1.200000e-01 : f32
    %674 = vector.broadcast %cst_174 : f32 to vector<8x8xf32>
    %675 = arith.mulf %673, %674 : vector<8x8xf32>
    %cst_175 = arith.constant -1.000000e+30 : f32
    %676 = vector.broadcast %cst_175 : f32 to vector<8x8xf32>
    %677 = arith.select %526, %675, %676 : vector<8x8xi1>, vector<8x8xf32>
    %cst_176 = arith.constant dense<0xFF800000> : vector<8xf32>
    %678 = vector.multi_reduction <maximumf>, %677, %cst_176 [1] : vector<8x8xf32> to vector<8xf32>
    %679 = vector.shape_cast %678 : vector<8xf32> to vector<8x1xf32>
    %680 = vector.broadcast %679 : vector<8x1xf32> to vector<8x8xf32>
    %681 = arith.subf %677, %680 : vector<8x8xf32>
    %682 = math.exp %681 : vector<8x8xf32>
    %cst_177 = arith.constant dense<0.000000e+00> : vector<8xf32>
    %683 = vector.multi_reduction <add>, %682, %cst_177 [1] : vector<8x8xf32> to vector<8xf32>
    %684 = vector.shape_cast %683 : vector<8xf32> to vector<8x1xf32>
    %685 = tpu.reciprocal %684 {approx = true} : vector<8x1xf32> -> vector<8x1xf32>
    %686 = vector.broadcast %685 : vector<8x1xf32> to vector<8x8xf32>
    %687 = arith.mulf %682, %686 : vector<8x8xf32>
    %cst_178 = arith.constant dense<0.000000e+00> : vector<8x16xf32>
    %688 = tpu.matmul %687, %640, %cst_178 {dimension_numbers = #tpu.dot_dimension_numbers<[1], [0], [0], [1], [0, 0, 1, 1], [], []>} : vector<8x8xf32>, vector<8x16xf32>, vector<8x16xf32> -> vector<8x16xf32>
    %689 = tpu.concatenate %607, %688 in 1 : vector<8x16xf32>, vector<8x16xf32> -> vector<8x32xf32>
    %690 = vector.extract_strided_slice %521 {offsets = [8, 0], sizes = [8, 16], strides = [1, 1]} : vector<16x32xf32> to vector<8x16xf32>
    %691 = arith.mulf %690, %690 : vector<8x16xf32>
    %cst_179 = arith.constant dense<0.000000e+00> : vector<8xf32>
    %692 = vector.multi_reduction <add>, %691, %cst_179 [1] : vector<8x16xf32> to vector<8xf32>
    %693 = vector.shape_cast %692 : vector<8xf32> to vector<8x1xf32>
    %cst_180 = arith.constant 1.600000e+01 : f32
    %694 = vector.broadcast %cst_180 : f32 to vector<8x1xf32>
    %695 = arith.divf %693, %694 : vector<8x1xf32>
    %cst_181 = arith.constant 1.1920929E-7 : f32
    %696 = vector.broadcast %cst_181 : f32 to vector<8x1xf32>
    %697 = arith.addf %695, %696 : vector<8x1xf32>
    %698 = math.rsqrt %697 : vector<8x1xf32>
    %699 = vector.broadcast %698 : vector<8x1xf32> to vector<8x16xf32>
    %700 = arith.mulf %690, %699 : vector<8x16xf32>
    %701 = vector.extract_strided_slice %522 {offsets = [8, 0], sizes = [8, 16], strides = [1, 1]} : vector<16x32xf32> to vector<8x16xf32>
    %702 = arith.mulf %701, %701 : vector<8x16xf32>
    %cst_182 = arith.constant dense<0.000000e+00> : vector<8xf32>
    %703 = vector.multi_reduction <add>, %702, %cst_182 [1] : vector<8x16xf32> to vector<8xf32>
    %704 = vector.shape_cast %703 : vector<8xf32> to vector<8x1xf32>
    %cst_183 = arith.constant 1.600000e+01 : f32
    %705 = vector.broadcast %cst_183 : f32 to vector<8x1xf32>
    %706 = arith.divf %704, %705 : vector<8x1xf32>
    %cst_184 = arith.constant 1.1920929E-7 : f32
    %707 = vector.broadcast %cst_184 : f32 to vector<8x1xf32>
    %708 = arith.addf %706, %707 : vector<8x1xf32>
    %709 = math.rsqrt %708 : vector<8x1xf32>
    %710 = vector.broadcast %709 : vector<8x1xf32> to vector<8x16xf32>
    %711 = arith.mulf %701, %710 : vector<8x16xf32>
    %712 = vector.extract_strided_slice %523 {offsets = [8, 0], sizes = [8, 16], strides = [1, 1]} : vector<16x32xf32> to vector<8x16xf32>
    %713 = arith.mulf %712, %712 : vector<8x16xf32>
    %cst_185 = arith.constant dense<0.000000e+00> : vector<8xf32>
    %714 = vector.multi_reduction <add>, %713, %cst_185 [1] : vector<8x16xf32> to vector<8xf32>
    %715 = vector.shape_cast %714 : vector<8xf32> to vector<8x1xf32>
    %cst_186 = arith.constant 1.600000e+01 : f32
    %716 = vector.broadcast %cst_186 : f32 to vector<8x1xf32>
    %717 = arith.divf %715, %716 : vector<8x1xf32>
    %cst_187 = arith.constant 1.1920929E-7 : f32
    %718 = vector.broadcast %cst_187 : f32 to vector<8x1xf32>
    %719 = arith.addf %717, %718 : vector<8x1xf32>
    %720 = math.rsqrt %719 : vector<8x1xf32>
    %721 = vector.broadcast %720 : vector<8x1xf32> to vector<8x16xf32>
    %722 = arith.mulf %712, %721 : vector<8x16xf32>
    %723 = vector.extract_strided_slice %101 {offsets = [0, 0], sizes = [1, 8], strides = [1, 1]} : vector<2x8xf32> to vector<1x8xf32>
    %724 = vector.extract_strided_slice %102 {offsets = [0, 0], sizes = [1, 8], strides = [1, 1]} : vector<2x8xf32> to vector<1x8xf32>
    %725 = vector.extract_strided_slice %700 {offsets = [0, 0], sizes = [8, 8], strides = [1, 1]} : vector<8x16xf32> to vector<8x8xf32>
    %726 = vector.extract_strided_slice %700 {offsets = [0, 8], sizes = [8, 8], strides = [1, 1]} : vector<8x16xf32> to vector<8x8xf32>
    %727 = vector.broadcast %723 : vector<1x8xf32> to vector<8x8xf32>
    %728 = arith.mulf %725, %727 : vector<8x8xf32>
    %729 = vector.broadcast %724 : vector<1x8xf32> to vector<8x8xf32>
    %730 = arith.mulf %726, %729 : vector<8x8xf32>
    %731 = arith.addf %728, %730 : vector<8x8xf32>
    %cst_188 = arith.constant 0.000000e+00 : f32
    %732 = vector.broadcast %cst_188 : f32 to vector<8x8xf32>
    %733 = arith.subf %732, %725 : vector<8x8xf32>
    %734 = vector.broadcast %724 : vector<1x8xf32> to vector<8x8xf32>
    %735 = arith.mulf %733, %734 : vector<8x8xf32>
    %736 = vector.broadcast %723 : vector<1x8xf32> to vector<8x8xf32>
    %737 = arith.mulf %726, %736 : vector<8x8xf32>
    %738 = arith.addf %735, %737 : vector<8x8xf32>
    %739 = tpu.concatenate %731, %738 in 1 : vector<8x8xf32>, vector<8x8xf32> -> vector<8x16xf32>
    %740 = vector.extract_strided_slice %711 {offsets = [0, 0], sizes = [8, 8], strides = [1, 1]} : vector<8x16xf32> to vector<8x8xf32>
    %741 = vector.extract_strided_slice %711 {offsets = [0, 8], sizes = [8, 8], strides = [1, 1]} : vector<8x16xf32> to vector<8x8xf32>
    %742 = vector.broadcast %723 : vector<1x8xf32> to vector<8x8xf32>
    %743 = arith.mulf %740, %742 : vector<8x8xf32>
    %744 = vector.broadcast %724 : vector<1x8xf32> to vector<8x8xf32>
    %745 = arith.mulf %741, %744 : vector<8x8xf32>
    %746 = arith.addf %743, %745 : vector<8x8xf32>
    %cst_189 = arith.constant 0.000000e+00 : f32
    %747 = vector.broadcast %cst_189 : f32 to vector<8x8xf32>
    %748 = arith.subf %747, %740 : vector<8x8xf32>
    %749 = vector.broadcast %724 : vector<1x8xf32> to vector<8x8xf32>
    %750 = arith.mulf %748, %749 : vector<8x8xf32>
    %751 = vector.broadcast %723 : vector<1x8xf32> to vector<8x8xf32>
    %752 = arith.mulf %741, %751 : vector<8x8xf32>
    %753 = arith.addf %750, %752 : vector<8x8xf32>
    %754 = tpu.concatenate %746, %753 in 1 : vector<8x8xf32>, vector<8x8xf32> -> vector<8x16xf32>
    %cst_190 = arith.constant dense<0.000000e+00> : vector<8x8xf32>
    %755 = tpu.matmul %739, %754, %cst_190 {dimension_numbers = #tpu.dot_dimension_numbers<[1], [1], [0], [0], [0, 0, 1, 0], [], []>} : vector<8x16xf32>, vector<8x16xf32>, vector<8x8xf32> -> vector<8x8xf32>
    %cst_191 = arith.constant 1.200000e-01 : f32
    %756 = vector.broadcast %cst_191 : f32 to vector<8x8xf32>
    %757 = arith.mulf %755, %756 : vector<8x8xf32>
    %cst_192 = arith.constant -1.000000e+30 : f32
    %758 = vector.broadcast %cst_192 : f32 to vector<8x8xf32>
    %759 = arith.select %526, %757, %758 : vector<8x8xi1>, vector<8x8xf32>
    %cst_193 = arith.constant dense<0xFF800000> : vector<8xf32>
    %760 = vector.multi_reduction <maximumf>, %759, %cst_193 [1] : vector<8x8xf32> to vector<8xf32>
    %761 = vector.shape_cast %760 : vector<8xf32> to vector<8x1xf32>
    %762 = vector.broadcast %761 : vector<8x1xf32> to vector<8x8xf32>
    %763 = arith.subf %759, %762 : vector<8x8xf32>
    %764 = math.exp %763 : vector<8x8xf32>
    %cst_194 = arith.constant dense<0.000000e+00> : vector<8xf32>
    %765 = vector.multi_reduction <add>, %764, %cst_194 [1] : vector<8x8xf32> to vector<8xf32>
    %766 = vector.shape_cast %765 : vector<8xf32> to vector<8x1xf32>
    %767 = tpu.reciprocal %766 {approx = true} : vector<8x1xf32> -> vector<8x1xf32>
    %768 = vector.broadcast %767 : vector<8x1xf32> to vector<8x8xf32>
    %769 = arith.mulf %764, %768 : vector<8x8xf32>
    %cst_195 = arith.constant dense<0.000000e+00> : vector<8x16xf32>
    %770 = tpu.matmul %769, %722, %cst_195 {dimension_numbers = #tpu.dot_dimension_numbers<[1], [0], [0], [1], [0, 0, 1, 1], [], []>} : vector<8x8xf32>, vector<8x16xf32>, vector<8x16xf32> -> vector<8x16xf32>
    %771 = vector.extract_strided_slice %521 {offsets = [8, 16], sizes = [8, 16], strides = [1, 1]} : vector<16x32xf32> to vector<8x16xf32>
    %772 = arith.mulf %771, %771 : vector<8x16xf32>
    %cst_196 = arith.constant dense<0.000000e+00> : vector<8xf32>
    %773 = vector.multi_reduction <add>, %772, %cst_196 [1] : vector<8x16xf32> to vector<8xf32>
    %774 = vector.shape_cast %773 : vector<8xf32> to vector<8x1xf32>
    %cst_197 = arith.constant 1.600000e+01 : f32
    %775 = vector.broadcast %cst_197 : f32 to vector<8x1xf32>
    %776 = arith.divf %774, %775 : vector<8x1xf32>
    %cst_198 = arith.constant 1.1920929E-7 : f32
    %777 = vector.broadcast %cst_198 : f32 to vector<8x1xf32>
    %778 = arith.addf %776, %777 : vector<8x1xf32>
    %779 = math.rsqrt %778 : vector<8x1xf32>
    %780 = vector.broadcast %779 : vector<8x1xf32> to vector<8x16xf32>
    %781 = arith.mulf %771, %780 : vector<8x16xf32>
    %782 = vector.extract_strided_slice %522 {offsets = [8, 16], sizes = [8, 16], strides = [1, 1]} : vector<16x32xf32> to vector<8x16xf32>
    %783 = arith.mulf %782, %782 : vector<8x16xf32>
    %cst_199 = arith.constant dense<0.000000e+00> : vector<8xf32>
    %784 = vector.multi_reduction <add>, %783, %cst_199 [1] : vector<8x16xf32> to vector<8xf32>
    %785 = vector.shape_cast %784 : vector<8xf32> to vector<8x1xf32>
    %cst_200 = arith.constant 1.600000e+01 : f32
    %786 = vector.broadcast %cst_200 : f32 to vector<8x1xf32>
    %787 = arith.divf %785, %786 : vector<8x1xf32>
    %cst_201 = arith.constant 1.1920929E-7 : f32
    %788 = vector.broadcast %cst_201 : f32 to vector<8x1xf32>
    %789 = arith.addf %787, %788 : vector<8x1xf32>
    %790 = math.rsqrt %789 : vector<8x1xf32>
    %791 = vector.broadcast %790 : vector<8x1xf32> to vector<8x16xf32>
    %792 = arith.mulf %782, %791 : vector<8x16xf32>
    %793 = vector.extract_strided_slice %523 {offsets = [8, 16], sizes = [8, 16], strides = [1, 1]} : vector<16x32xf32> to vector<8x16xf32>
    %794 = arith.mulf %793, %793 : vector<8x16xf32>
    %cst_202 = arith.constant dense<0.000000e+00> : vector<8xf32>
    %795 = vector.multi_reduction <add>, %794, %cst_202 [1] : vector<8x16xf32> to vector<8xf32>
    %796 = vector.shape_cast %795 : vector<8xf32> to vector<8x1xf32>
    %cst_203 = arith.constant 1.600000e+01 : f32
    %797 = vector.broadcast %cst_203 : f32 to vector<8x1xf32>
    %798 = arith.divf %796, %797 : vector<8x1xf32>
    %cst_204 = arith.constant 1.1920929E-7 : f32
    %799 = vector.broadcast %cst_204 : f32 to vector<8x1xf32>
    %800 = arith.addf %798, %799 : vector<8x1xf32>
    %801 = math.rsqrt %800 : vector<8x1xf32>
    %802 = vector.broadcast %801 : vector<8x1xf32> to vector<8x16xf32>
    %803 = arith.mulf %793, %802 : vector<8x16xf32>
    %804 = vector.extract_strided_slice %101 {offsets = [1, 0], sizes = [1, 8], strides = [1, 1]} : vector<2x8xf32> to vector<1x8xf32>
    %805 = vector.extract_strided_slice %102 {offsets = [1, 0], sizes = [1, 8], strides = [1, 1]} : vector<2x8xf32> to vector<1x8xf32>
    %806 = vector.extract_strided_slice %781 {offsets = [0, 0], sizes = [8, 8], strides = [1, 1]} : vector<8x16xf32> to vector<8x8xf32>
    %807 = vector.extract_strided_slice %781 {offsets = [0, 8], sizes = [8, 8], strides = [1, 1]} : vector<8x16xf32> to vector<8x8xf32>
    %808 = vector.broadcast %804 : vector<1x8xf32> to vector<8x8xf32>
    %809 = arith.mulf %806, %808 : vector<8x8xf32>
    %810 = vector.broadcast %805 : vector<1x8xf32> to vector<8x8xf32>
    %811 = arith.mulf %807, %810 : vector<8x8xf32>
    %812 = arith.addf %809, %811 : vector<8x8xf32>
    %cst_205 = arith.constant 0.000000e+00 : f32
    %813 = vector.broadcast %cst_205 : f32 to vector<8x8xf32>
    %814 = arith.subf %813, %806 : vector<8x8xf32>
    %815 = vector.broadcast %805 : vector<1x8xf32> to vector<8x8xf32>
    %816 = arith.mulf %814, %815 : vector<8x8xf32>
    %817 = vector.broadcast %804 : vector<1x8xf32> to vector<8x8xf32>
    %818 = arith.mulf %807, %817 : vector<8x8xf32>
    %819 = arith.addf %816, %818 : vector<8x8xf32>
    %820 = tpu.concatenate %812, %819 in 1 : vector<8x8xf32>, vector<8x8xf32> -> vector<8x16xf32>
    %821 = vector.extract_strided_slice %792 {offsets = [0, 0], sizes = [8, 8], strides = [1, 1]} : vector<8x16xf32> to vector<8x8xf32>
    %822 = vector.extract_strided_slice %792 {offsets = [0, 8], sizes = [8, 8], strides = [1, 1]} : vector<8x16xf32> to vector<8x8xf32>
    %823 = vector.broadcast %804 : vector<1x8xf32> to vector<8x8xf32>
    %824 = arith.mulf %821, %823 : vector<8x8xf32>
    %825 = vector.broadcast %805 : vector<1x8xf32> to vector<8x8xf32>
    %826 = arith.mulf %822, %825 : vector<8x8xf32>
    %827 = arith.addf %824, %826 : vector<8x8xf32>
    %cst_206 = arith.constant 0.000000e+00 : f32
    %828 = vector.broadcast %cst_206 : f32 to vector<8x8xf32>
    %829 = arith.subf %828, %821 : vector<8x8xf32>
    %830 = vector.broadcast %805 : vector<1x8xf32> to vector<8x8xf32>
    %831 = arith.mulf %829, %830 : vector<8x8xf32>
    %832 = vector.broadcast %804 : vector<1x8xf32> to vector<8x8xf32>
    %833 = arith.mulf %822, %832 : vector<8x8xf32>
    %834 = arith.addf %831, %833 : vector<8x8xf32>
    %835 = tpu.concatenate %827, %834 in 1 : vector<8x8xf32>, vector<8x8xf32> -> vector<8x16xf32>
    %cst_207 = arith.constant dense<0.000000e+00> : vector<8x8xf32>
    %836 = tpu.matmul %820, %835, %cst_207 {dimension_numbers = #tpu.dot_dimension_numbers<[1], [1], [0], [0], [0, 0, 1, 0], [], []>} : vector<8x16xf32>, vector<8x16xf32>, vector<8x8xf32> -> vector<8x8xf32>
    %cst_208 = arith.constant 1.200000e-01 : f32
    %837 = vector.broadcast %cst_208 : f32 to vector<8x8xf32>
    %838 = arith.mulf %836, %837 : vector<8x8xf32>
    %cst_209 = arith.constant -1.000000e+30 : f32
    %839 = vector.broadcast %cst_209 : f32 to vector<8x8xf32>
    %840 = arith.select %526, %838, %839 : vector<8x8xi1>, vector<8x8xf32>
    %cst_210 = arith.constant dense<0xFF800000> : vector<8xf32>
    %841 = vector.multi_reduction <maximumf>, %840, %cst_210 [1] : vector<8x8xf32> to vector<8xf32>
    %842 = vector.shape_cast %841 : vector<8xf32> to vector<8x1xf32>
    %843 = vector.broadcast %842 : vector<8x1xf32> to vector<8x8xf32>
    %844 = arith.subf %840, %843 : vector<8x8xf32>
    %845 = math.exp %844 : vector<8x8xf32>
    %cst_211 = arith.constant dense<0.000000e+00> : vector<8xf32>
    %846 = vector.multi_reduction <add>, %845, %cst_211 [1] : vector<8x8xf32> to vector<8xf32>
    %847 = vector.shape_cast %846 : vector<8xf32> to vector<8x1xf32>
    %848 = tpu.reciprocal %847 {approx = true} : vector<8x1xf32> -> vector<8x1xf32>
    %849 = vector.broadcast %848 : vector<8x1xf32> to vector<8x8xf32>
    %850 = arith.mulf %845, %849 : vector<8x8xf32>
    %cst_212 = arith.constant dense<0.000000e+00> : vector<8x16xf32>
    %851 = tpu.matmul %850, %803, %cst_212 {dimension_numbers = #tpu.dot_dimension_numbers<[1], [0], [0], [1], [0, 0, 1, 1], [], []>} : vector<8x8xf32>, vector<8x16xf32>, vector<8x16xf32> -> vector<8x16xf32>
    %852 = tpu.concatenate %770, %851 in 1 : vector<8x16xf32>, vector<8x16xf32> -> vector<8x32xf32>
    %853 = tpu.concatenate %689, %852 in 0 : vector<8x32xf32>, vector<8x32xf32> -> vector<16x32xf32>
    %854 = arith.mulf %853, %853 : vector<16x32xf32>
    %cst_213 = arith.constant dense<0.000000e+00> : vector<16xf32>
    %855 = vector.multi_reduction <add>, %854, %cst_213 [1] : vector<16x32xf32> to vector<16xf32>
    %856 = vector.shape_cast %855 : vector<16xf32> to vector<16x1xf32>
    %cst_214 = arith.constant 3.200000e+01 : f32
    %857 = vector.broadcast %cst_214 : f32 to vector<16x1xf32>
    %858 = arith.divf %856, %857 : vector<16x1xf32>
    %cst_215 = arith.constant 1.1920929E-7 : f32
    %859 = vector.broadcast %cst_215 : f32 to vector<16x1xf32>
    %860 = arith.addf %858, %859 : vector<16x1xf32>
    %861 = math.rsqrt %860 : vector<16x1xf32>
    %862 = vector.broadcast %861 : vector<16x1xf32> to vector<16x32xf32>
    %863 = arith.mulf %853, %862 : vector<16x32xf32>
    %864 = math.absf %863 : vector<16x32xf32>
    %cst_216 = arith.constant dense<0xFF800000> : vector<16xf32>
    %865 = vector.multi_reduction <maximumf>, %864, %cst_216 [1] : vector<16x32xf32> to vector<16xf32>
    %866 = vector.shape_cast %865 : vector<16xf32> to vector<16x1xf32>
    %cst_217 = arith.constant 9.99999974E-6 : f32
    %867 = vector.broadcast %cst_217 : f32 to vector<16x1xf32>
    %868 = arith.maximumf %866, %867 : vector<16x1xf32>
    %cst_218 = arith.constant 1.270000e+02 : f32
    %869 = vector.broadcast %cst_218 : f32 to vector<16x1xf32>
    %870 = arith.divf %869, %868 : vector<16x1xf32>
    %871 = vector.broadcast %870 : vector<16x1xf32> to vector<16x32xf32>
    %872 = arith.mulf %863, %871 : vector<16x32xf32>
    %873 = math.roundeven %872 : vector<16x32xf32>
    %cst_219 = arith.constant -1.280000e+02 : f32
    %cst_220 = arith.constant 1.270000e+02 : f32
    %874 = vector.broadcast %cst_219 : f32 to vector<16x32xf32>
    %875 = arith.maximumf %874, %873 : vector<16x32xf32>
    %876 = vector.broadcast %cst_220 : f32 to vector<16x32xf32>
    %877 = arith.minimumf %876, %875 : vector<16x32xf32>
    %878 = vector.broadcast %870 : vector<16x1xf32> to vector<16x32xf32>
    %879 = arith.divf %877, %878 : vector<16x32xf32>
    %cst_221 = arith.constant dense<0.000000e+00> : vector<16x32xf32>
    %880 = tpu.matmul %879, %493, %cst_221 {dimension_numbers = #tpu.dot_dimension_numbers<[1], [0], [0], [1], [0, 0, 1, 1], [], []>} : vector<16x32xf32>, vector<32x32xf32>, vector<16x32xf32> -> vector<16x32xf32>
    %881 = arith.addf %0, %100 : vector<16x32xf32>
    %882 = arith.addf %881, %491 : vector<16x32xf32>
    %883 = arith.addf %882, %880 : vector<16x32xf32>
    %c0_222 = arith.constant 0 : index
    %c0_223 = arith.constant 0 : index
    %884 = vector.load %arg10[%c0_222, %c0_223] : memref<16x32xf32, #tpu.memory_space<vmem>>, vector<16x32xf32>
    tpu.vector_store %arg10[%c0_222, %c0_223], %883 {strides = array<i32>} : memref<16x32xf32, #tpu.memory_space<vmem>>, vector<16x32xf32>,
    return
  }
}

</mosaic_0001>

<bundles_post_ra>
// kernel: tpu_custom_call.1
= control target key start
LH: loop header
LB: loop body
LE: loop exit
PB: predicated region body
PF: predicated region fallthrough
CT: control target
= control target key end

     0   :  { %15 = vsyncpa [#allocation3], 0  ;;  %s4575_s0 = inlined_call_operand.hbm [shape: f32[16,32], index: 0, kind: input, shape index: {}]   ;;  %s4576_s1 = inlined_call_operand.vmem [shape: f32[2,8], index: 1, kind: input, shape index: {}]   ;;  %s4577_s2 = inlined_call_operand.hbm [shape: f32[2,8], index: 2, kind: input, shape index: {}]   ;;  %s4578_s3 = inlined_call_operand.vmem [shape: f32[32,96], index: 3, kind: input, shape index: {}]   ;;  %s4579_s4 = inlined_call_operand.hbm [shape: f32[32,32], index: 4, kind: input, shape index: {}]   ;;  %s4580_s5 = inlined_call_operand.hbm [shape: f32[32,96], index: 5, kind: input, shape index: {}]   ;;  %s4581_s6 = inlined_call_operand.hbm [shape: f32[32,32], index: 6, kind: input, shape index: {}]   ;;  %s4582_s7 = inlined_call_operand.hbm [shape: f32[32,64], index: 7, kind: input, shape index: {}]   ;;  %s4583_s8 = inlined_call_operand.vmem [shape: f32[64,64], index: 8, kind: input, shape index: {}]   ;;  %s4584_s9 = inlined_call_operand.vmem [shape: f32[64,32], index: 9, kind: input, shape index: {}]   ;;  %s4585_s10 = inlined_call_operand.hbm [shape: f32[16,32], index: 10, kind: output, shape index: {}]  }
   0x1   :  { %16 = vsyncpa [#allocation6], 0 }
   0x2   :  { %17 = vsyncpa [#allocation9], 0 }
   0x3   :  { %18 = vsyncpa [#allocation12], 0 }
   0x4   :  { %19 = vsyncpa [#allocation4], 0  ;;  %s3714_s13 = smov [#allocation5]   ;;  %s3550_s17 = scalar_lea.hbm %s4577_s2, 32 }
   0x5   :  { %s40_s14 = sshll.u32 %s3714_s13, 4  ;;  %p3551_p0 = scmp.ne.s32.totalorder %s4577_s2, %s3550_s17  ;;  %s41_s14 = int_to_ptr.vmem [resolvable:$true] %s40_s14 }
   0x6   :  { %p3554_p1 = scmp.lt.u32.totalorder %s3550_s17, %s4577_s2 }
   0x8   :  { %p3556_p2 = pnand %p3554_p1, %p3551_p0 }
   0xa   :  { %3559 = shalt.err (!%p3556_p2)
}
   0xb   :  { %s3560_s22 = scalar_lea.vmem %s41_s14, 32  ;;  %p3565_p4 = scmp.lt.s32.totalorder %s41_s14, %s41_s14 }
   0xc   :  { %p3561_p3 = scmp.ne.s32.totalorder %s41_s14, %s3560_s22  ;;  %p3566_p5 = scmp.lt.s32.totalorder %s3560_s22, %s3560_s22 }
   0xe   :  { %p3567_p6 = por %p3566_p5, %p3565_p4 }
  0x10   :  { %p3568_p7 = pnand %p3567_p6, %p3561_p3 }
  0x12   :  { %3571 = shalt.err (!%p3568_p7)
}
  0x13   :  { %43 = dma.hbm_to_vmem [thread:$0]  %s4577_s2, 32, %s41_s14, [#allocation6]  }
  0x14   :  { %s3715_s25 = smov [#allocation8]   ;;  %s3716_s27 = smov [#allocation2]  }
  0x15   :  { %s63_s26 = sshll.u32 %s3715_s25, 4  ;;  %s25_s28 = sshll.u32 %s3716_s27, 4  ;;  %s64_s26 = int_to_ptr.vmem [resolvable:$true] %s63_s26  ;;  %s26_s28 = int_to_ptr.vmem [resolvable:$true] %s25_s28 }
  0x16   :  { %s3572_s11 = scalar_lea.hbm %s4580_s5, 512 }
  0x17   :  { %p3573_p8 = scmp.ne.s32.totalorder %s4580_s5, %s3572_s11  ;;  %p3576_p9 = scmp.lt.u32.totalorder %s3572_s11, %s4580_s5 }
  0x19   :  { %p3578_p10 = pnand %p3576_p9, %p3573_p8 }
  0x1b   :  { %3581 = shalt.err (!%p3578_p10)
}
  0x1c   :  { %s3582_s2 = scalar_lea.vmem %s64_s26, 512  ;;  %p3587_p12 = scmp.lt.s32.totalorder %s64_s26, %s64_s26 }
  0x1d   :  { %p3583_p11 = scmp.ne.s32.totalorder %s64_s26, %s3582_s2  ;;  %p3588_p13 = scmp.lt.s32.totalorder %s3582_s2, %s3582_s2 }
  0x1f   :  { %p3589_p0 = por %p3588_p13, %p3587_p12 }
  0x21   :  { %p3590_p1 = pnand %p3589_p0, %p3583_p11 }
  0x23   :  { %3593 = shalt.err (!%p3590_p1)
}
  0x24   :  { %s3717_s14 = smov 128   ;;  %s3718_s17 = smov 8  }
  0x25   :  { %69 = dma.hbm_to_vmem [thread:$0]  %s4580_s5, 512, %s64_s26, [#allocation9], %s3717_s14, %s3717_s14, %s3718_s17  }
  0x26   :  { %s3594_s22 = scalar_lea.hbm %s4575_s0, 256 }
  0x27   :  { %p3595_p2 = scmp.ne.s32.totalorder %s4575_s0, %s3594_s22  ;;  %p3598_p3 = scmp.lt.u32.totalorder %s3594_s22, %s4575_s0 }
  0x29   :  { %p3600_p4 = pnand %p3598_p3, %p3595_p2 }
  0x2b   :  { %3603 = shalt.err (!%p3600_p4)
}
  0x2c   :  { %s3604_s29 = scalar_lea.vmem %s26_s28, 256  ;;  %p3609_p6 = scmp.lt.s32.totalorder %s26_s28, %s26_s28 }
  0x2d   :  { %p3605_p5 = scmp.ne.s32.totalorder %s26_s28, %s3604_s29  ;;  %p3610_p7 = scmp.lt.s32.totalorder %s3604_s29, %s3604_s29 }
  0x2f   :  { %p3611_p8 = por %p3610_p7, %p3609_p6 }
  0x31   :  { %p3612_p9 = pnand %p3611_p8, %p3605_p5 }
  0x33   :  { %3615 = shalt.err (!%p3612_p9)
}
  0x34   :  { %31 = dma.hbm_to_vmem [thread:$0]  %s4575_s0, 256, %s26_s28, [#allocation3], %s3717_s14, %s3717_s14, %s3718_s17  }
  0x35   :  { %s3719_s30 = smov [#allocation7]   ;;  %s3720_s12 = smov [#allocation10]  }
  0x36   :  { %s51_s11 = sshll.u32 %s3719_s30, 4  ;;  %s75_s13 = sshll.u32 %s3720_s12, 4  ;;  %s52_s11 = int_to_ptr.vmem [resolvable:$true] %s51_s11  ;;  %s76_s13 = int_to_ptr.vmem [resolvable:$true] %s75_s13 }
  0x37   :  { %s3616_s2 = scalar_lea.hbm %s4579_s4, 512 }
  0x38   :  { %p3617_p10 = scmp.ne.s32.totalorder %s4579_s4, %s3616_s2  ;;  %p3620_p11 = scmp.lt.u32.totalorder %s3616_s2, %s4579_s4 }
  0x3a   :  { %p3622_p12 = pnand %p3620_p11, %p3617_p10 }
  0x3c   :  { %3625 = shalt.err (!%p3622_p12)
}
  0x3d   :  { %s3626_s0 = scalar_lea.vmem %s52_s11, 512  ;;  %p3631_p0 = scmp.lt.s32.totalorder %s52_s11, %s52_s11 }
  0x3e   :  { %p3627_p13 = scmp.ne.s32.totalorder %s52_s11, %s3626_s0  ;;  %p3632_p1 = scmp.lt.s32.totalorder %s3626_s0, %s3626_s0 }
  0x40   :  { %p3633_p2 = por %p3632_p1, %p3631_p0 }
  0x42   :  { %p3634_p3 = pnand %p3633_p2, %p3627_p13 }
  0x44   :  { %3637 = shalt.err (!%p3634_p3)
}
  0x45   :  { %57 = dma.hbm_to_vmem [thread:$0]  %s4579_s4, 512, %s52_s11, [#allocation6], %s3717_s14, %s3717_s14, %s3718_s17  }
  0x46   :  { %s3638_s25 = scalar_lea.hbm %s4581_s6, 512 }
  0x47   :  { %p3639_p4 = scmp.ne.s32.totalorder %s4581_s6, %s3638_s25  ;;  %p3642_p5 = scmp.lt.u32.totalorder %s3638_s25, %s4581_s6 }
  0x49   :  { %p3644_p6 = pnand %p3642_p5, %p3639_p4 }
  0x4b   :  { %3647 = shalt.err (!%p3644_p6)
}
  0x4c   :  { %s3648_s30 = scalar_lea.vmem %s76_s13, 512  ;;  %p3653_p8 = scmp.lt.s32.totalorder %s76_s13, %s76_s13 }
  0x4d   :  { %p3649_p7 = scmp.ne.s32.totalorder %s76_s13, %s3648_s30  ;;  %p3654_p9 = scmp.lt.s32.totalorder %s3648_s30, %s3648_s30 }
  0x4f   :  { %p3655_p10 = por %p3654_p9, %p3653_p8 }
  0x51   :  { %p3656_p11 = pnand %p3655_p10, %p3649_p7 }
  0x53   :  { %3659 = shalt.err (!%p3656_p11)
}
  0x54   :  { %81 = dma.hbm_to_vmem [thread:$0]  %s4581_s6, 512, %s76_s13, [#allocation9], %s3717_s14, %s3717_s14, %s3718_s17  }
  0x55   :  { %s3721_s12 = smov [#allocation11]   ;;  %s3660_s18 = scalar_lea.hbm %s4582_s7, 512 }
  0x56   :  { %s87_s15 = sshll.u32 %s3721_s12, 4  ;;  %p3661_p12 = scmp.ne.s32.totalorder %s4582_s7, %s3660_s18  ;;  %s88_s15 = int_to_ptr.vmem [resolvable:$true] %s87_s15 }
  0x57   :  { %p3664_p13 = scmp.lt.u32.totalorder %s3660_s18, %s4582_s7 }
  0x59   :  { %p3666_p0 = pnand %p3664_p13, %p3661_p12 }
  0x5b   :  { %3669 = shalt.err (!%p3666_p0)
}
  0x5c   :  { %s3670_s28 = scalar_lea.vmem %s88_s15, 512  ;;  %p3675_p2 = scmp.lt.s32.totalorder %s88_s15, %s88_s15 }
  0x5d   :  { %p3671_p1 = scmp.ne.s32.totalorder %s88_s15, %s3670_s28  ;;  %p3676_p3 = scmp.lt.s32.totalorder %s3670_s28, %s3670_s28 }
  0x5f   :  { %p3677_p4 = por %p3676_p3, %p3675_p2 }
  0x61   :  { %p3678_p5 = pnand %p3677_p4, %p3671_p1 }
  0x63   :  { %3681 = shalt.err (!%p3678_p5)
}
  0x64   :  { %93 = dma.hbm_to_vmem [thread:$0]  %s4582_s7, 512, %s88_s15, [#allocation12], %s3717_s14, %s3717_s14, %s3718_s17  }
  0x65   :  { %3704 = dma.done.wait [#allocation3], 256  }
  0x66   :  { %3705 = vsyncadd [#allocation3], 4294967040 }
  0x67   :  { %3706 = dma.done.wait [#allocation6], 544  }
  0x68   :  { %3707 = vsyncadd [#allocation6], 4294966752 }
  0x69   :  { %3708 = dma.done.wait [#allocation9], 1024  }
  0x6a   :  { %3709 = vsyncadd [#allocation9], 4294966272 }
  0x6b   :  { %3710 = dma.done.wait [#allocation12], 512  }
  0x6c   :  { %3711 = vsyncadd [#allocation12], 4294966784  ;;  %v116_v0 = vld [vmem:[#allocation2] sm:$0xff]  ;;  %vm120_vm0 = vcmask 261120   ;;  %v117_v1 = vld [vmem:[#allocation2 + $0x8] sm:$0xff]  ;;  %vm277_vm1 = vcmask 523264  }
  0x6d   :  { %v118_v2 = vmul.f32 %v116_v0, %v116_v0  ;;  %v119_v3 = vmul.f32 %v117_v1, %v117_v1  ;;  %v136_v34 = vld [vmem:[#allocation11] sm:$0xff]  ;;  %v137_v35 = vld [vmem:[#allocation11 + $0x8] sm:$0xff]  ;;  %v138_v37 = vld [vmem:[#allocation11 + $0x10] sm:$0xff]  ;;  %s3723_s13 = smov 96   ;;  %s3724_s7 = smov 112   ;;  %vm626_vm2 = vcmask 130048  }
  0x6e   :  { %v3292_v36 = vpack.c.bf16 %v137_v35, %v136_v34  ;;  %v139_v38 = vld [vmem:[#allocation11 + $0x18] sm:$0xff]  ;;  %s3725_s24 = smov 40   ;;  %s3726_s25 = smov 56   ;;  %vm3734_vm3 = vmmov 0   ;;  %vm691_vm4 = vcmask 64512  }
  0x6f   :  { %v121_v4 = vsel %vm120_vm0, %v118_v2, 0.0  ;;  %v124_v5 = vsel %vm120_vm0, %v119_v3, 0.0  ;;  %v3296_v39 = vpack.c.bf16 %v139_v38, %v138_v37  ;;  %s3728_s27 = smov 32   ;;  %s3729_s29 = smov 48  }
  0x70   :  { %122 = vadd.xlane.f32.xlu0 %v121_v4  ;;  %3293 = vmatprep.subr.bf16.mxu0 %v3292_v36  ;;  %s3730_s5 = smov 16   ;;  %s3731_s26 = smov 120  }
  0x71   :  { %3295 = vmatpush3.bf16.msra.mxu0 %v3292_v36  ;;  %s3732_s15 = smov 104  }
  0x72   :  { %3297 = vmatprep.subr.bf16.mxu0 %v3296_v39 }
  0x74   :  { %125 = vadd.xlane.f32.xlu0 %v124_v5 }
  0x75   :  { %3299 = vmatpush3.bf16.msra.mxu0 %v3296_v39 }
  0xfd   :  { %v123_v6 = vpop.xlane.xlu0 %122 }
  0xfe   :  { %v128_v7 = vmul.f32 0.03125, %v123_v6 }
 0x100   :  { %v130_v8 = vadd.f32 1.1920929e-07, %v128_v7 }
 0x101   :  { %v126_v9 = vpop.xlane.xlu0 %125 }
 0x102   :  { %3404 = vrsqrt.f32 %v130_v8  ;;  %v129_v10 = vmul.f32 0.03125, %v126_v9 }
 0x104   :  { %v131_v11 = vadd.f32 1.1920929e-07, %v129_v10 }
 0x106   :  { %3406 = vrsqrt.f32 %v131_v11 }
 0x10c   :  { %v3405_v12 = vpop.eup %3404 }
 0x10d   :  { %v134_v13 = vmul.f32 %v3405_v12, %v116_v0 }
 0x10f   :  { %v140_v14 = vmul.f32 %v134_v13, %v134_v13 }
 0x110   :  { %v3407_v15 = vpop.eup %3406 }
 0x111   :  { %v142_v16 = vsel %vm120_vm0, %v140_v14, 0.0  ;;  %v135_v17 = vmul.f32 %v3407_v15, %v117_v1 }
 0x112   :  { %143 = vadd.xlane.f32.xlu1 %v142_v16 }
 0x113   :  { %v141_v18 = vmul.f32 %v135_v17, %v135_v17 }
 0x115   :  { %v145_v19 = vsel %vm120_vm0, %v141_v18, 0.0 }
 0x116   :  { %146 = vadd.xlane.f32.xlu1 %v145_v19 }
 0x19f   :  { %v144_v20 = vpop.xlane.xlu1 %143 }
 0x1a0   :  { %v148_v21 = vmul.f32 0.03125, %v144_v20  ;;  %v267_v20 = vld [vmem:[%s4583_s8] sm:$0xff] }
 0x1a2   :  { %v150_v22 = vadd.f32 1.1920929e-07, %v148_v21  ;;  %v268_v21 = vld [vmem:[%s4583_s8 + $0x8] sm:$0xff] }
 0x1a3   :  { %v147_v23 = vpop.xlane.xlu1 %146 }
 0x1a4   :  { %3408 = vrsqrt.f32 %v150_v22  ;;  %v149_v24 = vmul.f32 0.03125, %v147_v23  ;;  %v3300_v22 = vpack.c.bf16 %v268_v21, %v267_v20  ;;  %v269_v23 = vld [vmem:[%s4583_s8 + $0x10] sm:$0xff] }
 0x1a6   :  { %v151_v25 = vadd.f32 1.1920929e-07, %v149_v24  ;;  %3301 = vmatprep.subr.bf16.mxu1 %v3300_v22  ;;  %v270_v24 = vld [vmem:[%s4583_s8 + $0x18] sm:$0xff] }
 0x1a7   :  { %3303 = vmatpush3.bf16.msra.mxu1 %v3300_v22 }
 0x1a8   :  { %3410 = vrsqrt.f32 %v151_v25  ;;  %v3304_v25 = vpack.c.bf16 %v270_v24, %v269_v23 }
 0x1aa   :  { %3305 = vmatprep.subr.bf16.mxu1 %v3304_v25 }
 0x1ab   :  { %3307 = vmatpush3.bf16.msra.mxu1 %v3304_v25 }
 0x1ae   :  { %v3409_v26 = vpop.eup %3408 }
 0x1af   :  { %v154_v27 = vmul.f32 %v3409_v26, %v134_v13  ;;  %v271_v26 = vld [vmem:[%s4583_s8 + $0x20] sm:$0xff] }
 0x1b1   :  { %v156_v28 = vand.u32 2147483647, %v154_v27 }
 0x1b2   :  { %v3411_v29 = vpop.eup %3410 }
 0x1b3   :  { %v158_v30 = vsel %vm120_vm0, %v156_v28, -inf  ;;  %v155_v31 = vmul.f32 %v3411_v29, %v135_v17  ;;  %v273_v29 = vld [vmem:[%s4583_s8 + $0x30] sm:$0xff] }
 0x1b4   :  { %159 = vmax.xlane.f32.xlu0 %v158_v30  ;;  %v274_v30 = vld [vmem:[%s4583_s8 + $0x38] sm:$0xff] }
 0x1b5   :  { %v157_v32 = vand.u32 2147483647, %v155_v31 }
 0x1b7   :  { %v161_v33 = vsel %vm120_vm0, %v157_v32, -inf  ;;  %v537_v32 = vld [vmem:[%s4578_s3] sm:$0xff] }
 0x1b8   :  { %162 = vmax.xlane.f32.xlu1 %v161_v33  ;;  %v538_v33 = vld [vmem:[%s4578_s3 + $0x8] sm:$0xff] }
 0x1b9   :  { %v3332_v34 = vpack.c.bf16 %v538_v33, %v537_v32 }
 0x241   :  { %v160_v40 = vpop.xlane.xlu0 %159 }
 0x242   :  { %v164_v41 = vmax.f32 %v160_v40, 1e-05 }
 0x244   :  { %3412 = vrcp.f32 %v164_v41 }
 0x245   :  { %v163_v42 = vpop.xlane.xlu1 %162 }
 0x246   :  { %v165_v43 = vmax.f32 %v163_v42, 1e-05 }
 0x248   :  { %3414 = vrcp.f32 %v165_v43 }
 0x24e   :  { %v3413_v44 = vpop.eup %3412 }
 0x24f   :  { %v167_v45 = vmul.f32 127.0, %v3413_v44 }
 0x251   :  { %v170_v46 = vmul.f32 %v167_v45, %v154_v27  ;;  %3416 = vrcp.f32 %v167_v45  ;;  %v272_v27 = vld [vmem:[%s4583_s8 + $0x28] sm:$0xff] }
 0x252   :  { %v3415_v47 = vpop.eup %3414  ;;  %v3308_v28 = vpack.c.bf16 %v272_v27, %v271_v26 }
 0x253   :  { %v169_v48 = vmul.f32 127.0, %v3415_v47  ;;  %v3370_v49 = vround.rtne.f32 %v170_v46 }
 0x254   :  { %3309 = vmatprep.subr.bf16.mxu1 %v3308_v28 }
 0x255   :  { %v171_v50 = vmul.f32 %v169_v48, %v155_v31  ;;  %3418 = vrcp.f32 %v169_v48  ;;  %v174_v51 = vmax.f32 %v3370_v49, -128.0  ;;  %3311 = vmatpush3.bf16.msra.mxu1 %v3308_v28  ;;  %v3312_v31 = vpack.c.bf16 %v274_v30, %v273_v29 }
 0x257   :  { %v3371_v52 = vround.rtne.f32 %v171_v50  ;;  %v176_v54 = vmin.f32 %v174_v51, 127.0  ;;  %3313 = vmatprep.subr.bf16.mxu1 %v3312_v31  ;;  %v539_v51 = vld [vmem:[%s4578_s3 + $0x10] sm:$0xff] }
 0x259   :  { %v175_v53 = vmax.f32 %v3371_v52, -128.0  ;;  %3315 = vmatpush3.bf16.msra.mxu1 %v3312_v31  ;;  %v540_v52 = vld [vmem:[%s4578_s3 + $0x18] sm:$0xff]  ;;  %s3722_s3 = smov 80  }
 0x25a   :  { %3333 = vmatprep.subr.bf16.mxu1 %v3332_v34 }
 0x25b   :  { %v3417_v55 = vpop.eup %3416  ;;  %v177_v57 = vmin.f32 %v175_v53, 127.0 }
 0x25c   :  { %v3886_v56 = vmul.f32 %v3417_v55, %v176_v54 }
 0x25e   :  { %3127 = vmatprep.mubr.msk.f32.mxu0 %vm120_vm0, %v3886_v56 }
 0x25f   :  { %v3419_v58 = vpop.eup %3418 }
 0x260   :  { %v3890_v59 = vmul.f32 %v3419_v58, %v177_v57  ;;  %v3336_v58 = vpack.c.bf16 %v540_v52, %v539_v51 }
 0x262   :  { %3128 = vmatmul.mubr.msk.f32.vlgmr.msra.gmra.mrb[0].mxu0 %vm120_vm0, %v3890_v59 }
 0x335   :  { %v3129_v60 = vpop.f32.mrb[0].mxu0 }
 0x336   :  { %v264_v61 = vmax.f32 %v3129_v60, 0.0  ;;  %v254_v62 = vpop.f32.mrb[1].mxu0 }
 0x337   :  { %v263_v63 = vmax.f32 %v254_v62, 0.0 }
 0x338   :  { %v266_v0 = vmul.f32 %v264_v61, %v264_v61 }
 0x339   :  { %v265_v1 = vmul.f32 %v263_v63, %v263_v63 }
 0x33a   :  { %v276_v2 = vmul.f32 %v266_v0, %v266_v0 }
 0x33b   :  { %v275_v3 = vmul.f32 %v265_v1, %v265_v1 }
 0x33c   :  { %v281_v4 = vsel %vm277_vm1, %v276_v2, 0.0 }
 0x33d   :  { %282 = vadd.xlane.f32.xlu1 %v281_v4  ;;  %v278_v5 = vsel %vm277_vm1, %v275_v3, 0.0 }
 0x33e   :  { %279 = vadd.xlane.f32.xlu0 %v278_v5 }
 0x3ca   :  { %v283_v6 = vpop.xlane.xlu1 %282 }
 0x3cb   :  { %v286_v7 = vmul.f32 0.015625, %v283_v6  ;;  %v280_v8 = vpop.xlane.xlu0 %279 }
 0x3cc   :  { %v285_v9 = vmul.f32 0.015625, %v280_v8 }
 0x3cd   :  { %v288_v10 = vadd.f32 1.1920929e-07, %v286_v7 }
 0x3ce   :  { %v287_v11 = vadd.f32 1.1920929e-07, %v285_v9 }
 0x3cf   :  { %3420 = vrsqrt.f32 %v288_v10  ;;  %v620_v10 = vlaneseq }
 0x3d0   :  { %3422 = vrsqrt.f32 %v287_v11 }
 0x3d1   :  { %v3971_v11 = vshrl.u32 %v620_v10, 7 }
 0x3d9   :  { %v3421_v12 = vpop.eup %3420 }
 0x3da   :  { %v3423_v13 = vpop.eup %3422  ;;  %v292_v14 = vmul.f32 %v3421_v12, %v266_v0  ;;  %v658_v12 = vsub.s32 0, %v3971_v11 }
 0x3db   :  { %v291_v15 = vmul.f32 %v3423_v13, %v265_v1  ;;  %v535_v13 = vld [vmem:[%s4576_s1] sm:$0x3]  ;;  %s3727_s1 = smov 24  }
 0x3dc   :  { %v294_v16 = vand.u32 2147483647, %v292_v14 }
 0x3dd   :  { %v293_v17 = vand.u32 2147483647, %v291_v15 }
 0x3de   :  { %v298_v18 = vsel %vm277_vm1, %v294_v16, -inf }
 0x3df   :  { %299 = vmax.xlane.f32.xlu1 %v298_v18  ;;  %v295_v19 = vsel %vm277_vm1, %v293_v17, -inf  ;;  %v927_v17 = vsub.s32 1, %v3971_v11 }
 0x3e0   :  { %296 = vmax.xlane.f32.xlu0 %v295_v19 }
 0x3e1   :  { %v928_v18 = vrot.slane %v535_v13, %v927_v17 }
 0x46c   :  { %v300_v35 = vpop.xlane.xlu1 %299 }
 0x46d   :  { %v302_v36 = vmax.f32 %v300_v35, 1e-05  ;;  %v297_v37 = vpop.xlane.xlu0 %296 }
 0x46e   :  { %v301_v38 = vmax.f32 %v297_v37, 1e-05 }
 0x46f   :  { %3424 = vrcp.f32 %v302_v36 }
 0x470   :  { %3426 = vrcp.f32 %v301_v38 }
 0x479   :  { %v3425_v39 = vpop.eup %3424 }
 0x47a   :  { %v3427_v40 = vpop.eup %3426  ;;  %v306_v41 = vmul.f32 127.0, %v3425_v39 }
 0x47b   :  { %v304_v42 = vmul.f32 127.0, %v3427_v40 }
 0x47c   :  { %v308_v43 = vmul.f32 %v306_v41, %v292_v14  ;;  %3428 = vrcp.f32 %v306_v41  ;;  %v536_v14 = vld [vmem:[#allocation5] sm:$0x3] }
 0x47d   :  { %3430 = vrcp.f32 %v304_v42  ;;  %v307_v44 = vmul.f32 %v304_v42, %v291_v15  ;;  %v3977_v15 = vrot.slane %v535_v13, %v658_v12  ;;  %v3979_v16 = vrot.slane %v536_v14, %v658_v12 }
 0x47e   :  { %v3373_v45 = vround.rtne.f32 %v308_v43  ;;  %v937_v19 = vrot.slane %v536_v14, %v927_v17 }
 0x47f   :  { %v3372_v46 = vround.rtne.f32 %v307_v44 }
 0x480   :  { %v312_v48 = vmax.f32 %v3373_v45, -128.0 }
 0x481   :  { %v311_v47 = vmax.f32 %v3372_v46, -128.0 }
 0x482   :  { %v314_v54 = vmin.f32 %v312_v48, 127.0 }
 0x483   :  { %v313_v50 = vmin.f32 %v311_v47, 127.0 }
 0x486   :  { %v3429_v49 = vpop.eup %3428 }
 0x487   :  { %v3431_v53 = vpop.eup %3430  ;;  %v318_v57 = vmul.f32 %v3429_v49, %v314_v54 }
 0x488   :  { %v316_v55 = vmul.f32 %v3431_v53, %v313_v50 }
 0x48a   :  { %3146 = vmatprep.mubr.msk.f32.mxu1 %vm277_vm1, %v316_v55 }
 0x48b   :  { %3147 = vmatmul.mubr.msk.f32.vlgmr.msra.gmra.mrb[0].mxu1 %vm277_vm1, %v318_v57 }
 0x48c   :  { %3335 = vmatpush3.bf16.msra.mxu1 %v3332_v34  ;;  %3176 = vmatprep.mubr.msk.f32.mxu1 %vm120_vm0, %v3886_v56 }
 0x48d   :  { %3337 = vmatprep.subr.bf16.mxu1 %v3336_v58 }
 0x490   :  { %3339 = vmatpush3.bf16.msra.mxu1 %v3336_v58 }
 0x493   :  { %3177 = vmatmul.mubr.msk.f32.vlgmr.msra.gmra.mrb[2].mxu1 %vm120_vm0, %v3890_v59 }
 0x55e   :  { %v3148_v60 = vpop.f32.mrb[0].mxu1 }
 0x55f   :  { %v391_v61 = vpop.f32.mrb[1].mxu1  ;;  %v401_v4 = vmax.f32 %v3148_v60, 0.0 }
 0x560   :  { %v400_v2 = vmax.f32 %v391_v61, 0.0 }
 0x561   :  { %v3964_v6 = vmul.f32 %v401_v4, %v401_v4 }
 0x562   :  { %v3960_v3 = vmul.f32 %v400_v2, %v400_v2 }
 0x563   :  { %v413_v8 = vmul.f32 %v3964_v6, %v3964_v6 }
 0x564   :  { %v412_v5 = vmul.f32 %v3960_v3, %v3960_v3 }
 0x565   :  { %v417_v9 = vsel %vm277_vm1, %v413_v8, 0.0 }
 0x566   :  { %v3940_v62 = vpop.f32.mrb[2].mxu1  ;;  %v414_v7 = vsel %vm277_vm1, %v412_v5, 0.0 }
 0x567   :  { %v3944_v63 = vmul.f32 %v3940_v62, %v3940_v62  ;;  %v3946_v0 = vpop.f32.mrb[3].mxu1 }
 0x568   :  { %v3954_v1 = vmul.f32 %v3946_v0, %v3946_v0 }
 0x569   :  { %1427 = vrot.lane.b32.xlu0 %v3944_v63, %s3722_s3  ;;  %1187 = vrot.lane.b32.xlu1 %v3944_v63, %s3723_s13  ;;  %v1179_v20 = vsel %vm626_vm2, %v3944_v63, 0.0 }
 0x56a   :  { %v627_v21 = vsel %vm626_vm2, %v3954_v1, 0.0 }
 0x56d   :  { %1417 = vrot.lane.b32.xlu1 %v3944_v63, %s3724_s7  ;;  %636 = vrot.lane.b32.xlu0 %v3954_v1, %s3723_s13 }
 0x58c   :  { %415 = vadd.xlane.f32.xlu0 %v414_v7 }
 0x591   :  { %418 = vadd.xlane.f32.xlu1 %v417_v9 }
 0x5a2   :  { %711 = vrot.lane.b32.xlu1 %v3977_v15, %s3725_s24  ;;  %697 = vrot.lane.b32.xlu0 %v3979_v16, %s3725_s24  ;;  %s3736_s24 = smov 64  }
 0x5a6   :  { %678 = vrot.lane.b32.xlu1 %v3977_v15, %s3718_s17  ;;  %989 = vrot.lane.b32.xlu0 %v928_v18, %s3726_s25 }
 0x5aa   :  { %975 = vrot.lane.b32.xlu1 %v937_v19, %s3726_s25 }
 0x5ae   :  { %905 = vrot.lane.b32.xlu1 %v3954_v1, %s3722_s3 }
 0x5b2   :  { %895 = vrot.lane.b32.xlu1 %v3954_v1, %s3724_s7 }
 0x5d6   :  { %1180 = vadd.xlane.f32.xlu1 %v1179_v20 }
 0x5da   :  { %628 = vadd.xlane.f32.xlu1 %v627_v21 }
 0x5db   :  { %v1428_v22 = vpop.permute.xlu0 %1427  ;;  %v1188_v23 = vpop.permute.xlu1 %1187 }
 0x5dc   :  { %v1190_v24 = vsel %vm626_vm2, %v1188_v23, 0.0  ;;  %v1430_v25 = vsel %vm626_vm2, %v1428_v22, 0.0 }
 0x5dd   :  { %1191 = vadd.xlane.f32.xlu0 %v1190_v24 }
 0x5df   :  { %v637_v26 = vpop.permute.xlu0 %636  ;;  %v1418_v28 = vpop.permute.xlu1 %1417 }
 0x5e0   :  { %v639_v27 = vsel %vm626_vm2, %v637_v26, 0.0  ;;  %v1420_v29 = vsel %vm626_vm2, %v1418_v28, 0.0 }
 0x5e1   :  { %1431 = vadd.xlane.f32.xlu0 %v1430_v25 }
 0x5e5   :  { %640 = vadd.xlane.f32.xlu0 %v639_v27 }
 0x5eb   :  { %939 = vrot.lane.b32.xlu1 %v937_v19, %s3727_s1 }
 0x60f   :  { %1421 = vadd.xlane.f32.xlu1 %v1420_v29 }
 0x619   :  { %v4016_v38 = vpop.xlane.xlu0 %415 }
 0x61d   :  { %v4018_v39 = vpop.permute.xlu0 %697 }
 0x61e   :  { %v3998_v30 = vpop.xlane.xlu1 %418 }
 0x620   :  { %693 = vrot.lane.b32.xlu1 %v3977_v15, %s3728_s27 }
 0x621   :  { %v4020_v42 = vpop.permute.xlu0 %989 }
 0x622   :  { %v4001_v31 = vpop.permute.xlu1 %711 }
 0x624   :  { %666 = vrot.lane.b32.xlu1 %v3979_v16, %s3718_s17 }
 0x626   :  { %v4005_v32 = vpop.permute.xlu1 %678 }
 0x628   :  { %985 = vrot.lane.b32.xlu1 %v937_v19, %s3729_s29 }
 0x62a   :  { %v4008_v33 = vpop.permute.xlu1 %975 }
 0x62c   :  { %930 = vrot.lane.b32.xlu1 %v928_v18, %s3730_s5 }
 0x62e   :  { %v906_v34 = vpop.permute.xlu1 %905 }
 0x62f   :  { %v908_v35 = vsel %vm626_vm2, %v906_v34, 0.0 }
 0x630   :  { %909 = vadd.xlane.f32.xlu0 %v908_v35 }
 0x632   :  { %v896_v36 = vpop.permute.xlu1 %895 }
 0x633   :  { %v898_v37 = vsel %vm626_vm2, %v896_v36, 0.0 }
 0x634   :  { %899 = vadd.xlane.f32.xlu0 %v898_v37 }
 0x64a   :  { %953 = vrot.lane.b32.xlu0 %v928_v18, %s3727_s1 }
 0x64e   :  { %707 = vrot.lane.b32.xlu0 %v3979_v16, %s3728_s27 }
 0x652   :  { %971 = vrot.lane.b32.xlu0 %v928_v18, %s3729_s29 }
 0x656   :  { %949 = vrot.lane.b32.xlu0 %v937_v19, %s3730_s5 }
 0x663   :  { %v1181_v40 = vpop.xlane.xlu1 %1180 }
 0x664   :  { %v1182_v41 = vmul.f32 0.0625, %v1181_v40 }
 0x666   :  { %v1183_v43 = vadd.f32 1.1920929e-07, %v1182_v41 }
 0x667   :  { %v629_v44 = vpop.xlane.xlu1 %628 }
 0x668   :  { %3432 = vrsqrt.f32 %v1183_v43  ;;  %v631_v45 = vmul.f32 0.0625, %v629_v44 }
 0x66a   :  { %v632_v46 = vadd.f32 1.1920929e-07, %v631_v45  ;;  %v1192_v47 = vpop.xlane.xlu0 %1191 }
 0x66b   :  { %v1193_v48 = vmul.f32 0.0625, %v1192_v47  ;;  %v4052_v17 = vpop.permute.xlu1 %939 }
 0x66c   :  { %3434 = vrsqrt.f32 %v632_v46 }
 0x66d   :  { %v1194_v49 = vadd.f32 1.1920929e-07, %v1193_v48 }
 0x66e   :  { %v1432_v50 = vpop.xlane.xlu0 %1431 }
 0x66f   :  { %3436 = vrsqrt.f32 %v1194_v49  ;;  %v1433_v51 = vmul.f32 0.0625, %v1432_v50 }
 0x671   :  { %v1434_v52 = vadd.f32 1.1920929e-07, %v1433_v51 }
 0x672   :  { %v3433_v53 = vpop.eup %3432  ;;  %v641_v13 = vpop.xlane.xlu0 %640 }
 0x673   :  { %3438 = vrsqrt.f32 %v1434_v52  ;;  %v4023_v54 = vmul.f32 %v3433_v53, %v3940_v62  ;;  %v642_v14 = vmul.f32 0.0625, %v641_v13  ;;  %v420_v52 = vmul.f32 0.015625, %v4016_v38 }
 0x675   :  { %v1216_v55 = vmul.f32 %v4023_v54, %v4005_v32  ;;  %v643_v18 = vadd.f32 1.1920929e-07, %v642_v14  ;;  %v422_v53 = vadd.f32 1.1920929e-07, %v420_v52  ;;  %v407_v52 = vld [vmem:[%s4584_s9 + $0x18] sm:$0xff] }
 0x676   :  { %v3435_v57 = vpop.eup %3434 }
 0x677   :  { %1218 = vrot.lane.b32.xlu1 %v1216_v55, %s3731_s26  ;;  %v4029_v58 = vmul.f32 %v3435_v57, %v3946_v0  ;;  %3440 = vrsqrt.f32 %v643_v18  ;;  %v421_v55 = vmul.f32 0.015625, %v3998_v30 }
 0x679   :  { %v3437_v60 = vpop.eup %3436  ;;  %v681_v61 = vmul.f32 %v4005_v32, %v4029_v58  ;;  %v423_v57 = vadd.f32 1.1920929e-07, %v421_v55  ;;  %v408_v55 = vld [vmem:[%s4584_s9 + $0x20] sm:$0xff] }
 0x67a   :  { %v4034_v2 = vmul.f32 %v3437_v60, %v3940_v62 }
 0x67b   :  { %683 = vrot.lane.b32.xlu0 %v681_v61, %s3731_s26 }
 0x67c   :  { %v1228_v4 = vmul.f32 %v4034_v2, %v4018_v39  ;;  %v1236_v5 = vmul.f32 %v4034_v2, %v4001_v31 }
 0x67d   :  { %v3439_v7 = vpop.eup %3438 }
 0x67e   :  { %1230 = vrot.lane.b32.xlu1 %v1228_v4, %s3731_s26  ;;  %v4043_v8 = vmul.f32 %v3439_v7, %v3940_v62 }
 0x67f   :  { %1238 = vrot.lane.b32.xlu0 %v1236_v5, %s3731_s26 }
 0x680   :  { %v1480_v9 = vmul.f32 %v4043_v8, %v4020_v42  ;;  %v1472_v12 = vmul.f32 %v4043_v8, %v4008_v33 }
 0x681   :  { %v3441_v22 = vpop.eup %3440 }
 0x682   :  { %1482 = vrot.lane.b32.xlu1 %v1480_v9, %s3731_s26  ;;  %v4060_v26 = vmul.f32 %v3441_v22, %v3946_v0 }
 0x683   :  { %1474 = vrot.lane.b32.xlu0 %v1472_v12, %s3731_s26 }
 0x684   :  { %v714_v27 = vmul.f32 %v4001_v31, %v4060_v26  ;;  %v700_v43 = vmul.f32 %v4018_v39, %v4060_v26 }
 0x69c   :  { %v1422_v19 = vpop.xlane.xlu1 %1421 }
 0x69d   :  { %v1423_v20 = vmul.f32 0.0625, %v1422_v19 }
 0x69f   :  { %v1424_v21 = vadd.f32 1.1920929e-07, %v1423_v20 }
 0x6a0   :  { %v4097_v5 = vpop.permute.xlu1 %693 }
 0x6a1   :  { %3442 = vrsqrt.f32 %v1424_v21 }
 0x6a4   :  { %v4105_v12 = vpop.permute.xlu1 %666 }
 0x6a8   :  { %v4110_v14 = vpop.permute.xlu1 %985 }
 0x6ab   :  { %v3443_v23 = vpop.eup %3442 }
 0x6ac   :  { %v4055_v24 = vmul.f32 %v3443_v23, %v3940_v62  ;;  %v4114_v19 = vpop.permute.xlu1 %930  ;;  %v675_v23 = vsub.f32 0.0, %v4029_v58 }
 0x6ae   :  { %v1448_v25 = vmul.f32 %v4055_v24, %v4052_v17 }
 0x6b0   :  { %1450 = vrot.lane.b32.xlu0 %v1448_v25, %s3731_s26 }
 0x6b4   :  { %716 = vrot.lane.b32.xlu0 %v714_v27, %s3731_s26  ;;  %v669_v27 = vmul.f32 %v4105_v12, %v4029_v58 }
 0x6bd   :  { %v910_v28 = vpop.xlane.xlu0 %909 }
 0x6be   :  { %v911_v29 = vmul.f32 0.0625, %v910_v28 }
 0x6c0   :  { %v912_v34 = vadd.f32 1.1920929e-07, %v911_v29  ;;  %v676_v29 = vmul.f32 %v675_v23, %v3979_v16 }
 0x6c1   :  { %v900_v35 = vpop.xlane.xlu0 %899 }
 0x6c2   :  { %3444 = vrsqrt.f32 %v912_v34  ;;  %v901_v36 = vmul.f32 0.0625, %v900_v35  ;;  %v1234_v34 = vsub.f32 0.0, %v4034_v2  ;;  %v1208_v35 = vmul.f32 %v4023_v54, %v4105_v12 }
 0x6c4   :  { %v902_v37 = vadd.f32 1.1920929e-07, %v901_v36 }
 0x6c5   :  { %v4066_v40 = vpop.permute.xlu0 %953 }
 0x6c6   :  { %3446 = vrsqrt.f32 %v902_v37  ;;  %v1456_v41 = vmul.f32 %v4055_v24, %v4066_v40 }
 0x6c7   :  { %3448 = vrsqrt.f32 %v422_v53 }
 0x6c8   :  { %1458 = vrot.lane.b32.xlu1 %v1456_v41, %s3731_s26  ;;  %3450 = vrsqrt.f32 %v423_v57  ;;  %v409_v57 = vld [vmem:[%s4584_s9 + $0x28] sm:$0xff] }
 0x6c9   :  { %v4107_v13 = vpop.permute.xlu0 %707 }
 0x6cc   :  { %v3445_v44 = vpop.eup %3444  ;;  %702 = vrot.lane.b32.xlu1 %v700_v43, %s3731_s26  ;;  %v1227_v43 = vmul.f32 %v4034_v2, %v4097_v5  ;;  %v406_v2 = vld [vmem:[%s4584_s9 + $0x10] sm:$0xff] }
 0x6cd   :  { %v4075_v45 = vmul.f32 %v3445_v44, %v3946_v0  ;;  %v4112_v18 = vpop.permute.xlu0 %971  ;;  %v1235_v44 = vmul.f32 %v1234_v34, %v4107_v13  ;;  %v3320_v53 = vpack.c.bf16 %v407_v52, %v406_v2  ;;  %v1478_v2 = vsub.f32 0.0, %v4043_v8 }
 0x6cf   :  { %v992_v46 = vmul.f32 %v4020_v42, %v4075_v45  ;;  %v978_v47 = vmul.f32 %v4008_v33, %v4075_v45 }
 0x6d0   :  { %v3447_v48 = vpop.eup %3446 }
 0x6d1   :  { %994 = vrot.lane.b32.xlu0 %v992_v46, %s3731_s26  ;;  %980 = vrot.lane.b32.xlu1 %v978_v47, %s3731_s26  ;;  %v4084_v49 = vmul.f32 %v3447_v48, %v3946_v0  ;;  %v3449_v60 = vpop.eup %3448  ;;  %v4117_v20 = vpop.permute.xlu0 %949  ;;  %v404_v48 = vld [vmem:[%s4584_s9] sm:$0xff] }
 0x6d2   :  { %v4095_v61 = vmul.f32 %v3449_v60, %v3960_v3  ;;  %v3451_v4 = vpop.eup %3450  ;;  %v3324_v60 = vpack.c.bf16 %v409_v57, %v408_v55  ;;  %v1479_v55 = vmul.f32 %v1478_v2, %v4110_v14  ;;  %v1471_v57 = vmul.f32 %v4043_v8, %v4112_v18 }
 0x6d3   :  { %v956_v50 = vmul.f32 %v4066_v40, %v4084_v49  ;;  %v942_v51 = vmul.f32 %v4052_v17, %v4084_v49  ;;  %v4101_v9 = vmul.f32 %v3451_v4, %v3964_v6  ;;  %v1214_v6 = vsub.f32 0.0, %v4023_v54  ;;  %v410_v4 = vld [vmem:[%s4584_s9 + $0x30] sm:$0xff] }
 0x6d4   :  { %v428_v7 = vand.u32 2147483647, %v4095_v61 }
 0x6d5   :  { %958 = vrot.lane.b32.xlu0 %v956_v50, %s3731_s26  ;;  %944 = vrot.lane.b32.xlu1 %v942_v51, %s3731_s26  ;;  %v429_v30 = vand.u32 2147483647, %v4101_v9  ;;  %v1215_v22 = vmul.f32 %v1214_v6, %v3979_v16  ;;  %v405_v50 = vld [vmem:[%s4584_s9 + $0x8] sm:$0xff]  ;;  %v706_v6 = vsub.f32 0.0, %v4060_v26 }
 0x6d6   :  { %v430_v38 = vsel %vm277_vm1, %v428_v7, -inf  ;;  %v3316_v51 = vpack.c.bf16 %v405_v50, %v404_v48  ;;  %v411_v7 = vld [vmem:[%s4584_s9 + $0x38] sm:$0xff]  ;;  %s3735_s9 = smov 88  }
 0x6d7   :  { %v433_v3 = vsel %vm277_vm1, %v429_v30, -inf }
 0x6d8   :  { %3317 = vmatprep.subr.bf16.mxu0 %v3316_v51 }
 0x6d9   :  { %3319 = vmatpush3.bf16.msra.mxu0 %v3316_v51 }
 0x6da   :  { %3321 = vmatprep.subr.bf16.mxu0 %v3320_v53 }
 0x6dd   :  { %3323 = vmatpush3.bf16.msra.mxu0 %v3320_v53 }
 0x6de   :  { %3325 = vmatprep.subr.bf16.mxu0 %v3324_v60 }
 0x6e1   :  { %3327 = vmatpush3.bf16.msra.mxu0 %v3324_v60 }
 0x6e9   :  { %v1219_v21 = vpop.permute.xlu1 %1218 }
 0x6ea   :  { %v1221_v28 = vadd.f32 %v1219_v21, %v1215_v22  ;;  %v710_v21 = vmul.f32 %v4107_v13, %v706_v6 }
 0x6ed   :  { %v684_v25 = vpop.permute.xlu0 %683 }
 0x6ee   :  { %v686_v36 = vadd.f32 %v684_v25, %v676_v29  ;;  %v3733_v25 = vmov 0.0   ;;  %v696_v29 = vmul.f32 %v4097_v5, %v4060_v26  ;;  %v933_v26 = vmul.f32 %v4114_v19, %v4084_v49 }
 0x6ef   :  { %3179 = vmatprep.subr.mxu1 %v3733_v25  ;;  %3181 = vmatprep.mubr.msk.f32.mxu1 %vm3734_vm3, %v3733_v25 }
 0x6f0   :  { %v1231_v37 = vpop.permute.xlu1 %1230 }
 0x6f1   :  { %v1239_v41 = vpop.permute.xlu0 %1238  ;;  %v1233_v46 = vadd.f32 %v1231_v37, %v1227_v43  ;;  %v974_v37 = vmul.f32 %v4112_v18, %v4075_v45  ;;  %v948_v43 = vsub.f32 0.0, %v4084_v49  ;;  %v1454_v49 = vsub.f32 0.0, %v4055_v24 }
 0x6f2   :  { %v1241_v47 = vadd.f32 %v1239_v41, %v1235_v44 }
 0x6f3   :  { %v952_v50 = vmul.f32 %v4117_v20, %v948_v43 }
 0x6f4   :  { %431 = vmax.xlane.f32.xlu0 %v430_v38  ;;  %v3328_v38 = vpack.c.bf16 %v411_v7, %v410_v4  ;;  %v1447_v7 = vmul.f32 %v4055_v24, %v4114_v19 }
 0x6f5   :  { %v1475_v30 = vpop.permute.xlu0 %1474 }
 0x6f6   :  { %3329 = vmatprep.subr.bf16.mxu0 %v3328_v38  ;;  %v1477_v4 = vadd.f32 %v1475_v30, %v1471_v57 }
 0x6f7   :  { %3331 = vmatpush3.bf16.msra.mxu0 %v3328_v38  ;;  %v1455_v38 = vmul.f32 %v1454_v49, %v4117_v20 }
 0x6f8   :  { %3189 = vmatprep.subr.mxu0 %v3733_v25 }
 0x6f9   :  { %434 = vmax.xlane.f32.xlu1 %v433_v3 }
 0x70a   :  { %671 = vrot.lane.b32.xlu0 %v669_v27, %s3731_s26  ;;  %1223 = vrot.lane.b32.xlu1 %v1221_v28, %s3718_s17  ;;  %v1483_v27 = vpop.permute.xlu1 %1482 }
 0x70b   :  { %v1485_v60 = vadd.f32 %v1483_v27, %v1479_v55 }
 0x70e   :  { %1210 = vrot.lane.b32.xlu0 %v1208_v35, %s3731_s26  ;;  %688 = vrot.lane.b32.xlu1 %v686_v36, %s3718_s17  ;;  %v984_v35 = vsub.f32 0.0, %v4075_v45 }
 0x710   :  { %v988_v41 = vmul.f32 %v4110_v14, %v984_v35 }
 0x712   :  { %1243 = vrot.lane.b32.xlu0 %v1233_v46, %s3723_s13  ;;  %1247 = vrot.lane.b32.xlu1 %v1241_v47, %s3732_s15 }
 0x722   :  { %v1451_v3 = vpop.permute.xlu0 %1450 }
 0x723   :  { %v1453_v6 = vadd.f32 %v1451_v3, %v1447_v7 }
 0x726   :  { %v717_v22 = vpop.permute.xlu0 %716 }
 0x727   :  { %v719_v23 = vadd.f32 %v717_v22, %v710_v21 }
 0x729   :  { %725 = vrot.lane.b32.xlu1 %v719_v23, %s3732_s15 }
 0x73a   :  { %v1459_v28 = vpop.permute.xlu1 %1458 }
 0x73b   :  { %v1461_v21 = vadd.f32 %v1459_v28, %v1455_v38 }
 0x73e   :  { %v703_v34 = vpop.permute.xlu1 %702 }
 0x73f   :  { %v705_v36 = vadd.f32 %v703_v34, %v696_v29 }
 0x741   :  { %721 = vrot.lane.b32.xlu0 %v705_v36, %s3723_s13 }
 0x743   :  { %v981_v44 = vpop.permute.xlu1 %980  ;;  %v995_v46 = vpop.permute.xlu0 %994 }
 0x744   :  { %v983_v47 = vadd.f32 %v981_v44, %v974_v37  ;;  %v997_v48 = vadd.f32 %v995_v46, %v988_v41 }
 0x746   :  { %999 = vrot.lane.b32.xlu0 %v983_v47, %s3722_s3  ;;  %1003 = vrot.lane.b32.xlu1 %v997_v48, %s3735_s9 }
 0x747   :  { %v945_v51 = vpop.permute.xlu1 %944  ;;  %v959_v45 = vpop.permute.xlu0 %958 }
 0x748   :  { %v947_v52 = vadd.f32 %v945_v51, %v933_v26  ;;  %v961_v53 = vadd.f32 %v959_v45, %v952_v50  ;;  %v660_v45 = vmul.f32 %v3977_v15, %v4029_v58  ;;  %v1207_v58 = vmul.f32 %v4023_v54, %v3977_v15 }
 0x74a   :  { %963 = vrot.lane.b32.xlu0 %v947_v52, %s3724_s7  ;;  %967 = vrot.lane.b32.xlu1 %v961_v53, %s3731_s26 }
 0x74e   :  { %1487 = vrot.lane.b32.xlu0 %v1477_v4, %s3722_s3  ;;  %1491 = vrot.lane.b32.xlu1 %v1485_v60, %s3735_s9 }
 0x752   :  { %1463 = vrot.lane.b32.xlu0 %v1453_v6, %s3724_s7  ;;  %1467 = vrot.lane.b32.xlu1 %v1461_v21, %s3731_s26 }
 0x756   :  { %646 = vrot.lane.b32.xlu0 %v3954_v1, %s3736_s24  ;;  %915 = vrot.lane.b32.xlu1 %v3954_v1, %s3729_s29 }
 0x75a   :  { %1197 = vrot.lane.b32.xlu0 %v3944_v63, %s3736_s24  ;;  %1437 = vrot.lane.b32.xlu1 %v3944_v63, %s3729_s29 }
 0x781   :  { %v432_v8 = vpop.xlane.xlu0 %431 }
 0x782   :  { %v436_v24 = vmax.f32 %v432_v8, 1e-05 }
 0x784   :  { %3452 = vrcp.f32 %v436_v24 }
 0x785   :  { %v672_v48 = vpop.permute.xlu0 %671 }
 0x786   :  { %v435_v30 = vpop.xlane.xlu1 %434  ;;  %v674_v55 = vadd.f32 %v672_v48, %v660_v45 }
 0x787   :  { %v437_v3 = vmax.f32 %v435_v30, 1e-05 }
 0x789   :  { %3454 = vrcp.f32 %v437_v3  ;;  %v1211_v26 = vpop.permute.xlu0 %1210 }
 0x78a   :  { %v1213_v6 = vadd.f32 %v1211_v26, %v1207_v58 }
 0x78d   :  { %v1244_v50 = vpop.permute.xlu0 %1243 }
 0x78e   :  { %v3453_v22 = vpop.eup %3452 }
 0x78f   :  { %v439_v23 = vmul.f32 127.0, %v3453_v22 }
 0x791   :  { %v442_v27 = vmul.f32 %v439_v23, %v4095_v61  ;;  %3456 = vrcp.f32 %v439_v23  ;;  %v1224_v61 = vpop.permute.xlu1 %1223 }
 0x792   :  { %v1226_v54 = vsel %vm691_vm4, %v1213_v6, %v1224_v61 }
 0x793   :  { %v3455_v28 = vpop.eup %3454  ;;  %v3374_v29 = vround.rtne.f32 %v442_v27 }
 0x794   :  { %v441_v1 = vmul.f32 127.0, %v3455_v28  ;;  %v623_v28 = vand.u32 127, %v620_v10 }
 0x795   :  { %v446_v34 = vmax.f32 %v3374_v29, -128.0 }
 0x796   :  { %v443_v35 = vmul.f32 %v441_v1, %v4101_v9  ;;  %3458 = vrcp.f32 %v441_v1  ;;  %v689_v9 = vpop.permute.xlu1 %688  ;;  %vm4239_vm5 = vcmp.ge.s32.totalorder %v3971_v11, %v623_v28 }
 0x797   :  { %v448_v63 = vmin.f32 %v446_v34, 127.0  ;;  %v692_v57 = vsel %vm691_vm4, %v674_v55, %v689_v9 }
 0x798   :  { %v3375_v36 = vround.rtne.f32 %v443_v35 }
 0x79a   :  { %v447_v41 = vmax.f32 %v3375_v36, -128.0  ;;  %v1248_v51 = vpop.permute.xlu1 %1247 }
 0x79b   :  { %v3457_v37 = vpop.eup %3456  ;;  %v1250_v8 = vsel %vm691_vm4, %v1244_v50, %v1248_v51 }
 0x79c   :  { %v451_v43 = vmul.f32 %v3457_v37, %v448_v63  ;;  %v449_v44 = vmin.f32 %v447_v41, 127.0 }
 0x79e   :  { %3165 = vmatprep.mubr.msk.f32.mxu0 %vm277_vm1, %v451_v43  ;;  %v726_v2 = vpop.permute.xlu1 %725 }
 0x7a0   :  { %v3459_v46 = vpop.eup %3458 }
 0x7a1   :  { %v453_v47 = vmul.f32 %v3459_v46, %v449_v44 }
 0x7a3   :  { %3166 = vmatmul.mubr.msk.f32.vlgmr.msra.gmra.mrb[2].mxu0 %vm277_vm1, %v453_v47 }
 0x7a4   :  { %3191 = vmatprep.mubr.msk.f32.mxu0 %vm3734_vm3, %v3733_v25 }
 0x7b3   :  { %v722_v52 = vpop.permute.xlu0 %721 }
 0x7b4   :  { %v728_v53 = vsel %vm691_vm4, %v722_v52, %v726_v2 }
 0x7b5   :  { %3180 = vmatpush3.xpose.msk.msra.mxu1 %vm626_vm2, %v728_v53 }
 0x7b6   :  { %3184 = vmatprep.subr.mxu1 %v3733_v25 }
 0x7b8   :  { %v1004_v60 = vpop.permute.xlu1 %1003  ;;  %3182 = vmatmul.mubr.msk.f32.vlgmr.msra.gmra.mrb[4].mxu1 %vm626_vm2, %v692_v57  ;;  %v1000_v4 = vpop.permute.xlu0 %999 }
 0x7b9   :  { %v1006_v49 = vsel %vm691_vm4, %v1000_v4, %v1004_v60  ;;  %3186 = vmatprep.mubr.msk.f32.mxu1 %vm3734_vm3, %v3733_v25 }
 0x7ba   :  { %3190 = vmatpush3.xpose.msk.msra.mxu0 %vm626_vm2, %v1006_v49 }
 0x7bb   :  { %3199 = vmatprep.subr.mxu0 %v3733_v25 }
 0x7bc   :  { %v968_v7 = vpop.permute.xlu1 %967  ;;  %v964_v38 = vpop.permute.xlu0 %963 }
 0x7bd   :  { %v970_v21 = vsel %vm691_vm4, %v964_v38, %v968_v7 }
 0x7be   :  { %3192 = vmatmul.mubr.msk.f32.vlgmr.msra.gmra.mrb[4].mxu0 %vm626_vm2, %v970_v21 }
 0x7bf   :  { %3200 = vmatpush3.xpose.msk.msra.mxu0 %vm626_vm2, %v1250_v8  ;;  %3201 = vmatprep.mubr.msk.f32.mxu0 %vm3734_vm3, %v3733_v25 }
 0x7c0   :  { %v1492_v24 = vpop.permute.xlu1 %1491  ;;  %v1488_v30 = vpop.permute.xlu0 %1487  ;;  %3209 = vmatprep.subr.mxu0 %v3733_v25 }
 0x7c1   :  { %v1494_v3 = vsel %vm691_vm4, %v1488_v30, %v1492_v24 }
 0x7c2   :  { %3202 = vmatmul.mubr.msk.f32.vlgmr.msra.gmra.mrb[6].mxu0 %vm626_vm2, %v1226_v54 }
 0x7c3   :  { %3210 = vmatpush3.xpose.msk.msra.mxu0 %vm626_vm2, %v1494_v3  ;;  %3211 = vmatprep.mubr.msk.f32.mxu0 %vm3734_vm3, %v3733_v25 }
 0x7c4   :  { %v1468_v22 = vpop.permute.xlu1 %1467  ;;  %v1464_v23 = vpop.permute.xlu0 %1463 }
 0x7c5   :  { %v1470_v27 = vsel %vm691_vm4, %v1464_v23, %v1468_v22 }
 0x7c6   :  { %3212 = vmatmul.mubr.msk.f32.vlgmr.msra.gmra.mrb[8].mxu0 %vm626_vm2, %v1470_v27 }
 0x7c8   :  { %v916_v44 = vpop.permute.xlu1 %915  ;;  %v647_v52 = vpop.permute.xlu0 %646 }
 0x7c9   :  { %v918_v9 = vsel %vm626_vm2, %v916_v44, 0.0  ;;  %v649_v60 = vsel %vm626_vm2, %v647_v52, 0.0 }
 0x7cc   :  { %v1438_v51 = vpop.permute.xlu1 %1437  ;;  %v1198_v4 = vpop.permute.xlu0 %1197 }
 0x7cd   :  { %v1440_v55 = vsel %vm626_vm2, %v1438_v51, 0.0  ;;  %v1200_v49 = vsel %vm626_vm2, %v1198_v4, 0.0 }
 0x88b   :  { %v801_v29 = vpop.f32.mrb[4].mxu1 }
 0x88c   :  { %v805_v34 = vmul.f32 0.12, %v801_v29  ;;  %v3183_v35 = vpop.f32.mrb[5].mxu1 }
 0x88e   :  { %v806_v36 = vsel %vm4239_vm5, %v805_v34, -1e+30 }
 0x88f   :  { %v807_v63 = vsel %vm691_vm4, %v806_v36, -inf }
 0x890   :  { %808 = vmax.xlane.f32.xlu0 %v807_v63 }
 0x891   :  { %v1079_v37 = vpop.f32.mrb[4].mxu0 }
 0x892   :  { %v1083_v41 = vmul.f32 0.12, %v1079_v37  ;;  %v3193_v43 = vpop.f32.mrb[5].mxu0 }
 0x894   :  { %v1084_v10 = vsel %vm4239_vm5, %v1083_v41, -1e+30 }
 0x895   :  { %v1323_v46 = vpop.f32.mrb[6].mxu0  ;;  %v1085_v11 = vsel %vm691_vm4, %v1084_v10, -inf }
 0x896   :  { %v1327_v47 = vmul.f32 0.12, %v1323_v46  ;;  %1086 = vmax.xlane.f32.xlu1 %v1085_v11  ;;  %v3203_v48 = vpop.f32.mrb[7].mxu0 }
 0x898   :  { %v1328_v61 = vsel %vm4239_vm5, %v1327_v47, -1e+30 }
 0x899   :  { %v1567_v26 = vpop.f32.mrb[8].mxu0  ;;  %v1329_v50 = vsel %vm691_vm4, %v1328_v61, -inf }
 0x89a   :  { %v1571_v45 = vmul.f32 0.12, %v1567_v26  ;;  %919 = vadd.xlane.f32.xlu1 %v918_v9  ;;  %1330 = vmax.xlane.f32.xlu0 %v1329_v50  ;;  %v3213_v2 = vpop.f32.mrb[9].mxu0 }
 0x89c   :  { %v1572_v53 = vsel %vm4239_vm5, %v1571_v45, -1e+30 }
 0x89d   :  { %v1573_v57 = vsel %vm691_vm4, %v1572_v53, -inf }
 0x89e   :  { %1441 = vadd.xlane.f32.xlu1 %v1440_v55  ;;  %1574 = vmax.xlane.f32.xlu0 %v1573_v57 }
 0x8a2   :  { %650 = vadd.xlane.f32.xlu0 %v649_v60 }
 0x8a6   :  { %1201 = vadd.xlane.f32.xlu0 %v1200_v49 }
 0x91d   :  { %v809_v58 = vpop.xlane.xlu0 %808 }
 0x91e   :  { %v810_v7 = vsub.f32 %v806_v36, %v809_v58 }
 0x920   :  { %v811_v38 = vmul.f32 1.442695, %v810_v7 }
 0x922   :  { %3460 = vpow2.f32 %v811_v38 }
 0x923   :  { %v1087_v6 = vpop.xlane.xlu1 %1086 }
 0x924   :  { %v1088_v21 = vsub.f32 %v1084_v10, %v1087_v6 }
 0x926   :  { %v1089_v8 = vmul.f32 1.442695, %v1088_v21 }
 0x927   :  { %v1331_v24 = vpop.xlane.xlu0 %1330  ;;  %v920_v3 = vpop.xlane.xlu1 %919 }
 0x928   :  { %3462 = vpow2.f32 %v1089_v8  ;;  %v1332_v30 = vsub.f32 %v1328_v61, %v1331_v24  ;;  %v921_v28 = vmul.f32 0.0625, %v920_v3  ;;  %v1790_v3 = vld [vmem:[#allocation8 + $0x8] sm:$0xff] }
 0x92a   :  { %v1333_v54 = vmul.f32 1.442695, %v1332_v30  ;;  %v922_v35 = vadd.f32 1.1920929e-07, %v921_v28  ;;  %v1791_v28 = vld [vmem:[#allocation8 + $0x10] sm:$0xff] }
 0x92b   :  { %v1575_v22 = vpop.xlane.xlu0 %1574  ;;  %v1442_v45 = vpop.xlane.xlu1 %1441 }
 0x92c   :  { %v3461_v23 = vpop.eup %3460  ;;  %3464 = vpow2.f32 %v1333_v54  ;;  %v1576_v50 = vsub.f32 %v1572_v53, %v1575_v22  ;;  %v1443_v2 = vmul.f32 0.0625, %v1442_v45  ;;  %v1789_v54 = vld [vmem:[#allocation8] sm:$0xff] }
 0x92d   :  { %v813_v27 = vsel %vm691_vm4, %v3461_v23, 0.0  ;;  %3466 = vrsqrt.f32 %v922_v35 }
 0x92e   :  { %814 = vadd.xlane.f32.xlu0 %v813_v27  ;;  %v1577_v51 = vmul.f32 1.442695, %v1576_v50  ;;  %v1444_v55 = vadd.f32 1.1920929e-07, %v1443_v2 }
 0x92f   :  { %v651_v29 = vpop.xlane.xlu0 %650 }
 0x930   :  { %v652_v44 = vmul.f32 0.0625, %v651_v29  ;;  %v1792_v29 = vld [vmem:[#allocation8 + $0x18] sm:$0xff] }
 0x932   :  { %v3463_v34 = vpop.eup %3462  ;;  %v653_v46 = vadd.f32 1.1920929e-07, %v652_v44 }
 0x933   :  { %v1202_v36 = vpop.xlane.xlu0 %1201  ;;  %v1091_v63 = vsel %vm691_vm4, %v3463_v34, 0.0 }
 0x934   :  { %v1203_v37 = vmul.f32 0.0625, %v1202_v36  ;;  %1092 = vadd.xlane.f32.xlu1 %v1091_v63  ;;  %v3352_v36 = vpack.c.bf16 %v1792_v29, %v1791_v28 }
 0x936   :  { %v1204_v41 = vadd.f32 1.1920929e-07, %v1203_v37  ;;  %v3465_v43 = vpop.eup %3464 }
 0x937   :  { %v1335_v10 = vsel %vm691_vm4, %v3465_v43, 0.0  ;;  %v3467_v11 = vpop.eup %3466 }
 0x938   :  { %1336 = vadd.xlane.f32.xlu0 %v1335_v10  ;;  %3468 = vrsqrt.f32 %v1204_v41  ;;  %v924_v47 = vmul.f32 %v3467_v11, %v3946_v0 }
 0x939   :  { %3470 = vrsqrt.f32 %v653_v46 }
 0x93a   :  { %3472 = vpow2.f32 %v1577_v51 }
 0x93b   :  { %3474 = vrsqrt.f32 %v1444_v55 }
 0x942   :  { %v3469_v48 = vpop.eup %3468 }
 0x943   :  { %v1206_v61 = vmul.f32 %v3469_v48, %v3940_v62  ;;  %v3471_v26 = vpop.eup %3470 }
 0x944   :  { %v655_v9 = vmul.f32 %v3471_v26, %v3946_v0  ;;  %v3473_v52 = vpop.eup %3472 }
 0x945   :  { %1097 = vrot.lane.b32.xlu1 %v924_v47, %s3729_s29  ;;  %v1579_v57 = vsel %vm691_vm4, %v3473_v52, 0.0  ;;  %v3475_v60 = vpop.eup %3474 }
 0x946   :  { %v1446_v4 = vmul.f32 %v3475_v60, %v3940_v62 }
 0x949   :  { %1341 = vrot.lane.b32.xlu1 %v1206_v61, %s3736_s24 }
 0x94e   :  { %819 = vrot.lane.b32.xlu0 %v655_v9, %s3736_s24 }
 0x96d   :  { %1580 = vadd.xlane.f32.xlu1 %v1579_v57 }
 0x97e   :  { %1585 = vrot.lane.b32.xlu1 %v1446_v4, %s3729_s29 }
 0x9bb   :  { %v815_v49 = vpop.xlane.xlu0 %814 }
 0x9bc   :  { %3476 = vrcp.f32 %v815_v49 }
 0x9c1   :  { %v1093_v0 = vpop.xlane.xlu1 %1092 }
 0x9c2   :  { %3478 = vrcp.f32 %v1093_v0 }
 0x9c5   :  { %v1337_v53 = vpop.xlane.xlu0 %1336  ;;  %v1098_v38 = vpop.permute.xlu1 %1097 }
 0x9c6   :  { %v3477_v58 = vpop.eup %3476  ;;  %3480 = vrcp.f32 %v1337_v53 }
 0x9c7   :  { %v817_v7 = vmul.f32 %v3477_v58, %v3461_v23  ;;  %v3348_v23 = vpack.c.bf16 %v1790_v3, %v1789_v54 }
 0x9c9   :  { %v820_v6 = vpop.permute.xlu0 %819  ;;  %v1342_v62 = vpop.permute.xlu1 %1341 }
 0x9ca   :  { %3185 = vmatpush3.msra.mxu1 %v820_v6 }
 0x9cb   :  { %3187 = vmatmul.mubr.msk.f32.vlgmr.msra.gmra.mrb[6].mxu1 %vm691_vm4, %v817_v7  ;;  %3194 = vmatprep.subr.mxu1 %v3733_v25 }
 0x9cc   :  { %v3479_v21 = vpop.eup %3478  ;;  %3195 = vmatpush3.msra.mxu1 %v1098_v38  ;;  %3196 = vmatprep.mubr.msk.f32.mxu1 %vm3734_vm3, %v3733_v25 }
 0x9cd   :  { %v1095_v8 = vmul.f32 %v3479_v21, %v3463_v34  ;;  %3204 = vmatprep.subr.mxu1 %v3733_v25 }
 0x9cf   :  { %3197 = vmatmul.mubr.msk.f32.vlgmr.msra.gmra.mrb[8].mxu1 %vm691_vm4, %v1095_v8 }
 0x9d0   :  { %v3481_v24 = vpop.eup %3480  ;;  %3205 = vmatpush3.msra.mxu1 %v1342_v62  ;;  %3206 = vmatprep.mubr.msk.f32.mxu1 %vm3734_vm3, %v3733_v25 }
 0x9d1   :  { %v1339_v30 = vmul.f32 %v3481_v24, %v3465_v43  ;;  %3214 = vmatprep.subr.mxu1 %v3733_v25 }
 0x9d3   :  { %3207 = vmatmul.mubr.msk.f32.vlgmr.msra.gmra.mrb[10].mxu1 %vm691_vm4, %v1339_v30 }
 0x9d4   :  { %3216 = vmatprep.mubr.msk.f32.mxu1 %vm3734_vm3, %v3733_v25 }
 0x9fa   :  { %v1581_v22 = vpop.xlane.xlu1 %1580 }
 0x9fb   :  { %3482 = vrcp.f32 %v1581_v22 }
 0x9fe   :  { %v1586_v27 = vpop.permute.xlu1 %1585 }
 0x9ff   :  { %3215 = vmatpush3.msra.mxu1 %v1586_v27 }
 0xa00   :  { %3349 = vmatprep.subr.bf16.mxu1 %v3348_v23 }
 0xa05   :  { %v3483_v34 = vpop.eup %3482 }
 0xa06   :  { %v1583_v35 = vmul.f32 %v3483_v34, %v3473_v52 }
 0xa08   :  { %3217 = vmatmul.mubr.msk.f32.vlgmr.msra.gmra.mrb[12].mxu1 %vm691_vm4, %v1583_v35 }
 0xa09   :  { %3351 = vmatpush3.bf16.msra.mxu1 %v3348_v23  ;;  %3238 = vmatprep.mubr.msk.f32.mxu1 %vm120_vm0, %v3886_v56 }
 0xa0a   :  { %3353 = vmatprep.subr.bf16.mxu1 %v3352_v36 }
 0xa0d   :  { %3355 = vmatpush3.bf16.msra.mxu1 %v3352_v36 }
 0xa0e   :  { %3246 = vmatprep.subr.mxu1 %v3733_v25 }
 0xa10   :  { %3239 = vmatmul.mubr.msk.f32.vlgmr.msra.gmra.mrb[14].mxu1 %vm120_vm0, %v3890_v59 }
 0xa11   :  { %3248 = vmatprep.mubr.msk.f32.mxu1 %vm3734_vm3, %v3733_v25 }
 0xa9e   :  { %v891_v63 = vpop.f32.mrb[6].mxu1 }
 0xa9f   :  { %v3188_v37 = vpop.f32.mrb[7].mxu1 }
 0xaa2   :  { %v1169_v41 = vpop.f32.mrb[8].mxu1 }
 0xaa3   :  { %v3198_v43 = vpop.f32.mrb[9].mxu1 }
 0xaa6   :  { %v1413_v44 = vpop.f32.mrb[10].mxu1 }
 0xaa7   :  { %v3208_v10 = vpop.f32.mrb[11].mxu1 }
 0xadb   :  { %v1657_v46 = vpop.f32.mrb[12].mxu1 }
 0xadc   :  { %v3218_v11 = vpop.f32.mrb[13].mxu1 }
 0xae3   :  { %v4291_v47 = vpop.f32.mrb[14].mxu1 }
 0xae4   :  { %v4293_v56 = vpop.f32.mrb[15].mxu1  ;;  %v4305_v59 = vmul.f32 %v4291_v47, %v4291_v47 }
 0xae5   :  { %v4297_v48 = vmul.f32 %v4293_v56, %v4293_v56 }
 0xae6   :  { %v2361_v26 = vsel %vm626_vm2, %v4305_v59, 0.0 }
 0xae7   :  { %2121 = vrot.lane.b32.xlu1 %v4297_v48, %s3722_s3  ;;  %1881 = vrot.lane.b32.xlu0 %v4297_v48, %s3723_s13  ;;  %v1873_v61 = vsel %vm626_vm2, %v4297_v48, 0.0 }
 0xaeb   :  { %2369 = vrot.lane.b32.xlu1 %v4305_v59, %s3723_s13  ;;  %2111 = vrot.lane.b32.xlu0 %v4297_v48, %s3724_s7 }
 0xaef   :  { %1174 = vrot.lane.b32.xlu1 %v1169_v41, %s3730_s5  ;;  %2609 = vrot.lane.b32.xlu0 %v4305_v59, %s3722_s3 }
 0xaf3   :  { %2599 = vrot.lane.b32.xlu1 %v4305_v59, %s3724_s7  ;;  %1662 = vrot.lane.b32.xlu0 %v1657_v46, %s3730_s5 }
 0xb17   :  { %1874 = vadd.xlane.f32.xlu1 %v1873_v61 }
 0xb1b   :  { %2362 = vadd.xlane.f32.xlu1 %v2361_v26 }
 0xb59   :  { %v2122_v9 = vpop.permute.xlu1 %2121  ;;  %v1882_v50 = vpop.permute.xlu0 %1881 }
 0xb5a   :  { %v1884_v51 = vsel %vm626_vm2, %v1882_v50, 0.0  ;;  %v2124_v52 = vsel %vm626_vm2, %v2122_v9, 0.0 }
 0xb5b   :  { %1885 = vadd.xlane.f32.xlu0 %v1884_v51 }
 0xb5d   :  { %v2370_v45 = vpop.permute.xlu1 %2369  ;;  %v2112_v2 = vpop.permute.xlu0 %2111 }
 0xb5e   :  { %v2114_v60 = vsel %vm626_vm2, %v2112_v2, 0.0  ;;  %v2372_v0 = vsel %vm626_vm2, %v2370_v45, 0.0 }
 0xb5f   :  { %2125 = vadd.xlane.f32.xlu0 %v2124_v52 }
 0xb61   :  { %v1175_v55 = vpop.permute.xlu1 %1174  ;;  %v2610_v57 = vpop.permute.xlu0 %2609 }
 0xb62   :  { %v4330_v7 = vsel %vm626_vm2, %v891_v63, %v1175_v55  ;;  %v2612_v8 = vsel %vm626_vm2, %v2610_v57, 0.0 }
 0xb63   :  { %2115 = vadd.xlane.f32.xlu0 %v2114_v60  ;;  %v1666_v21 = vmul.f32 %v4330_v7, %v4330_v7 }
 0xb65   :  { %v2600_v4 = vpop.permute.xlu1 %2599  ;;  %v1663_v49 = vpop.permute.xlu0 %1662  ;;  %v1668_v62 = vsel %vm120_vm0, %v1666_v21, 0.0 }
 0xb66   :  { %v2602_v53 = vsel %vm626_vm2, %v2600_v4, 0.0  ;;  %v4327_v58 = vsel %vm626_vm2, %v1413_v44, %v1663_v49 }
 0xb67   :  { %v1667_v38 = vmul.f32 %v4327_v58, %v4327_v58  ;;  %2373 = vadd.xlane.f32.xlu0 %v2372_v0  ;;  %2603 = vadd.xlane.f32.xlu1 %v2602_v53 }
 0xb69   :  { %v1671_v6 = vsel %vm120_vm0, %v1667_v38, 0.0 }
 0xb6b   :  { %2613 = vadd.xlane.f32.xlu0 %v2612_v8  ;;  %1672 = vadd.xlane.f32.xlu1 %v1671_v6 }
 0xb6f   :  { %1669 = vadd.xlane.f32.xlu0 %v1668_v62 }
 0xba4   :  { %v1875_v24 = vpop.xlane.xlu1 %1874 }
 0xba5   :  { %v1876_v30 = vmul.f32 0.0625, %v1875_v24 }
 0xba7   :  { %v1877_v54 = vadd.f32 1.1920929e-07, %v1876_v30 }
 0xba8   :  { %v2363_v3 = vpop.xlane.xlu1 %2362 }
 0xba9   :  { %v2364_v22 = vmul.f32 0.0625, %v2363_v3  ;;  %3484 = vrsqrt.f32 %v1877_v54 }
 0xbab   :  { %v2365_v23 = vadd.f32 1.1920929e-07, %v2364_v22 }
 0xbad   :  { %3486 = vrsqrt.f32 %v2365_v23 }
 0xbb3   :  { %v3485_v27 = vpop.eup %3484 }
 0xbb4   :  { %v4343_v34 = vmul.f32 %v3485_v27, %v4293_v56 }
 0xbb6   :  { %v1910_v36 = vmul.f32 %v4343_v34, %v4005_v32 }
 0xbb7   :  { %v3487_v28 = vpop.eup %3486 }
 0xbb8   :  { %v4340_v29 = vmul.f32 %v3487_v28, %v4291_v47 }
 0xbba   :  { %v2398_v35 = vmul.f32 %v4340_v29, %v4005_v32 }
 0xbbc   :  { %2400 = vrot.lane.b32.xlu1 %v2398_v35, %s3731_s26 }
 0xbc0   :  { %1912 = vrot.lane.b32.xlu1 %v1910_v36, %s3731_s26 }
 0xbe8   :  { %v1886_v63 = vpop.xlane.xlu0 %1885 }
 0xbe9   :  { %v1887_v9 = vmul.f32 0.0625, %v1886_v63 }
 0xbeb   :  { %v1888_v45 = vadd.f32 1.1920929e-07, %v1887_v9 }
 0xbec   :  { %v2126_v37 = vpop.xlane.xlu0 %2125 }
 0xbed   :  { %v2127_v2 = vmul.f32 0.0625, %v2126_v37 }
 0xbef   :  { %v2128_v32 = vadd.f32 1.1920929e-07, %v2127_v2 }
 0xbf0   :  { %v2116_v41 = vpop.xlane.xlu0 %2115 }
 0xbf1   :  { %v2117_v52 = vmul.f32 0.0625, %v2116_v41 }
 0xbf3   :  { %v2118_v60 = vadd.f32 1.1920929e-07, %v2117_v52 }
 0xbf4   :  { %v2374_v43 = vpop.xlane.xlu0 %2373  ;;  %v2604_v44 = vpop.xlane.xlu1 %2603 }
 0xbf5   :  { %v2375_v10 = vmul.f32 0.0625, %v2374_v43  ;;  %v2605_v46 = vmul.f32 0.0625, %v2604_v44 }
 0xbf7   :  { %v2376_v11 = vadd.f32 1.1920929e-07, %v2375_v10  ;;  %v2606_v61 = vadd.f32 1.1920929e-07, %v2605_v46 }
 0xbf8   :  { %v2614_v26 = vpop.xlane.xlu0 %2613 }
 0xbf9   :  { %3488 = vrsqrt.f32 %v2376_v11  ;;  %v2615_v50 = vmul.f32 0.0625, %v2614_v26 }
 0xbfa   :  { %3490 = vrsqrt.f32 %v2606_v61 }
 0xbfb   :  { %v2616_v51 = vadd.f32 1.1920929e-07, %v2615_v50  ;;  %v2396_v50 = vsub.f32 0.0, %v4340_v29 }
 0xbfd   :  { %3492 = vrsqrt.f32 %v2616_v51 }
 0xbfe   :  { %3494 = vrsqrt.f32 %v1888_v45  ;;  %v1908_v45 = vsub.f32 0.0, %v4343_v34 }
 0xbff   :  { %3496 = vrsqrt.f32 %v2128_v32 }
 0xc00   :  { %3498 = vrsqrt.f32 %v2118_v60  ;;  %v1909_v52 = vmul.f32 %v1908_v45, %v3979_v16  ;;  %v2390_v60 = vmul.f32 %v4340_v29, %v4105_v12 }
 0xc03   :  { %v3489_v55 = vpop.eup %3488 }
 0xc04   :  { %v4352_v57 = vmul.f32 %v3489_v55, %v4291_v47  ;;  %v3491_v4 = vpop.eup %3490 }
 0xc05   :  { %v4364_v6 = vmul.f32 %v3491_v4, %v4291_v47  ;;  %v541_v4 = vld [vmem:[#allocation7] sm:$0xff] }
 0xc06   :  { %v2418_v49 = vmul.f32 %v4352_v57, %v4001_v31  ;;  %v2410_v0 = vmul.f32 %v4352_v57, %v4018_v39 }
 0xc07   :  { %v3493_v53 = vpop.eup %3492  ;;  %v2638_v30 = vmul.f32 %v4364_v6, %v4066_v40  ;;  %v2630_v54 = vmul.f32 %v4364_v6, %v4052_v17 }
 0xc08   :  { %v4359_v38 = vmul.f32 %v3493_v53, %v4291_v47  ;;  %2420 = vrot.lane.b32.xlu0 %v2418_v49, %s3731_s26  ;;  %2412 = vrot.lane.b32.xlu1 %v2410_v0, %s3731_s26  ;;  %v3495_v62 = vpop.eup %3494  ;;  %v542_v49 = vld [vmem:[#allocation7 + $0x8] sm:$0xff]  ;;  %v543_v53 = vld [vmem:[#allocation7 + $0x10] sm:$0xff] }
 0xc09   :  { %v4373_v24 = vmul.f32 %v3495_v62, %v4293_v56  ;;  %v3497_v3 = vpop.eup %3496  ;;  %v3340_v0 = vpack.c.bf16 %v542_v49, %v541_v4  ;;  %v2409_v62 = vmul.f32 %v4352_v57, %v4097_v5 }
 0xc0a   :  { %v2654_v21 = vmul.f32 %v4359_v38, %v4008_v33  ;;  %v2662_v8 = vmul.f32 %v4359_v38, %v4020_v42  ;;  %v4382_v22 = vmul.f32 %v3497_v3, %v4293_v56  ;;  %v3499_v28 = vpop.eup %3498  ;;  %v2653_v45 = vmul.f32 %v4359_v38, %v4112_v18 }
 0xc0b   :  { %v1930_v23 = vmul.f32 %v4373_v24, %v4001_v31  ;;  %v1922_v27 = vmul.f32 %v4373_v24, %v4018_v39  ;;  %v4391_v35 = vmul.f32 %v3499_v28, %v4293_v56  ;;  %v1670_v31 = vpop.xlane.xlu0 %1669  ;;  %3341 = vmatprep.subr.bf16.mxu0 %v3340_v0 }
 0xc0c   :  { %2656 = vrot.lane.b32.xlu0 %v2654_v21, %s3731_s26  ;;  %2664 = vrot.lane.b32.xlu1 %v2662_v8, %s3731_s26  ;;  %v2166_v36 = vmul.f32 %v4382_v22, %v4008_v33  ;;  %v2174_v63 = vmul.f32 %v4382_v22, %v4020_v42  ;;  %v1674_v41 = vmul.f32 0.03125, %v1670_v31  ;;  %v1673_v33 = vpop.xlane.xlu1 %1672  ;;  %v544_v21 = vld [vmem:[#allocation7 + $0x18] sm:$0xff]  ;;  %v2416_v8 = vsub.f32 0.0, %v4352_v57 }
 0xc0d   :  { %v2142_v39 = vmul.f32 %v4391_v35, %v4052_v17  ;;  %v2150_v37 = vmul.f32 %v4391_v35, %v4066_v40  ;;  %v1675_v44 = vmul.f32 0.03125, %v1673_v33  ;;  %3343 = vmatpush3.bf16.msra.mxu0 %v3340_v0  ;;  %v2172_v57 = vsub.f32 0.0, %v4382_v22 }
 0xc0e   :  { %v1676_v43 = vadd.f32 1.1920929e-07, %v1674_v41 }
 0xc0f   :  { %v1677_v42 = vadd.f32 1.1920929e-07, %v1675_v44 }
 0xc10   :  { %2640 = vrot.lane.b32.xlu1 %v2638_v30, %s3731_s26  ;;  %2632 = vrot.lane.b32.xlu0 %v2630_v54, %s3731_s26  ;;  %3500 = vrsqrt.f32 %v1676_v43 }
 0xc11   :  { %3502 = vrsqrt.f32 %v1677_v42  ;;  %v2173_v42 = vmul.f32 %v2172_v57, %v4110_v14 }
 0xc14   :  { %1932 = vrot.lane.b32.xlu1 %v1930_v23, %s3731_s26  ;;  %1924 = vrot.lane.b32.xlu0 %v1922_v27, %s3731_s26 }
 0xc18   :  { %2168 = vrot.lane.b32.xlu1 %v2166_v36, %s3731_s26  ;;  %2176 = vrot.lane.b32.xlu0 %v2174_v63, %s3731_s26  ;;  %v1928_v36 = vsub.f32 0.0, %v4373_v24 }
 0xc1a   :  { %v3501_v10 = vpop.eup %3500 }
 0xc1b   :  { %v4406_v46 = vmul.f32 %v3501_v10, %v4330_v7  ;;  %v3503_v11 = vpop.eup %3502  ;;  %v2397_v7 = vmul.f32 %v2396_v50, %v3979_v16  ;;  %v3344_v16 = vpack.c.bf16 %v544_v21, %v543_v53  ;;  %v2165_v10 = vmul.f32 %v4382_v22, %v4112_v18 }
 0xc1c   :  { %2144 = vrot.lane.b32.xlu1 %v2142_v39, %s3731_s26  ;;  %2152 = vrot.lane.b32.xlu0 %v2150_v37, %s3731_s26  ;;  %v4410_v40 = vmul.f32 %v3503_v11, %v4327_v58  ;;  %v1902_v58 = vmul.f32 %v4343_v34, %v4105_v12  ;;  %v2417_v12 = vmul.f32 %v2416_v8, %v4107_v13  ;;  %v2148_v11 = vsub.f32 0.0, %v4391_v35 }
 0xc1d   :  { %v1682_v17 = vand.u32 2147483647, %v4406_v46  ;;  %3345 = vmatprep.subr.bf16.mxu0 %v3344_v16  ;;  %v1921_v39 = vmul.f32 %v4373_v24, %v4097_v5  ;;  %v1929_v37 = vmul.f32 %v1928_v36, %v4107_v13 }
 0xc1e   :  { %v1683_v26 = vand.u32 2147483647, %v4410_v40  ;;  %3347 = vmatpush3.bf16.msra.mxu0 %v3344_v16 }
 0xc1f   :  { %v1684_v61 = vsel %vm120_vm0, %v1682_v17, -inf  ;;  %3241 = vmatprep.subr.mxu0 %v3733_v25 }
 0xc20   :  { %v1687_v9 = vsel %vm120_vm0, %v1683_v26, -inf  ;;  %v2149_v26 = vmul.f32 %v2148_v11, %v4117_v20 }
 0xc2e   :  { %v2401_v51 = vpop.permute.xlu1 %2400 }
 0xc2f   :  { %v2403_v2 = vadd.f32 %v2401_v51, %v2397_v7 }
 0xc32   :  { %v1913_v32 = vpop.permute.xlu1 %1912 }
 0xc33   :  { %v1915_v55 = vadd.f32 %v1913_v32, %v1909_v52 }
 0xc3b   :  { %1685 = vmax.xlane.f32.xlu0 %v1684_v61  ;;  %v2660_v61 = vsub.f32 0.0, %v4359_v38 }
 0xc40   :  { %1688 = vmax.xlane.f32.xlu1 %v1687_v9  ;;  %v2141_v9 = vmul.f32 %v4391_v35, %v4114_v19  ;;  %v2629_v35 = vmul.f32 %v4364_v6, %v4114_v19 }
 0xc51   :  { %1904 = vrot.lane.b32.xlu0 %v1902_v58, %s3731_s26  ;;  %2405 = vrot.lane.b32.xlu1 %v2403_v2, %s3718_s17  ;;  %v2661_v2 = vmul.f32 %v2660_v61, %v4110_v14  ;;  %v2636_v58 = vsub.f32 0.0, %v4364_v6 }
 0xc55   :  { %2392 = vrot.lane.b32.xlu0 %v2390_v60, %s3731_s26  ;;  %1917 = vrot.lane.b32.xlu1 %v1915_v55, %s3718_s17  ;;  %v2637_v55 = vmul.f32 %v2636_v58, %v4117_v20 }
 0xc7a   :  { %v2421_v30 = vpop.permute.xlu0 %2420  ;;  %v2413_v54 = vpop.permute.xlu1 %2412 }
 0xc7b   :  { %v2423_v3 = vadd.f32 %v2421_v30, %v2417_v12  ;;  %v2415_v23 = vadd.f32 %v2413_v54, %v2409_v62 }
 0xc7d   :  { %2429 = vrot.lane.b32.xlu1 %v2423_v3, %s3732_s15  ;;  %2425 = vrot.lane.b32.xlu0 %v2415_v23, %s3723_s13 }
 0xc7e   :  { %v2657_v27 = vpop.permute.xlu0 %2656  ;;  %v2665_v28 = vpop.permute.xlu1 %2664 }
 0xc7f   :  { %v2659_v32 = vadd.f32 %v2657_v27, %v2653_v45  ;;  %v2667_v52 = vadd.f32 %v2665_v28, %v2661_v2 }
 0xc82   :  { %v2633_v63 = vpop.permute.xlu0 %2632  ;;  %v2641_v31 = vpop.permute.xlu1 %2640 }
 0xc83   :  { %v2635_v18 = vadd.f32 %v2633_v63, %v2629_v35  ;;  %v2643_v38 = vadd.f32 %v2641_v31, %v2637_v55  ;;  %v1901_v31 = vmul.f32 %v4343_v34, %v3977_v15  ;;  %v2389_v34 = vmul.f32 %v4340_v29, %v3977_v15 }
 0xc86   :  { %v1925_v41 = vpop.permute.xlu0 %1924  ;;  %v1933_v33 = vpop.permute.xlu1 %1932 }
 0xc87   :  { %v1927_v43 = vadd.f32 %v1925_v41, %v1921_v39  ;;  %v1935_v44 = vadd.f32 %v1933_v33, %v1929_v37 }
 0xc89   :  { %1937 = vrot.lane.b32.xlu0 %v1927_v43, %s3723_s13  ;;  %1941 = vrot.lane.b32.xlu1 %v1935_v44, %s3732_s15 }
 0xc8a   :  { %v2177_v5 = vpop.permute.xlu0 %2176  ;;  %v2169_v24 = vpop.permute.xlu1 %2168 }
 0xc8b   :  { %v2179_v13 = vadd.f32 %v2177_v5, %v2173_v42  ;;  %v2171_v17 = vadd.f32 %v2169_v24, %v2165_v10 }
 0xc8d   :  { %2185 = vrot.lane.b32.xlu1 %v2179_v13, %s3735_s9  ;;  %2181 = vrot.lane.b32.xlu0 %v2171_v17, %s3722_s3 }
 0xc8e   :  { %v2153_v50 = vpop.permute.xlu0 %2152  ;;  %v2145_v51 = vpop.permute.xlu1 %2144 }
 0xc8f   :  { %v2155_v22 = vadd.f32 %v2153_v50, %v2149_v26  ;;  %v2147_v7 = vadd.f32 %v2145_v51, %v2141_v9 }
 0xc91   :  { %2161 = vrot.lane.b32.xlu1 %v2155_v22, %s3731_s26  ;;  %2157 = vrot.lane.b32.xlu0 %v2147_v7, %s3724_s7 }
 0xc95   :  { %2673 = vrot.lane.b32.xlu1 %v2667_v52, %s3735_s9  ;;  %2669 = vrot.lane.b32.xlu0 %v2659_v32, %s3722_s3  ;;  %s3737_s3 = smov [#allocation13]  }
 0xc96   :  { %s2984_s13 = sshll.u32 %s3737_s3, 4  ;;  %s2985_s13 = int_to_ptr.vmem [resolvable:$true] %s2984_s13 }
 0xc97   :  { %p3687_p7 = scmp.lt.s32.totalorder %s2985_s13, %s2985_s13 }
 0xc99   :  { %2649 = vrot.lane.b32.xlu1 %v2643_v38, %s3731_s26  ;;  %2645 = vrot.lane.b32.xlu0 %v2635_v18, %s3724_s7  ;;  %s3682_s7 = scalar_lea.vmem %s2985_s13, 256 }
 0xc9a   :  { %p3683_p6 = scmp.ne.s32.totalorder %s2985_s13, %s3682_s7  ;;  %p3688_p8 = scmp.lt.s32.totalorder %s3682_s7, %s3682_s7 }
 0xc9c   :  { %p3689_p9 = por %p3688_p8, %p3687_p7 }
 0xc9d   :  { %2131 = vrot.lane.b32.xlu1 %v4297_v48, %s3729_s29  ;;  %1891 = vrot.lane.b32.xlu0 %v4297_v48, %s3736_s24 }
 0xc9e   :  { %p3690_p10 = pnand %p3689_p9, %p3683_p6 }
 0xca1   :  { %2619 = vrot.lane.b32.xlu1 %v4305_v59, %s3729_s29  ;;  %2379 = vrot.lane.b32.xlu0 %v4305_v59, %s3736_s24 }
 0xcc8   :  { %v1686_v14 = vpop.xlane.xlu0 %1685 }
 0xcc9   :  { %v1690_v19 = vmax.f32 %v1686_v14, 1e-05 }
 0xccb   :  { %3504 = vrcp.f32 %v1690_v19 }
 0xccd   :  { %v1689_v20 = vpop.xlane.xlu1 %1688 }
 0xcce   :  { %v1691_v6 = vmax.f32 %v1689_v20, 1e-05 }
 0xcd0   :  { %3506 = vrcp.f32 %v1691_v6 }
 0xcd1   :  { %v2406_v27 = vpop.permute.xlu1 %2405 }
 0xcd5   :  { %v3505_v60 = vpop.eup %3504 }
 0xcd6   :  { %v1693_v4 = vmul.f32 127.0, %v3505_v60 }
 0xcd8   :  { %v1696_v49 = vmul.f32 %v1693_v4, %v4406_v46  ;;  %3508 = vrcp.f32 %v1693_v4  ;;  %v1905_v46 = vpop.permute.xlu0 %1904 }
 0xcd9   :  { %v1907_v41 = vadd.f32 %v1905_v46, %v1901_v31 }
 0xcda   :  { %v3507_v0 = vpop.eup %3506  ;;  %v3376_v53 = vround.rtne.f32 %v1696_v49 }
 0xcdb   :  { %v1695_v48 = vmul.f32 127.0, %v3507_v0 }
 0xcdc   :  { %v1700_v21 = vmax.f32 %v3376_v53, -128.0  ;;  %v2393_v28 = vpop.permute.xlu0 %2392 }
 0xcdd   :  { %v1697_v16 = vmul.f32 %v1695_v48, %v4410_v40  ;;  %3510 = vrcp.f32 %v1695_v48  ;;  %v1918_v40 = vpop.permute.xlu1 %1917  ;;  %v2395_v5 = vadd.f32 %v2393_v28, %v2389_v34 }
 0xcde   :  { %v1702_v59 = vmin.f32 %v1700_v21, 127.0  ;;  %v1920_v33 = vsel %vm691_vm4, %v1907_v41, %v1918_v40 }
 0xcdf   :  { %v3377_v8 = vround.rtne.f32 %v1697_v16  ;;  %v2408_v15 = vsel %vm691_vm4, %v2395_v5, %v2406_v27 }
 0xce1   :  { %v1701_v62 = vmax.f32 %v3377_v8, -128.0 }
 0xce2   :  { %v3509_v12 = vpop.eup %3508 }
 0xce3   :  { %v1705_v30 = vmul.f32 %v3509_v12, %v1702_v59  ;;  %v1703_v54 = vmin.f32 %v1701_v62, 127.0 }
 0xce5   :  { %3227 = vmatprep.mubr.msk.f32.mxu0 %vm120_vm0, %v1705_v30 }
 0xce7   :  { %v3511_v3 = vpop.eup %3510 }
 0xce8   :  { %v1707_v23 = vmul.f32 %v3511_v3, %v1703_v54 }
 0xcea   :  { %3228 = vmatmul.mubr.msk.f32.vlgmr.msra.gmra.mrb[2].mxu0 %vm120_vm0, %v1707_v23 }
 0xceb   :  { %3243 = vmatprep.mubr.msk.f32.mxu0 %vm3734_vm3, %v3733_v25 }
 0xcef   :  { %v2426_v36 = vpop.permute.xlu0 %2425  ;;  %v2430_v63 = vpop.permute.xlu1 %2429 }
 0xcf0   :  { %v2432_v13 = vsel %vm691_vm4, %v2426_v36, %v2430_v63 }
 0xcfb   :  { %v1938_v39 = vpop.permute.xlu0 %1937  ;;  %v1942_v37 = vpop.permute.xlu1 %1941 }
 0xcfc   :  { %v1944_v57 = vsel %vm691_vm4, %v1938_v39, %v1942_v37 }
 0xcfd   :  { %3242 = vmatpush3.xpose.msk.msra.mxu0 %vm626_vm2, %v1944_v57 }
 0xcfe   :  { %3251 = vmatprep.subr.mxu0 %v3733_v25 }
 0xcff   :  { %v2182_v43 = vpop.permute.xlu0 %2181  ;;  %v2186_v44 = vpop.permute.xlu1 %2185 }
 0xd00   :  { %v2188_v42 = vsel %vm691_vm4, %v2182_v43, %v2186_v44  ;;  %3244 = vmatmul.mubr.msk.f32.vlgmr.msra.gmra.mrb[10].mxu0 %vm626_vm2, %v1920_v33 }
 0xd01   :  { %3252 = vmatpush3.xpose.msk.msra.mxu0 %vm626_vm2, %v2188_v42  ;;  %3253 = vmatprep.mubr.msk.f32.mxu0 %vm3734_vm3, %v3733_v25 }
 0xd02   :  { %3261 = vmatprep.subr.mxu0 %v3733_v25 }
 0xd03   :  { %v2158_v10 = vpop.permute.xlu0 %2157  ;;  %v2162_v11 = vpop.permute.xlu1 %2161 }
 0xd04   :  { %v2164_v24 = vsel %vm691_vm4, %v2158_v10, %v2162_v11 }
 0xd05   :  { %3254 = vmatmul.mubr.msk.f32.vlgmr.msra.gmra.mrb[12].mxu0 %vm626_vm2, %v2164_v24 }
 0xd06   :  { %3262 = vmatpush3.xpose.msk.msra.mxu0 %vm626_vm2, %v2432_v13  ;;  %3263 = vmatprep.mubr.msk.f32.mxu0 %vm3734_vm3, %v3733_v25 }
 0xd07   :  { %v2670_v17 = vpop.permute.xlu0 %2669  ;;  %v2674_v61 = vpop.permute.xlu1 %2673  ;;  %3271 = vmatprep.subr.mxu0 %v3733_v25 }
 0xd08   :  { %v2676_v29 = vsel %vm691_vm4, %v2670_v17, %v2674_v61 }
 0xd09   :  { %3264 = vmatmul.mubr.msk.f32.vlgmr.msra.gmra.mrb[14].mxu0 %vm626_vm2, %v2408_v15 }
 0xd0a   :  { %3272 = vmatpush3.xpose.msk.msra.mxu0 %vm626_vm2, %v2676_v29  ;;  %3273 = vmatprep.mubr.msk.f32.mxu0 %vm3734_vm3, %v3733_v25 }
 0xd0b   :  { %v2646_v26 = vpop.permute.xlu0 %2645  ;;  %v2650_v9 = vpop.permute.xlu1 %2649 }
 0xd0c   :  { %v2652_v50 = vsel %vm691_vm4, %v2646_v26, %v2650_v9 }
 0xd0d   :  { %3274 = vmatmul.mubr.msk.f32.vlgmr.msra.gmra.mrb[16].mxu0 %vm626_vm2, %v2652_v50 }
 0xd0f   :  { %v2132_v35 = vpop.permute.xlu1 %2131  ;;  %v1892_v48 = vpop.permute.xlu0 %1891 }
 0xd10   :  { %v2134_v6 = vsel %vm626_vm2, %v2132_v35, 0.0  ;;  %v1894_v59 = vsel %vm626_vm2, %v1892_v48, 0.0 }
 0xd13   :  { %v2620_v49 = vpop.permute.xlu1 %2619  ;;  %v2380_v12 = vpop.permute.xlu0 %2379 }
 0xd14   :  { %v2622_v16 = vsel %vm626_vm2, %v2620_v49, 0.0  ;;  %v2382_v62 = vsel %vm626_vm2, %v2380_v12, 0.0 }
 0xdd3   :  { %v2017_v51 = vpop.f32.mrb[10].mxu0 }
 0xdd4   :  { %v2021_v22 = vmul.f32 0.12, %v2017_v51  ;;  %v3245_v7 = vpop.f32.mrb[11].mxu0 }
 0xdd6   :  { %v2022_v45 = vsel %vm4239_vm5, %v2021_v22, -1e+30 }
 0xdd7   :  { %v2023_v2 = vsel %vm691_vm4, %v2022_v45, -inf }
 0xdd8   :  { %2024 = vmax.xlane.f32.xlu0 %v2023_v2  ;;  %v2261_v58 = vpop.f32.mrb[12].mxu0 }
 0xdd9   :  { %v2265_v32 = vmul.f32 0.12, %v2261_v58  ;;  %v3255_v52 = vpop.f32.mrb[13].mxu0 }
 0xddb   :  { %v2266_v55 = vsel %vm4239_vm5, %v2265_v32, -1e+30 }
 0xddc   :  { %v2505_v18 = vpop.f32.mrb[14].mxu0  ;;  %v2267_v38 = vsel %vm691_vm4, %v2266_v55, -inf }
 0xddd   :  { %v2509_v14 = vmul.f32 0.12, %v2505_v18  ;;  %2268 = vmax.xlane.f32.xlu1 %v2267_v38  ;;  %v3265_v19 = vpop.f32.mrb[15].mxu0 }
 0xddf   :  { %v2510_v20 = vsel %vm4239_vm5, %v2509_v14, -1e+30 }
 0xde0   :  { %v2749_v60 = vpop.f32.mrb[16].mxu0  ;;  %v2511_v4 = vsel %vm691_vm4, %v2510_v20, -inf }
 0xde1   :  { %v2753_v0 = vmul.f32 0.12, %v2749_v60  ;;  %2512 = vmax.xlane.f32.xlu0 %v2511_v4  ;;  %v3275_v53 = vpop.f32.mrb[17].mxu0  ;;  %2135 = vadd.xlane.f32.xlu1 %v2134_v6 }
 0xde3   :  { %v2754_v21 = vsel %vm4239_vm5, %v2753_v0, -1e+30 }
 0xde4   :  { %v2755_v8 = vsel %vm691_vm4, %v2754_v21, -inf }
 0xde5   :  { %2756 = vmax.xlane.f32.xlu0 %v2755_v8  ;;  %2623 = vadd.xlane.f32.xlu1 %v2622_v16 }
 0xde9   :  { %1895 = vadd.xlane.f32.xlu0 %v1894_v59 }
 0xded   :  { %2383 = vadd.xlane.f32.xlu0 %v2382_v62 }
 0xe65   :  { %v2025_v30 = vpop.xlane.xlu0 %2024 }
 0xe66   :  { %v2026_v54 = vsub.f32 %v2022_v45, %v2025_v30 }
 0xe68   :  { %v2027_v3 = vmul.f32 1.442695, %v2026_v54 }
 0xe6a   :  { %3512 = vpow2.f32 %v2027_v3  ;;  %v2269_v23 = vpop.xlane.xlu1 %2268 }
 0xe6b   :  { %v2270_v1 = vsub.f32 %v2266_v55, %v2269_v23 }
 0xe6d   :  { %v2271_v46 = vmul.f32 1.442695, %v2270_v1 }
 0xe6e   :  { %v2513_v27 = vpop.xlane.xlu0 %2512  ;;  %v2136_v36 = vpop.xlane.xlu1 %2135 }
 0xe6f   :  { %3514 = vpow2.f32 %v2271_v46  ;;  %v2514_v28 = vsub.f32 %v2510_v20, %v2513_v27  ;;  %v2137_v39 = vmul.f32 0.0625, %v2136_v36 }
 0xe71   :  { %v2515_v40 = vmul.f32 1.442695, %v2514_v28  ;;  %v2138_v33 = vadd.f32 1.1920929e-07, %v2137_v39 }
 0xe72   :  { %v2757_v63 = vpop.xlane.xlu0 %2756  ;;  %v2624_v51 = vpop.xlane.xlu1 %2623 }
 0xe73   :  { %3516 = vpow2.f32 %v2515_v40  ;;  %v2758_v9 = vsub.f32 %v2754_v21, %v2757_v63  ;;  %v2625_v22 = vmul.f32 0.0625, %v2624_v51 }
 0xe74   :  { %v3513_v31 = vpop.eup %3512  ;;  %3518 = vrsqrt.f32 %v2138_v33 }
 0xe75   :  { %v2029_v37 = vsel %vm691_vm4, %v3513_v31, 0.0  ;;  %v2759_v50 = vmul.f32 1.442695, %v2758_v9  ;;  %v2626_v45 = vadd.f32 1.1920929e-07, %v2625_v22 }
 0xe76   :  { %2030 = vadd.xlane.f32.xlu0 %v2029_v37  ;;  %v1896_v57 = vpop.xlane.xlu0 %1895 }
 0xe77   :  { %v1897_v11 = vmul.f32 0.0625, %v1896_v57 }
 0xe79   :  { %v3515_v41 = vpop.eup %3514  ;;  %v1898_v24 = vadd.f32 1.1920929e-07, %v1897_v11  ;;  %v1793_v11 = vld [vmem:[#allocation10] sm:$0xff] }
 0xe7a   :  { %v2384_v43 = vpop.xlane.xlu0 %2383  ;;  %v2273_v44 = vsel %vm691_vm4, %v3515_v41, 0.0 }
 0xe7b   :  { %v2385_v42 = vmul.f32 0.0625, %v2384_v43  ;;  %2274 = vadd.xlane.f32.xlu1 %v2273_v44 }
 0xe7d   :  { %v3517_v34 = vpop.eup %3516  ;;  %v2386_v10 = vadd.f32 1.1920929e-07, %v2385_v42 }
 0xe7e   :  { %v2517_v5 = vsel %vm691_vm4, %v3517_v34, 0.0  ;;  %v3519_v13 = vpop.eup %3518 }
 0xe7f   :  { %2518 = vadd.xlane.f32.xlu0 %v2517_v5  ;;  %3520 = vrsqrt.f32 %v2386_v10  ;;  %v2140_v17 = vmul.f32 %v3519_v13, %v4293_v56  ;;  %v1794_v5 = vld [vmem:[#allocation10 + $0x8] sm:$0xff]  ;;  %v1795_v13 = vld [vmem:[#allocation10 + $0x10] sm:$0xff] }
 0xe80   :  { %3522 = vrsqrt.f32 %v1898_v24  ;;  %v3356_v24 = vpack.c.bf16 %v1794_v5, %v1793_v11 }
 0xe81   :  { %3524 = vpow2.f32 %v2759_v50 }
 0xe82   :  { %3526 = vrsqrt.f32 %v2626_v45  ;;  %3357 = vmatprep.subr.bf16.mxu0 %v3356_v24 }
 0xe83   :  { %3359 = vmatpush3.bf16.msra.mxu0 %v3356_v24 }
 0xe89   :  { %v3521_v61 = vpop.eup %3520 }
 0xe8a   :  { %v2388_v15 = vmul.f32 %v3521_v61, %v4291_v47  ;;  %v3523_v29 = vpop.eup %3522 }
 0xe8b   :  { %v1900_v26 = vmul.f32 %v3523_v29, %v4293_v56  ;;  %v3525_v7 = vpop.eup %3524 }
 0xe8c   :  { %2279 = vrot.lane.b32.xlu1 %v2140_v17, %s3729_s29  ;;  %v2761_v2 = vsel %vm691_vm4, %v3525_v7, 0.0  ;;  %v3527_v58 = vpop.eup %3526  ;;  %v1796_v17 = vld [vmem:[#allocation10 + $0x18] sm:$0xff] }
 0xe8d   :  { %v2628_v32 = vmul.f32 %v3527_v58, %v4291_v47  ;;  %v3360_v61 = vpack.c.bf16 %v1796_v17, %v1795_v13 }
 0xe8f   :  { %3361 = vmatprep.subr.bf16.mxu0 %v3360_v61 }
 0xe90   :  { %2523 = vrot.lane.b32.xlu1 %v2388_v15, %s3736_s24  ;;  %3363 = vmatpush3.bf16.msra.mxu0 %v3360_v61 }
 0xe95   :  { %2035 = vrot.lane.b32.xlu0 %v1900_v26, %s3736_s24 }
 0xeb4   :  { %2762 = vadd.xlane.f32.xlu1 %v2761_v2 }
 0xec5   :  { %2767 = vrot.lane.b32.xlu1 %v2628_v32, %s3729_s29 }
 0xf03   :  { %v2031_v52 = vpop.xlane.xlu0 %2030 }
 0xf04   :  { %3528 = vrcp.f32 %v2031_v52 }
 0xf08   :  { %v2275_v56 = vpop.xlane.xlu1 %2274 }
 0xf09   :  { %3530 = vrcp.f32 %v2275_v56 }
 0xf0c   :  { %v2519_v35 = vpop.xlane.xlu0 %2518  ;;  %v2280_v38 = vpop.permute.xlu1 %2279 }
 0xf0d   :  { %3532 = vrcp.f32 %v2519_v35 }
 0xf0e   :  { %v3529_v55 = vpop.eup %3528 }
 0xf0f   :  { %v2033_v18 = vmul.f32 %v3529_v55, %v3513_v31 }
 0xf10   :  { %v2036_v14 = vpop.permute.xlu0 %2035  ;;  %v2524_v20 = vpop.permute.xlu1 %2523 }
 0xf11   :  { %3247 = vmatpush3.msra.mxu1 %v2036_v14 }
 0xf12   :  { %3249 = vmatmul.mubr.msk.f32.vlgmr.msra.gmra.mrb[16].mxu1 %vm691_vm4, %v2033_v18  ;;  %3256 = vmatprep.subr.mxu1 %v3733_v25 }
 0xf13   :  { %v3531_v19 = vpop.eup %3530  ;;  %3257 = vmatpush3.msra.mxu1 %v2280_v38  ;;  %3258 = vmatprep.mubr.msk.f32.mxu1 %vm3734_vm3, %v3733_v25 }
 0xf14   :  { %v2277_v47 = vmul.f32 %v3531_v19, %v3515_v41  ;;  %3266 = vmatprep.subr.mxu1 %v3733_v25 }
 0xf16   :  { %3259 = vmatmul.mubr.msk.f32.vlgmr.msra.gmra.mrb[18].mxu1 %vm691_vm4, %v2277_v47 }
 0xf17   :  { %v3533_v6 = vpop.eup %3532  ;;  %3267 = vmatpush3.msra.mxu1 %v2524_v20  ;;  %3268 = vmatprep.mubr.msk.f32.mxu1 %vm3734_vm3, %v3733_v25  ;;  %v3548_v20 = vld [vmem:[#allocation2 + $0x8] sm:$0xff] }
 0xf18   :  { %v2521_v60 = vmul.f32 %v3533_v6, %v3517_v34  ;;  %3276 = vmatprep.subr.mxu1 %v3733_v25 }
 0xf1a   :  { %3269 = vmatmul.mubr.msk.f32.vlgmr.msra.gmra.mrb[20].mxu1 %vm691_vm4, %v2521_v60 }
 0xf1b   :  { %3278 = vmatprep.mubr.msk.f32.mxu1 %vm3734_vm3, %v3733_v25 }
 0xf41   :  { %v2763_v4 = vpop.xlane.xlu1 %2762 }
 0xf42   :  { %3534 = vrcp.f32 %v2763_v4  ;;  %v3549_v4 = vld [vmem:[#allocation2] sm:$0xff] }
 0xf45   :  { %v2768_v49 = vpop.permute.xlu1 %2767 }
 0xf46   :  { %3277 = vmatpush3.msra.mxu1 %v2768_v49 }
 0xf4c   :  { %v3535_v0 = vpop.eup %3534 }
 0xf4d   :  { %v2765_v53 = vmul.f32 %v3535_v0, %v3525_v7 }
 0xf4f   :  { %3279 = vmatmul.mubr.msk.f32.vlgmr.msra.gmra.mrb[22].mxu1 %vm691_vm4, %v2765_v53 }
 0xfe5   :  { %v2107_v48 = vpop.f32.mrb[16].mxu1 }
 0xfe6   :  { %v3250_v21 = vpop.f32.mrb[17].mxu1 }
 0xfe9   :  { %v2351_v16 = vpop.f32.mrb[18].mxu1 }
 0xfea   :  { %2356 = vrot.lane.b32.xlu0 %v2351_v16, %s3730_s5  ;;  %v3260_v8 = vpop.f32.mrb[19].mxu1 }
 0xfed   :  { %v2595_v59 = vpop.f32.mrb[20].mxu1 }
 0xfee   :  { %v3270_v12 = vpop.f32.mrb[21].mxu1 }
0x1022   :  { %v2839_v62 = vpop.f32.mrb[22].mxu1 }
0x1023   :  { %2844 = vrot.lane.b32.xlu1 %v2839_v62, %s3730_s5  ;;  %v3280_v25 = vpop.f32.mrb[23].mxu1 }
0x105c   :  { %v2357_v30 = vpop.permute.xlu0 %2356 }
0x105d   :  { %v2359_v54 = vsel %vm626_vm2, %v2107_v48, %v2357_v30 }
0x105e   :  { %v2848_v3 = vmul.f32 %v2359_v54, %v2359_v54 }
0x1060   :  { %v2850_v23 = vsel %vm120_vm0, %v2848_v3, 0.0 }
0x1061   :  { %2851 = vadd.xlane.f32.xlu0 %v2850_v23 }
0x1095   :  { %v2845_v1 = vpop.permute.xlu1 %2844 }
0x1096   :  { %v2847_v46 = vsel %vm626_vm2, %v2595_v59, %v2845_v1 }
0x1097   :  { %v2849_v27 = vmul.f32 %v2847_v46, %v2847_v46 }
0x1099   :  { %v2853_v28 = vsel %vm120_vm0, %v2849_v27, 0.0 }
0x109a   :  { %2854 = vadd.xlane.f32.xlu1 %v2853_v28 }
0x10ee   :  { %v2852_v40 = vpop.xlane.xlu0 %2851 }
0x10ef   :  { %v2856_v36 = vmul.f32 0.03125, %v2852_v40 }
0x10f1   :  { %v2858_v63 = vadd.f32 1.1920929e-07, %v2856_v36 }
0x10f3   :  { %3536 = vrsqrt.f32 %v2858_v63 }
0x10fd   :  { %v3537_v31 = vpop.eup %3536 }
0x10fe   :  { %v2862_v39 = vmul.f32 %v3537_v31, %v2359_v54 }
0x1100   :  { %v2864_v37 = vand.u32 2147483647, %v2862_v39 }
0x1102   :  { %v2866_v57 = vsel %vm120_vm0, %v2864_v37, -inf }
0x1103   :  { %2867 = vmax.xlane.f32.xlu0 %v2866_v57 }
0x1127   :  { %v2855_v41 = vpop.xlane.xlu1 %2854 }
0x1128   :  { %v2857_v33 = vmul.f32 0.03125, %v2855_v41 }
0x112a   :  { %v2859_v43 = vadd.f32 1.1920929e-07, %v2857_v33 }
0x112c   :  { %3538 = vrsqrt.f32 %v2859_v43 }
0x1136   :  { %v3539_v44 = vpop.eup %3538 }
0x1137   :  { %v2863_v42 = vmul.f32 %v3539_v44, %v2847_v46 }
0x1139   :  { %v2865_v34 = vand.u32 2147483647, %v2863_v42 }
0x113b   :  { %v2869_v10 = vsel %vm120_vm0, %v2865_v34, -inf }
0x113c   :  { %2870 = vmax.xlane.f32.xlu0 %v2869_v10 }
0x1190   :  { %v2868_v15 = vpop.xlane.xlu0 %2867 }
0x1191   :  { %v2872_v29 = vmax.f32 %v2868_v15, 1e-05 }
0x1193   :  { %3540 = vrcp.f32 %v2872_v29 }
0x119d   :  { %v3541_v26 = vpop.eup %3540 }
0x119e   :  { %v2875_v9 = vmul.f32 127.0, %v3541_v26 }
0x11a0   :  { %v2878_v50 = vmul.f32 %v2875_v9, %v2862_v39  ;;  %3542 = vrcp.f32 %v2875_v9 }
0x11a2   :  { %v3378_v51 = vround.rtne.f32 %v2878_v50 }
0x11a4   :  { %v2882_v22 = vmax.f32 %v3378_v51, -128.0 }
0x11a6   :  { %v2884_v7 = vmin.f32 %v2882_v22, 127.0 }
0x11aa   :  { %v3543_v45 = vpop.eup %3542 }
0x11ab   :  { %v2887_v2 = vmul.f32 %v3543_v45, %v2884_v7 }
0x11ad   :  { %3289 = vmatprep.mubr.msk.f32.mxu0 %vm120_vm0, %v2887_v2 }
0x11c9   :  { %v2871_v58 = vpop.xlane.xlu0 %2870 }
0x11ca   :  { %v2873_v32 = vmax.f32 %v2871_v58, 1e-05 }
0x11cc   :  { %3544 = vrcp.f32 %v2873_v32 }
0x11d6   :  { %v3545_v52 = vpop.eup %3544 }
0x11d7   :  { %v2877_v56 = vmul.f32 127.0, %v3545_v52 }
0x11d9   :  { %v2879_v35 = vmul.f32 %v2877_v56, %v2863_v42  ;;  %3546 = vrcp.f32 %v2877_v56 }
0x11db   :  { %v3379_v55 = vround.rtne.f32 %v2879_v35 }
0x11dd   :  { %v2883_v18 = vmax.f32 %v3379_v55, -128.0 }
0x11df   :  { %v2885_v38 = vmin.f32 %v2883_v18, 127.0 }
0x11e3   :  { %v3547_v14 = vpop.eup %3546 }
0x11e4   :  { %v2889_v19 = vmul.f32 %v3547_v14, %v2885_v38 }
0x11e6   :  { %3290 = vmatmul.mubr.msk.f32.vlgmr.msra.gmra.mrb[2].mxu0 %vm120_vm0, %v2889_v19 }
0x12b9   :  { %v3291_v47 = vpop.f32.mrb[2].mxu0 }
0x12ba   :  { %v3364_v6 = vadd.f32 %v3548_v20, %v3291_v47  ;;  %v2962_v60 = vpop.f32.mrb[3].mxu0 }
0x12bb   :  { %v3365_v49 = vadd.f32 %v3549_v4, %v2962_v60 }
0x12bc   :  { %2978 = vst.msk [vmem:[#allocation13 + $0x8] sm:$0xff] %vm120_vm0, %v3364_v6 }
0x12bd   :  { %2977 = vst.msk [vmem:[#allocation13] sm:$0xff] %vm120_vm0, %v3365_v49 }
0x12be   :  { %3693 = shalt.err (!%p3690_p10)
}
0x12bf   :  { %s3694_s27 = scalar_lea.hbm %s4585_s10, 256 }
0x12c0   :  { %p3695_p11 = scmp.ne.s32.totalorder %s4585_s10, %s3694_s27  ;;  %p3698_p12 = scmp.lt.u32.totalorder %s3694_s27, %s4585_s10 }
0x12c2   :  { %p3700_p13 = pnand %p3698_p12, %p3695_p11 }
0x12c4   :  { %3703 = shalt.err (!%p3700_p13)
}
0x12c5   :  { %2990 = dma.vmem_to_hbm [thread:$0]  %s2985_s13, 256, %s4585_s10, [#allocation4], %s3717_s14, %s3717_s14, %s3718_s17  }
0x12c6   :  { %3712 = dma.done.wait [#allocation4], 256  }
0x12c7   :  { %3713 = vsyncadd [#allocation4], 4294967040 }
0x12c8   :  { %2994 = vsyncpa [#allocation3], 1 }
0x12c9   :  { %2995 = vsyncpa [#allocation6], 1 }
0x12ca   :  { %2996 = vsyncpa [#allocation9], 1 }
0x12cb   :  { %2997 = vsyncpa [#allocation12], 1 }
0x12cc   :  { %2998 = vsyncpa [#allocation4], 1 }

</bundles_post_ra>
